<compile_context>
chip_gen: v5e
topology: v5e:2x2
jax: 0.10.0
libtpu: 0.0.40
codegen_flags: <defaults>
</compile_context>

<pallas_src>
import jax
import jax.numpy as jnp
import numpy as np
from jax.experimental import pallas as pl
from jax.experimental.pallas import tpu as pltpu


def _make_fusion_kernel(shifts, cin_g, DHW, PAD):
    """Kernel for one (group, sample) pair.

    Refs:
      x_ref:     (1, cin_g, PAD + DHW + PAD)  zero-padded flat input   (bf16)
      w_ref:     (1, cout_g, KVOL*cin_g)      im2col-ordered weights   (bf16)
      scale_ref: (1, cout_g, 1)               folded BN scale          (f32)
      bias_ref:  (1, cout_g, 1)               folded BN bias           (f32)
      mask_ref:  (KVOL, DHW)                  0/1 boundary masks       (bf16)
      o_ref:     (1, cout_g, DHW)             output
      xcol_ref:  (KVOL*cin_g, DHW)            VMEM scratch: im2col matrix
    """

    def kernel(x_ref, w_ref, scale_ref, bias_ref, mask_ref, o_ref, xcol_ref):
        # Build the im2col matrix: row block k holds the input window for tap k,
        # i.e. the input shifted by shifts[k] along the flattened D*H*W axis,
        # with out-of-volume positions zeroed by the per-tap mask (= zero pad).
        for k, s in enumerate(shifts):
            win = x_ref[0, :, pl.ds(PAD + s, DHW)]          # (cin_g, DHW)
            win = win * mask_ref[pl.ds(k, 1), :]            # zero the halo taps
            xcol_ref[pl.ds(k * cin_g, cin_g), :] = win

        # One fat MXU contraction: (cout_g, KVOL*cin_g) @ (KVOL*cin_g, DHW).
        acc = jnp.dot(w_ref[0], xcol_ref[...],
                      preferred_element_type=jnp.float32)   # (cout_g, DHW) f32
        out = acc * scale_ref[0] + bias_ref[0]               # fused BatchNorm
        o_ref[0] = jnp.maximum(out, 0.0).astype(o_ref.dtype)  # ReLU

    return kernel


def fusion_cat_forward(out12, out21, weight, gamma, beta, running_mean,
                       running_var, nheads, eps=1e-5, padding=1,
                       compute_dtype=jnp.bfloat16):
    """FusionCAT.forward: relu(BN(grouped_conv3d(cat([out12, out21], dim=C))))."""
    N, C, D, H, W = out12.shape
    G = nheads
    Cin = 2 * C
    Cout, cin_g, kD, kH, kW = weight.shape
    assert Cin == cin_g * G and Cout % G == 0
    cout_g = Cout // G
    DHW, HW = D * H * W, H * W
    KVOL = kD * kH * kW

    # Per-tap flat shifts + boundary masks (constant metadata, built with numpy).
    shifts, mask_rows = [], []
    dd, hh, ww = np.meshgrid(np.arange(D), np.arange(H), np.arange(W),
                             indexing="ij")
    for kd in range(kD):
        for kh in range(kH):
            for kw in range(kW):
                od, oh, ow = kd - padding, kh - padding, kw - padding
                shifts.append(od * HW + oh * W + ow)
                m = ((dd + od >= 0) & (dd + od < D) &
                     (hh + oh >= 0) & (hh + oh < H) &
                     (ww + ow >= 0) & (ww + ow < W))
                mask_rows.append(m.reshape(DHW))
    shifts = tuple(shifts)
    max_shift = max(abs(s) for s in shifts)
    PAD = ((max_shift + 127) // 128) * 128 if max_shift else 0
    Lp = DHW + 2 * PAD
    mask = jnp.asarray(np.stack(mask_rows), dtype=compute_dtype)   # (KVOL, DHW)

    # --- layout plumbing (reshape-only, no transpose / 3-D pad) ---------------
    x = jnp.concatenate([out12, out21], axis=1)                    # (N, 2C, D, H, W)
    xg = x.reshape(N * G, cin_g, DHW).astype(compute_dtype)
    xp = jnp.pad(xg, ((0, 0), (0, 0), (PAD, PAD)))                 # flat zero halo

    # Conv weight (Cout, cin_g, kD, kH, kW) -> (G, cout_g, KVOL*cin_g),
    # im2col ordering (tap-major, cin minor) to match the scratch layout.
    wg = weight.reshape(G, cout_g, cin_g, kD, kH, kW)
    wg = wg.transpose(0, 1, 3, 4, 5, 2).reshape(G, cout_g, KVOL * cin_g)
    wg = wg.astype(compute_dtype)

    # Fold BatchNorm (inference / running-stats) into per-channel scale & bias.
    # TODO(synk): training-mode BatchNorm (batch statistics) would need an extra
    # global reduction pass; only inference semantics are implemented here.
    scale = (gamma / jnp.sqrt(running_var + eps)).astype(jnp.float32)
    bias = (beta - running_mean * scale).astype(jnp.float32)
    scale_g = scale.reshape(G, cout_g, 1)
    bias_g = bias.reshape(G, cout_g, 1)

    # --- hot path: Pallas kernel ----------------------------------------------
    kernel = _make_fusion_kernel(shifts, cin_g, DHW, PAD)

    out = pl.pallas_call(
        kernel,
        out_shape=jax.ShapeDtypeStruct((N * G, cout_g, DHW), out12.dtype),
        grid=(G, N),   # group on the outer axis -> weights/scale/bias/masks stay resident
        in_specs=[
            pl.BlockSpec((1, cin_g, Lp), lambda g, n: (n * G + g, 0, 0)),
            pl.BlockSpec((1, cout_g, KVOL * cin_g), lambda g, n: (g, 0, 0)),
            pl.BlockSpec((1, cout_g, 1), lambda g, n: (g, 0, 0)),
            pl.BlockSpec((1, cout_g, 1), lambda g, n: (g, 0, 0)),
            pl.BlockSpec((KVOL, DHW), lambda g, n: (0, 0)),
        ],
        out_specs=pl.BlockSpec((1, cout_g, DHW), lambda g, n: (n * G + g, 0, 0)),
        scratch_shapes=[pltpu.VMEM((KVOL * cin_g, DHW), compute_dtype)],
        compiler_params=pltpu.CompilerParams(
            dimension_semantics=("parallel", "parallel")),
    )(xp, wg, scale_g, bias_g, mask)

    # (N*G, cout_g, DHW) -> (N, Cout, D, H, W): pure reshape; channel order
    # g*cout_g + co matches PyTorch grouped-conv output ordering.
    return out.reshape(N, Cout, D, H, W)


if __name__ == "__main__":
    # Small shapes consistent with FusionCAT(nfilters_in=8, nfilters_out=16, nheads=2).
    N, C_in, D, H, W = 2, 8, 8, 8, 8
    nheads = 2
    C_out = 16
    kD = kH = kW = 3
    cin_g = (2 * C_in) // nheads

    key = jax.random.PRNGKey(0)
    k1, k2, k3, k4, k5, k6, k7 = jax.random.split(key, 7)

    out12 = jax.random.normal(k1, (N, C_in, D, H, W), jnp.float32)
    out21 = jax.random.normal(k2, (N, C_in, D, H, W), jnp.float32)

    # Deterministic synthetic parameters (Conv3d weight without bias + BatchNorm3d).
    fan_in = cin_g * kD * kH * kW
    weight = jax.random.normal(k3, (C_out, cin_g, kD, kH, kW), jnp.float32) * (2.0 / fan_in) ** 0.5
    gamma = 1.0 + 0.1 * jax.random.normal(k4, (C_out,), jnp.float32)
    beta = 0.1 * jax.random.normal(k5, (C_out,), jnp.float32)
    running_mean = 0.1 * jax.random.normal(k6, (C_out,), jnp.float32)
    running_var = 0.5 + jax.random.uniform(k7, (C_out,), jnp.float32)

    out = fusion_cat_forward(out12, out21, weight, gamma, beta,
                             running_mean, running_var, nheads)
    out = jax.block_until_ready(out)

    # Reference: XLA grouped conv3d + folded BN + ReLU.  The kernel feeds the MXU
    # in bfloat16 (with f32 accumulation), so the reference uses the same
    # bf16-rounded operands; remaining differences are accumulation order only.
    x_cat = jnp.concatenate([out12, out21], axis=1)
    xq = x_cat.astype(jnp.bfloat16).astype(jnp.float32)
    wq = weight.astype(jnp.bfloat16).astype(jnp.float32)
    ref_conv = jax.lax.conv_general_dilated(
        xq, wq, window_strides=(1, 1, 1),
        padding=((1, 1), (1, 1), (1, 1)),
        dimension_numbers=("NCDHW", "OIDHW", "NCDHW"),
        feature_group_count=nheads,
        precision=jax.lax.Precision.HIGHEST)
    scale = gamma / jnp.sqrt(running_var + 1e-5)
    bias = beta - running_mean * scale
    ref = jnp.maximum(ref_conv * scale[None, :, None, None, None]
                      + bias[None, :, None, None, None], 0.0)

    assert out.shape == (N, C_out, D, H, W), out.shape
    max_err = float(jnp.max(jnp.abs(out - ref)))
    assert jnp.allclose(out, ref, atol=1e-2, rtol=1e-2), max_err
    print("KERNEL_OK")
</pallas_src>

<mosaic_0001>
module attributes {stable_mosaic.version = 11 : i64} {
  func.func @kernel(%arg0: i32, %arg1: i32, %arg2: memref<1x8x768xbf16, #tpu.memory_space<vmem>>, %arg3: memref<1x8x216xbf16, #tpu.memory_space<vmem>>, %arg4: memref<1x8x1xf32, #tpu.memory_space<vmem>>, %arg5: memref<1x8x1xf32, #tpu.memory_space<vmem>>, %arg6: memref<27x512xbf16, #tpu.memory_space<vmem>>, %arg7: memref<1x8x512xf32, #tpu.memory_space<vmem>>, %arg8: memref<216x512xbf16, #tpu.memory_space<vmem>>) attributes {dimension_semantics = [#tpu.dimension_semantics<parallel>, #tpu.dimension_semantics<parallel>], iteration_bounds = array<i64: 2, 2>, scalar_prefetch = 0 : i64, scratch_operands = 1 : i64, tpu.core_type = #tpu.core_type<tc>, window_params = [{transform_indices = @transform_0, window_bounds = array<i64: 1, 8, 768>}, {transform_indices = @transform_1, window_bounds = array<i64: 1, 8, 216>}, {transform_indices = @transform_2, window_bounds = array<i64: 1, 8, 1>}, {transform_indices = @transform_3, window_bounds = array<i64: 1, 8, 1>}, {pipeline_mode = #tpu.pipeline_mode<synchronous>, transform_indices = @transform_4, window_bounds = array<i64: 27, 512>}, {transform_indices = @transform_5, window_bounds = array<i64: 1, 8, 512>}]} {
    %c0 = arith.constant 0 : index
    %c0_0 = arith.constant 0 : index
    %c55 = arith.constant 55 : index
    %0 = vector.load %arg2[%c0, %c0_0, %c55] : memref<1x8x768xbf16, #tpu.memory_space<vmem>>, vector<1x8x512xbf16>
    %1 = vector.shape_cast %0 : vector<1x8x512xbf16> to vector<8x512xbf16>
    %c0_1 = arith.constant 0 : index
    %c0_2 = arith.constant 0 : index
    %2 = vector.load %arg6[%c0_1, %c0_2] : memref<27x512xbf16, #tpu.memory_space<vmem>>, vector<1x512xbf16>
    %3 = vector.broadcast %2 : vector<1x512xbf16> to vector<8x512xbf16>
    %4 = arith.mulf %1, %3 : vector<8x512xbf16>
    %c0_3 = arith.constant 0 : index
    %c0_4 = arith.constant 0 : index
    %5 = vector.load %arg8[%c0_3, %c0_4] : memref<216x512xbf16, #tpu.memory_space<vmem>>, vector<8x512xbf16>
    tpu.vector_store %arg8[%c0_3, %c0_4], %4 {strides = array<i32>} : memref<216x512xbf16, #tpu.memory_space<vmem>>, vector<8x512xbf16>,
    %c0_5 = arith.constant 0 : index
    %c0_6 = arith.constant 0 : index
    %c56 = arith.constant 56 : index
    %6 = vector.load %arg2[%c0_5, %c0_6, %c56] : memref<1x8x768xbf16, #tpu.memory_space<vmem>>, vector<1x8x512xbf16>
    %7 = vector.shape_cast %6 : vector<1x8x512xbf16> to vector<8x512xbf16>
    %c1 = arith.constant 1 : index
    %c0_7 = arith.constant 0 : index
    %8 = vector.load %arg6[%c1, %c0_7] : memref<27x512xbf16, #tpu.memory_space<vmem>>, vector<1x512xbf16>
    %9 = vector.broadcast %8 : vector<1x512xbf16> to vector<8x512xbf16>
    %10 = arith.mulf %7, %9 : vector<8x512xbf16>
    %c8 = arith.constant 8 : index
    %c0_8 = arith.constant 0 : index
    %11 = vector.load %arg8[%c8, %c0_8] : memref<216x512xbf16, #tpu.memory_space<vmem>>, vector<8x512xbf16>
    tpu.vector_store %arg8[%c8, %c0_8], %10 {strides = array<i32>} : memref<216x512xbf16, #tpu.memory_space<vmem>>, vector<8x512xbf16>,
    %c0_9 = arith.constant 0 : index
    %c0_10 = arith.constant 0 : index
    %c57 = arith.constant 57 : index
    %12 = vector.load %arg2[%c0_9, %c0_10, %c57] : memref<1x8x768xbf16, #tpu.memory_space<vmem>>, vector<1x8x512xbf16>
    %13 = vector.shape_cast %12 : vector<1x8x512xbf16> to vector<8x512xbf16>
    %c2 = arith.constant 2 : index
    %c0_11 = arith.constant 0 : index
    %14 = vector.load %arg6[%c2, %c0_11] : memref<27x512xbf16, #tpu.memory_space<vmem>>, vector<1x512xbf16>
    %15 = vector.broadcast %14 : vector<1x512xbf16> to vector<8x512xbf16>
    %16 = arith.mulf %13, %15 : vector<8x512xbf16>
    %c16 = arith.constant 16 : index
    %c0_12 = arith.constant 0 : index
    %17 = vector.load %arg8[%c16, %c0_12] : memref<216x512xbf16, #tpu.memory_space<vmem>>, vector<8x512xbf16>
    tpu.vector_store %arg8[%c16, %c0_12], %16 {strides = array<i32>} : memref<216x512xbf16, #tpu.memory_space<vmem>>, vector<8x512xbf16>,
    %c0_13 = arith.constant 0 : index
    %c0_14 = arith.constant 0 : index
    %c63 = arith.constant 63 : index
    %18 = vector.load %arg2[%c0_13, %c0_14, %c63] : memref<1x8x768xbf16, #tpu.memory_space<vmem>>, vector<1x8x512xbf16>
    %19 = vector.shape_cast %18 : vector<1x8x512xbf16> to vector<8x512xbf16>
    %c3 = arith.constant 3 : index
    %c0_15 = arith.constant 0 : index
    %20 = vector.load %arg6[%c3, %c0_15] : memref<27x512xbf16, #tpu.memory_space<vmem>>, vector<1x512xbf16>
    %21 = vector.broadcast %20 : vector<1x512xbf16> to vector<8x512xbf16>
    %22 = arith.mulf %19, %21 : vector<8x512xbf16>
    %c24 = arith.constant 24 : index
    %c0_16 = arith.constant 0 : index
    %23 = vector.load %arg8[%c24, %c0_16] : memref<216x512xbf16, #tpu.memory_space<vmem>>, vector<8x512xbf16>
    tpu.vector_store %arg8[%c24, %c0_16], %22 {strides = array<i32>} : memref<216x512xbf16, #tpu.memory_space<vmem>>, vector<8x512xbf16>,
    %c0_17 = arith.constant 0 : index
    %c0_18 = arith.constant 0 : index
    %c64 = arith.constant 64 : index
    %24 = vector.load %arg2[%c0_17, %c0_18, %c64] : memref<1x8x768xbf16, #tpu.memory_space<vmem>>, vector<1x8x512xbf16>
    %25 = vector.shape_cast %24 : vector<1x8x512xbf16> to vector<8x512xbf16>
    %c4 = arith.constant 4 : index
    %c0_19 = arith.constant 0 : index
    %26 = vector.load %arg6[%c4, %c0_19] : memref<27x512xbf16, #tpu.memory_space<vmem>>, vector<1x512xbf16>
    %27 = vector.broadcast %26 : vector<1x512xbf16> to vector<8x512xbf16>
    %28 = arith.mulf %25, %27 : vector<8x512xbf16>
    %c32 = arith.constant 32 : index
    %c0_20 = arith.constant 0 : index
    %29 = vector.load %arg8[%c32, %c0_20] : memref<216x512xbf16, #tpu.memory_space<vmem>>, vector<8x512xbf16>
    tpu.vector_store %arg8[%c32, %c0_20], %28 {strides = array<i32>} : memref<216x512xbf16, #tpu.memory_space<vmem>>, vector<8x512xbf16>,
    %c0_21 = arith.constant 0 : index
    %c0_22 = arith.constant 0 : index
    %c65 = arith.constant 65 : index
    %30 = vector.load %arg2[%c0_21, %c0_22, %c65] : memref<1x8x768xbf16, #tpu.memory_space<vmem>>, vector<1x8x512xbf16>
    %31 = vector.shape_cast %30 : vector<1x8x512xbf16> to vector<8x512xbf16>
    %c5 = arith.constant 5 : index
    %c0_23 = arith.constant 0 : index
    %32 = vector.load %arg6[%c5, %c0_23] : memref<27x512xbf16, #tpu.memory_space<vmem>>, vector<1x512xbf16>
    %33 = vector.broadcast %32 : vector<1x512xbf16> to vector<8x512xbf16>
    %34 = arith.mulf %31, %33 : vector<8x512xbf16>
    %c40 = arith.constant 40 : index
    %c0_24 = arith.constant 0 : index
    %35 = vector.load %arg8[%c40, %c0_24] : memref<216x512xbf16, #tpu.memory_space<vmem>>, vector<8x512xbf16>
    tpu.vector_store %arg8[%c40, %c0_24], %34 {strides = array<i32>} : memref<216x512xbf16, #tpu.memory_space<vmem>>, vector<8x512xbf16>,
    %c0_25 = arith.constant 0 : index
    %c0_26 = arith.constant 0 : index
    %c71 = arith.constant 71 : index
    %36 = vector.load %arg2[%c0_25, %c0_26, %c71] : memref<1x8x768xbf16, #tpu.memory_space<vmem>>, vector<1x8x512xbf16>
    %37 = vector.shape_cast %36 : vector<1x8x512xbf16> to vector<8x512xbf16>
    %c6 = arith.constant 6 : index
    %c0_27 = arith.constant 0 : index
    %38 = vector.load %arg6[%c6, %c0_27] : memref<27x512xbf16, #tpu.memory_space<vmem>>, vector<1x512xbf16>
    %39 = vector.broadcast %38 : vector<1x512xbf16> to vector<8x512xbf16>
    %40 = arith.mulf %37, %39 : vector<8x512xbf16>
    %c48 = arith.constant 48 : index
    %c0_28 = arith.constant 0 : index
    %41 = vector.load %arg8[%c48, %c0_28] : memref<216x512xbf16, #tpu.memory_space<vmem>>, vector<8x512xbf16>
    tpu.vector_store %arg8[%c48, %c0_28], %40 {strides = array<i32>} : memref<216x512xbf16, #tpu.memory_space<vmem>>, vector<8x512xbf16>,
    %c0_29 = arith.constant 0 : index
    %c0_30 = arith.constant 0 : index
    %c72 = arith.constant 72 : index
    %42 = vector.load %arg2[%c0_29, %c0_30, %c72] : memref<1x8x768xbf16, #tpu.memory_space<vmem>>, vector<1x8x512xbf16>
    %43 = vector.shape_cast %42 : vector<1x8x512xbf16> to vector<8x512xbf16>
    %c7 = arith.constant 7 : index
    %c0_31 = arith.constant 0 : index
    %44 = vector.load %arg6[%c7, %c0_31] : memref<27x512xbf16, #tpu.memory_space<vmem>>, vector<1x512xbf16>
    %45 = vector.broadcast %44 : vector<1x512xbf16> to vector<8x512xbf16>
    %46 = arith.mulf %43, %45 : vector<8x512xbf16>
    %c56_32 = arith.constant 56 : index
    %c0_33 = arith.constant 0 : index
    %47 = vector.load %arg8[%c56_32, %c0_33] : memref<216x512xbf16, #tpu.memory_space<vmem>>, vector<8x512xbf16>
    tpu.vector_store %arg8[%c56_32, %c0_33], %46 {strides = array<i32>} : memref<216x512xbf16, #tpu.memory_space<vmem>>, vector<8x512xbf16>,
    %c0_34 = arith.constant 0 : index
    %c0_35 = arith.constant 0 : index
    %c73 = arith.constant 73 : index
    %48 = vector.load %arg2[%c0_34, %c0_35, %c73] : memref<1x8x768xbf16, #tpu.memory_space<vmem>>, vector<1x8x512xbf16>
    %49 = vector.shape_cast %48 : vector<1x8x512xbf16> to vector<8x512xbf16>
    %c8_36 = arith.constant 8 : index
    %c0_37 = arith.constant 0 : index
    %50 = vector.load %arg6[%c8_36, %c0_37] : memref<27x512xbf16, #tpu.memory_space<vmem>>, vector<1x512xbf16>
    %51 = vector.broadcast %50 : vector<1x512xbf16> to vector<8x512xbf16>
    %52 = arith.mulf %49, %51 : vector<8x512xbf16>
    %c64_38 = arith.constant 64 : index
    %c0_39 = arith.constant 0 : index
    %53 = vector.load %arg8[%c64_38, %c0_39] : memref<216x512xbf16, #tpu.memory_space<vmem>>, vector<8x512xbf16>
    tpu.vector_store %arg8[%c64_38, %c0_39], %52 {strides = array<i32>} : memref<216x512xbf16, #tpu.memory_space<vmem>>, vector<8x512xbf16>,
    %c0_40 = arith.constant 0 : index
    %c0_41 = arith.constant 0 : index
    %c119 = arith.constant 119 : index
    %54 = vector.load %arg2[%c0_40, %c0_41, %c119] : memref<1x8x768xbf16, #tpu.memory_space<vmem>>, vector<1x8x512xbf16>
    %55 = vector.shape_cast %54 : vector<1x8x512xbf16> to vector<8x512xbf16>
    %c9 = arith.constant 9 : index
    %c0_42 = arith.constant 0 : index
    %56 = vector.load %arg6[%c9, %c0_42] : memref<27x512xbf16, #tpu.memory_space<vmem>>, vector<1x512xbf16>
    %57 = vector.broadcast %56 : vector<1x512xbf16> to vector<8x512xbf16>
    %58 = arith.mulf %55, %57 : vector<8x512xbf16>
    %c72_43 = arith.constant 72 : index
    %c0_44 = arith.constant 0 : index
    %59 = vector.load %arg8[%c72_43, %c0_44] : memref<216x512xbf16, #tpu.memory_space<vmem>>, vector<8x512xbf16>
    tpu.vector_store %arg8[%c72_43, %c0_44], %58 {strides = array<i32>} : memref<216x512xbf16, #tpu.memory_space<vmem>>, vector<8x512xbf16>,
    %c0_45 = arith.constant 0 : index
    %c0_46 = arith.constant 0 : index
    %c120 = arith.constant 120 : index
    %60 = vector.load %arg2[%c0_45, %c0_46, %c120] : memref<1x8x768xbf16, #tpu.memory_space<vmem>>, vector<1x8x512xbf16>
    %61 = vector.shape_cast %60 : vector<1x8x512xbf16> to vector<8x512xbf16>
    %c10 = arith.constant 10 : index
    %c0_47 = arith.constant 0 : index
    %62 = vector.load %arg6[%c10, %c0_47] : memref<27x512xbf16, #tpu.memory_space<vmem>>, vector<1x512xbf16>
    %63 = vector.broadcast %62 : vector<1x512xbf16> to vector<8x512xbf16>
    %64 = arith.mulf %61, %63 : vector<8x512xbf16>
    %c80 = arith.constant 80 : index
    %c0_48 = arith.constant 0 : index
    %65 = vector.load %arg8[%c80, %c0_48] : memref<216x512xbf16, #tpu.memory_space<vmem>>, vector<8x512xbf16>
    tpu.vector_store %arg8[%c80, %c0_48], %64 {strides = array<i32>} : memref<216x512xbf16, #tpu.memory_space<vmem>>, vector<8x512xbf16>,
    %c0_49 = arith.constant 0 : index
    %c0_50 = arith.constant 0 : index
    %c121 = arith.constant 121 : index
    %66 = vector.load %arg2[%c0_49, %c0_50, %c121] : memref<1x8x768xbf16, #tpu.memory_space<vmem>>, vector<1x8x512xbf16>
    %67 = vector.shape_cast %66 : vector<1x8x512xbf16> to vector<8x512xbf16>
    %c11 = arith.constant 11 : index
    %c0_51 = arith.constant 0 : index
    %68 = vector.load %arg6[%c11, %c0_51] : memref<27x512xbf16, #tpu.memory_space<vmem>>, vector<1x512xbf16>
    %69 = vector.broadcast %68 : vector<1x512xbf16> to vector<8x512xbf16>
    %70 = arith.mulf %67, %69 : vector<8x512xbf16>
    %c88 = arith.constant 88 : index
    %c0_52 = arith.constant 0 : index
    %71 = vector.load %arg8[%c88, %c0_52] : memref<216x512xbf16, #tpu.memory_space<vmem>>, vector<8x512xbf16>
    tpu.vector_store %arg8[%c88, %c0_52], %70 {strides = array<i32>} : memref<216x512xbf16, #tpu.memory_space<vmem>>, vector<8x512xbf16>,
    %c0_53 = arith.constant 0 : index
    %c0_54 = arith.constant 0 : index
    %c127 = arith.constant 127 : index
    %72 = vector.load %arg2[%c0_53, %c0_54, %c127] : memref<1x8x768xbf16, #tpu.memory_space<vmem>>, vector<1x8x512xbf16>
    %73 = vector.shape_cast %72 : vector<1x8x512xbf16> to vector<8x512xbf16>
    %c12 = arith.constant 12 : index
    %c0_55 = arith.constant 0 : index
    %74 = vector.load %arg6[%c12, %c0_55] : memref<27x512xbf16, #tpu.memory_space<vmem>>, vector<1x512xbf16>
    %75 = vector.broadcast %74 : vector<1x512xbf16> to vector<8x512xbf16>
    %76 = arith.mulf %73, %75 : vector<8x512xbf16>
    %c96 = arith.constant 96 : index
    %c0_56 = arith.constant 0 : index
    %77 = vector.load %arg8[%c96, %c0_56] : memref<216x512xbf16, #tpu.memory_space<vmem>>, vector<8x512xbf16>
    tpu.vector_store %arg8[%c96, %c0_56], %76 {strides = array<i32>} : memref<216x512xbf16, #tpu.memory_space<vmem>>, vector<8x512xbf16>,
    %c0_57 = arith.constant 0 : index
    %c0_58 = arith.constant 0 : index
    %c128 = arith.constant 128 : index
    %78 = vector.load %arg2[%c0_57, %c0_58, %c128] : memref<1x8x768xbf16, #tpu.memory_space<vmem>>, vector<1x8x512xbf16>
    %79 = vector.shape_cast %78 : vector<1x8x512xbf16> to vector<8x512xbf16>
    %c13 = arith.constant 13 : index
    %c0_59 = arith.constant 0 : index
    %80 = vector.load %arg6[%c13, %c0_59] : memref<27x512xbf16, #tpu.memory_space<vmem>>, vector<1x512xbf16>
    %81 = vector.broadcast %80 : vector<1x512xbf16> to vector<8x512xbf16>
    %82 = arith.mulf %79, %81 : vector<8x512xbf16>
    %c104 = arith.constant 104 : index
    %c0_60 = arith.constant 0 : index
    %83 = vector.load %arg8[%c104, %c0_60] : memref<216x512xbf16, #tpu.memory_space<vmem>>, vector<8x512xbf16>
    tpu.vector_store %arg8[%c104, %c0_60], %82 {strides = array<i32>} : memref<216x512xbf16, #tpu.memory_space<vmem>>, vector<8x512xbf16>,
    %c0_61 = arith.constant 0 : index
    %c0_62 = arith.constant 0 : index
    %c129 = arith.constant 129 : index
    %84 = vector.load %arg2[%c0_61, %c0_62, %c129] : memref<1x8x768xbf16, #tpu.memory_space<vmem>>, vector<1x8x512xbf16>
    %85 = vector.shape_cast %84 : vector<1x8x512xbf16> to vector<8x512xbf16>
    %c14 = arith.constant 14 : index
    %c0_63 = arith.constant 0 : index
    %86 = vector.load %arg6[%c14, %c0_63] : memref<27x512xbf16, #tpu.memory_space<vmem>>, vector<1x512xbf16>
    %87 = vector.broadcast %86 : vector<1x512xbf16> to vector<8x512xbf16>
    %88 = arith.mulf %85, %87 : vector<8x512xbf16>
    %c112 = arith.constant 112 : index
    %c0_64 = arith.constant 0 : index
    %89 = vector.load %arg8[%c112, %c0_64] : memref<216x512xbf16, #tpu.memory_space<vmem>>, vector<8x512xbf16>
    tpu.vector_store %arg8[%c112, %c0_64], %88 {strides = array<i32>} : memref<216x512xbf16, #tpu.memory_space<vmem>>, vector<8x512xbf16>,
    %c0_65 = arith.constant 0 : index
    %c0_66 = arith.constant 0 : index
    %c135 = arith.constant 135 : index
    %90 = vector.load %arg2[%c0_65, %c0_66, %c135] : memref<1x8x768xbf16, #tpu.memory_space<vmem>>, vector<1x8x512xbf16>
    %91 = vector.shape_cast %90 : vector<1x8x512xbf16> to vector<8x512xbf16>
    %c15 = arith.constant 15 : index
    %c0_67 = arith.constant 0 : index
    %92 = vector.load %arg6[%c15, %c0_67] : memref<27x512xbf16, #tpu.memory_space<vmem>>, vector<1x512xbf16>
    %93 = vector.broadcast %92 : vector<1x512xbf16> to vector<8x512xbf16>
    %94 = arith.mulf %91, %93 : vector<8x512xbf16>
    %c120_68 = arith.constant 120 : index
    %c0_69 = arith.constant 0 : index
    %95 = vector.load %arg8[%c120_68, %c0_69] : memref<216x512xbf16, #tpu.memory_space<vmem>>, vector<8x512xbf16>
    tpu.vector_store %arg8[%c120_68, %c0_69], %94 {strides = array<i32>} : memref<216x512xbf16, #tpu.memory_space<vmem>>, vector<8x512xbf16>,
    %c0_70 = arith.constant 0 : index
    %c0_71 = arith.constant 0 : index
    %c136 = arith.constant 136 : index
    %96 = vector.load %arg2[%c0_70, %c0_71, %c136] : memref<1x8x768xbf16, #tpu.memory_space<vmem>>, vector<1x8x512xbf16>
    %97 = vector.shape_cast %96 : vector<1x8x512xbf16> to vector<8x512xbf16>
    %c16_72 = arith.constant 16 : index
    %c0_73 = arith.constant 0 : index
    %98 = vector.load %arg6[%c16_72, %c0_73] : memref<27x512xbf16, #tpu.memory_space<vmem>>, vector<1x512xbf16>
    %99 = vector.broadcast %98 : vector<1x512xbf16> to vector<8x512xbf16>
    %100 = arith.mulf %97, %99 : vector<8x512xbf16>
    %c128_74 = arith.constant 128 : index
    %c0_75 = arith.constant 0 : index
    %101 = vector.load %arg8[%c128_74, %c0_75] : memref<216x512xbf16, #tpu.memory_space<vmem>>, vector<8x512xbf16>
    tpu.vector_store %arg8[%c128_74, %c0_75], %100 {strides = array<i32>} : memref<216x512xbf16, #tpu.memory_space<vmem>>, vector<8x512xbf16>,
    %c0_76 = arith.constant 0 : index
    %c0_77 = arith.constant 0 : index
    %c137 = arith.constant 137 : index
    %102 = vector.load %arg2[%c0_76, %c0_77, %c137] : memref<1x8x768xbf16, #tpu.memory_space<vmem>>, vector<1x8x512xbf16>
    %103 = vector.shape_cast %102 : vector<1x8x512xbf16> to vector<8x512xbf16>
    %c17 = arith.constant 17 : index
    %c0_78 = arith.constant 0 : index
    %104 = vector.load %arg6[%c17, %c0_78] : memref<27x512xbf16, #tpu.memory_space<vmem>>, vector<1x512xbf16>
    %105 = vector.broadcast %104 : vector<1x512xbf16> to vector<8x512xbf16>
    %106 = arith.mulf %103, %105 : vector<8x512xbf16>
    %c136_79 = arith.constant 136 : index
    %c0_80 = arith.constant 0 : index
    %107 = vector.load %arg8[%c136_79, %c0_80] : memref<216x512xbf16, #tpu.memory_space<vmem>>, vector<8x512xbf16>
    tpu.vector_store %arg8[%c136_79, %c0_80], %106 {strides = array<i32>} : memref<216x512xbf16, #tpu.memory_space<vmem>>, vector<8x512xbf16>,
    %c0_81 = arith.constant 0 : index
    %c0_82 = arith.constant 0 : index
    %c183 = arith.constant 183 : index
    %108 = vector.load %arg2[%c0_81, %c0_82, %c183] : memref<1x8x768xbf16, #tpu.memory_space<vmem>>, vector<1x8x512xbf16>
    %109 = vector.shape_cast %108 : vector<1x8x512xbf16> to vector<8x512xbf16>
    %c18 = arith.constant 18 : index
    %c0_83 = arith.constant 0 : index
    %110 = vector.load %arg6[%c18, %c0_83] : memref<27x512xbf16, #tpu.memory_space<vmem>>, vector<1x512xbf16>
    %111 = vector.broadcast %110 : vector<1x512xbf16> to vector<8x512xbf16>
    %112 = arith.mulf %109, %111 : vector<8x512xbf16>
    %c144 = arith.constant 144 : index
    %c0_84 = arith.constant 0 : index
    %113 = vector.load %arg8[%c144, %c0_84] : memref<216x512xbf16, #tpu.memory_space<vmem>>, vector<8x512xbf16>
    tpu.vector_store %arg8[%c144, %c0_84], %112 {strides = array<i32>} : memref<216x512xbf16, #tpu.memory_space<vmem>>, vector<8x512xbf16>,
    %c0_85 = arith.constant 0 : index
    %c0_86 = arith.constant 0 : index
    %c184 = arith.constant 184 : index
    %114 = vector.load %arg2[%c0_85, %c0_86, %c184] : memref<1x8x768xbf16, #tpu.memory_space<vmem>>, vector<1x8x512xbf16>
    %115 = vector.shape_cast %114 : vector<1x8x512xbf16> to vector<8x512xbf16>
    %c19 = arith.constant 19 : index
    %c0_87 = arith.constant 0 : index
    %116 = vector.load %arg6[%c19, %c0_87] : memref<27x512xbf16, #tpu.memory_space<vmem>>, vector<1x512xbf16>
    %117 = vector.broadcast %116 : vector<1x512xbf16> to vector<8x512xbf16>
    %118 = arith.mulf %115, %117 : vector<8x512xbf16>
    %c152 = arith.constant 152 : index
    %c0_88 = arith.constant 0 : index
    %119 = vector.load %arg8[%c152, %c0_88] : memref<216x512xbf16, #tpu.memory_space<vmem>>, vector<8x512xbf16>
    tpu.vector_store %arg8[%c152, %c0_88], %118 {strides = array<i32>} : memref<216x512xbf16, #tpu.memory_space<vmem>>, vector<8x512xbf16>,
    %c0_89 = arith.constant 0 : index
    %c0_90 = arith.constant 0 : index
    %c185 = arith.constant 185 : index
    %120 = vector.load %arg2[%c0_89, %c0_90, %c185] : memref<1x8x768xbf16, #tpu.memory_space<vmem>>, vector<1x8x512xbf16>
    %121 = vector.shape_cast %120 : vector<1x8x512xbf16> to vector<8x512xbf16>
    %c20 = arith.constant 20 : index
    %c0_91 = arith.constant 0 : index
    %122 = vector.load %arg6[%c20, %c0_91] : memref<27x512xbf16, #tpu.memory_space<vmem>>, vector<1x512xbf16>
    %123 = vector.broadcast %122 : vector<1x512xbf16> to vector<8x512xbf16>
    %124 = arith.mulf %121, %123 : vector<8x512xbf16>
    %c160 = arith.constant 160 : index
    %c0_92 = arith.constant 0 : index
    %125 = vector.load %arg8[%c160, %c0_92] : memref<216x512xbf16, #tpu.memory_space<vmem>>, vector<8x512xbf16>
    tpu.vector_store %arg8[%c160, %c0_92], %124 {strides = array<i32>} : memref<216x512xbf16, #tpu.memory_space<vmem>>, vector<8x512xbf16>,
    %c0_93 = arith.constant 0 : index
    %c0_94 = arith.constant 0 : index
    %c191 = arith.constant 191 : index
    %126 = vector.load %arg2[%c0_93, %c0_94, %c191] : memref<1x8x768xbf16, #tpu.memory_space<vmem>>, vector<1x8x512xbf16>
    %127 = vector.shape_cast %126 : vector<1x8x512xbf16> to vector<8x512xbf16>
    %c21 = arith.constant 21 : index
    %c0_95 = arith.constant 0 : index
    %128 = vector.load %arg6[%c21, %c0_95] : memref<27x512xbf16, #tpu.memory_space<vmem>>, vector<1x512xbf16>
    %129 = vector.broadcast %128 : vector<1x512xbf16> to vector<8x512xbf16>
    %130 = arith.mulf %127, %129 : vector<8x512xbf16>
    %c168 = arith.constant 168 : index
    %c0_96 = arith.constant 0 : index
    %131 = vector.load %arg8[%c168, %c0_96] : memref<216x512xbf16, #tpu.memory_space<vmem>>, vector<8x512xbf16>
    tpu.vector_store %arg8[%c168, %c0_96], %130 {strides = array<i32>} : memref<216x512xbf16, #tpu.memory_space<vmem>>, vector<8x512xbf16>,
    %c0_97 = arith.constant 0 : index
    %c0_98 = arith.constant 0 : index
    %c192 = arith.constant 192 : index
    %132 = vector.load %arg2[%c0_97, %c0_98, %c192] : memref<1x8x768xbf16, #tpu.memory_space<vmem>>, vector<1x8x512xbf16>
    %133 = vector.shape_cast %132 : vector<1x8x512xbf16> to vector<8x512xbf16>
    %c22 = arith.constant 22 : index
    %c0_99 = arith.constant 0 : index
    %134 = vector.load %arg6[%c22, %c0_99] : memref<27x512xbf16, #tpu.memory_space<vmem>>, vector<1x512xbf16>
    %135 = vector.broadcast %134 : vector<1x512xbf16> to vector<8x512xbf16>
    %136 = arith.mulf %133, %135 : vector<8x512xbf16>
    %c176 = arith.constant 176 : index
    %c0_100 = arith.constant 0 : index
    %137 = vector.load %arg8[%c176, %c0_100] : memref<216x512xbf16, #tpu.memory_space<vmem>>, vector<8x512xbf16>
    tpu.vector_store %arg8[%c176, %c0_100], %136 {strides = array<i32>} : memref<216x512xbf16, #tpu.memory_space<vmem>>, vector<8x512xbf16>,
    %c0_101 = arith.constant 0 : index
    %c0_102 = arith.constant 0 : index
    %c193 = arith.constant 193 : index
    %138 = vector.load %arg2[%c0_101, %c0_102, %c193] : memref<1x8x768xbf16, #tpu.memory_space<vmem>>, vector<1x8x512xbf16>
    %139 = vector.shape_cast %138 : vector<1x8x512xbf16> to vector<8x512xbf16>
    %c23 = arith.constant 23 : index
    %c0_103 = arith.constant 0 : index
    %140 = vector.load %arg6[%c23, %c0_103] : memref<27x512xbf16, #tpu.memory_space<vmem>>, vector<1x512xbf16>
    %141 = vector.broadcast %140 : vector<1x512xbf16> to vector<8x512xbf16>
    %142 = arith.mulf %139, %141 : vector<8x512xbf16>
    %c184_104 = arith.constant 184 : index
    %c0_105 = arith.constant 0 : index
    %143 = vector.load %arg8[%c184_104, %c0_105] : memref<216x512xbf16, #tpu.memory_space<vmem>>, vector<8x512xbf16>
    tpu.vector_store %arg8[%c184_104, %c0_105], %142 {strides = array<i32>} : memref<216x512xbf16, #tpu.memory_space<vmem>>, vector<8x512xbf16>,
    %c0_106 = arith.constant 0 : index
    %c0_107 = arith.constant 0 : index
    %c199 = arith.constant 199 : index
    %144 = vector.load %arg2[%c0_106, %c0_107, %c199] : memref<1x8x768xbf16, #tpu.memory_space<vmem>>, vector<1x8x512xbf16>
    %145 = vector.shape_cast %144 : vector<1x8x512xbf16> to vector<8x512xbf16>
    %c24_108 = arith.constant 24 : index
    %c0_109 = arith.constant 0 : index
    %146 = vector.load %arg6[%c24_108, %c0_109] : memref<27x512xbf16, #tpu.memory_space<vmem>>, vector<1x512xbf16>
    %147 = vector.broadcast %146 : vector<1x512xbf16> to vector<8x512xbf16>
    %148 = arith.mulf %145, %147 : vector<8x512xbf16>
    %c192_110 = arith.constant 192 : index
    %c0_111 = arith.constant 0 : index
    %149 = vector.load %arg8[%c192_110, %c0_111] : memref<216x512xbf16, #tpu.memory_space<vmem>>, vector<8x512xbf16>
    tpu.vector_store %arg8[%c192_110, %c0_111], %148 {strides = array<i32>} : memref<216x512xbf16, #tpu.memory_space<vmem>>, vector<8x512xbf16>,
    %c0_112 = arith.constant 0 : index
    %c0_113 = arith.constant 0 : index
    %c200 = arith.constant 200 : index
    %150 = vector.load %arg2[%c0_112, %c0_113, %c200] : memref<1x8x768xbf16, #tpu.memory_space<vmem>>, vector<1x8x512xbf16>
    %151 = vector.shape_cast %150 : vector<1x8x512xbf16> to vector<8x512xbf16>
    %c25 = arith.constant 25 : index
    %c0_114 = arith.constant 0 : index
    %152 = vector.load %arg6[%c25, %c0_114] : memref<27x512xbf16, #tpu.memory_space<vmem>>, vector<1x512xbf16>
    %153 = vector.broadcast %152 : vector<1x512xbf16> to vector<8x512xbf16>
    %154 = arith.mulf %151, %153 : vector<8x512xbf16>
    %c200_115 = arith.constant 200 : index
    %c0_116 = arith.constant 0 : index
    %155 = vector.load %arg8[%c200_115, %c0_116] : memref<216x512xbf16, #tpu.memory_space<vmem>>, vector<8x512xbf16>
    tpu.vector_store %arg8[%c200_115, %c0_116], %154 {strides = array<i32>} : memref<216x512xbf16, #tpu.memory_space<vmem>>, vector<8x512xbf16>,
    %c0_117 = arith.constant 0 : index
    %c0_118 = arith.constant 0 : index
    %c201 = arith.constant 201 : index
    %156 = vector.load %arg2[%c0_117, %c0_118, %c201] : memref<1x8x768xbf16, #tpu.memory_space<vmem>>, vector<1x8x512xbf16>
    %157 = vector.shape_cast %156 : vector<1x8x512xbf16> to vector<8x512xbf16>
    %c26 = arith.constant 26 : index
    %c0_119 = arith.constant 0 : index
    %158 = vector.load %arg6[%c26, %c0_119] : memref<27x512xbf16, #tpu.memory_space<vmem>>, vector<1x512xbf16>
    %159 = vector.broadcast %158 : vector<1x512xbf16> to vector<8x512xbf16>
    %160 = arith.mulf %157, %159 : vector<8x512xbf16>
    %c208 = arith.constant 208 : index
    %c0_120 = arith.constant 0 : index
    %161 = vector.load %arg8[%c208, %c0_120] : memref<216x512xbf16, #tpu.memory_space<vmem>>, vector<8x512xbf16>
    tpu.vector_store %arg8[%c208, %c0_120], %160 {strides = array<i32>} : memref<216x512xbf16, #tpu.memory_space<vmem>>, vector<8x512xbf16>,
    %c0_121 = arith.constant 0 : index
    %c0_122 = arith.constant 0 : index
    %c0_123 = arith.constant 0 : index
    %162 = vector.load %arg3[%c0_121, %c0_122, %c0_123] : memref<1x8x216xbf16, #tpu.memory_space<vmem>>, vector<1x8x216xbf16>
    %163 = vector.shape_cast %162 : vector<1x8x216xbf16> to vector<8x216xbf16>
    %c0_124 = arith.constant 0 : index
    %c0_125 = arith.constant 0 : index
    %164 = vector.load %arg8[%c0_124, %c0_125] : memref<216x512xbf16, #tpu.memory_space<vmem>>, vector<216x512xbf16>
    %cst = arith.constant dense<0.000000e+00> : vector<8x512xf32>
    %165 = tpu.matmul %163, %164, %cst {dimension_numbers = #tpu.dot_dimension_numbers<[1], [0], [0], [1], [0, 0, 1, 1], [], []>} : vector<8x216xbf16>, vector<216x512xbf16>, vector<8x512xf32> -> vector<8x512xf32>
    %c0_126 = arith.constant 0 : index
    %c0_127 = arith.constant 0 : index
    %c0_128 = arith.constant 0 : index
    %166 = vector.load %arg4[%c0_126, %c0_127, %c0_128] : memref<1x8x1xf32, #tpu.memory_space<vmem>>, vector<1x8x1xf32>
    %167 = vector.shape_cast %166 : vector<1x8x1xf32> to vector<8x1xf32>
    %168 = vector.broadcast %167 : vector<8x1xf32> to vector<8x512xf32>
    %169 = arith.mulf %165, %168 : vector<8x512xf32>
    %c0_129 = arith.constant 0 : index
    %c0_130 = arith.constant 0 : index
    %c0_131 = arith.constant 0 : index
    %170 = vector.load %arg5[%c0_129, %c0_130, %c0_131] : memref<1x8x1xf32, #tpu.memory_space<vmem>>, vector<1x8x1xf32>
    %171 = vector.shape_cast %170 : vector<1x8x1xf32> to vector<8x1xf32>
    %172 = vector.broadcast %171 : vector<8x1xf32> to vector<8x512xf32>
    %173 = arith.addf %169, %172 : vector<8x512xf32>
    %cst_132 = arith.constant 0.000000e+00 : f32
    %174 = vector.broadcast %cst_132 : f32 to vector<8x512xf32>
    %175 = arith.maximumf %173, %174 : vector<8x512xf32>
    %c0_133 = arith.constant 0 : index
    %c0_134 = arith.constant 0 : index
    %c0_135 = arith.constant 0 : index
    %176 = vector.load %arg7[%c0_133, %c0_134, %c0_135] : memref<1x8x512xf32, #tpu.memory_space<vmem>>, vector<1x8x512xf32>
    %177 = vector.shape_cast %176 : vector<1x8x512xf32> to vector<8x512xf32>
    %178 = vector.shape_cast %175 : vector<8x512xf32> to vector<1x8x512xf32>
    tpu.vector_store %arg7[%c0_133, %c0_134, %c0_135], %178 {strides = array<i32>} : memref<1x8x512xf32, #tpu.memory_space<vmem>>, vector<1x8x512xf32>,
    return
  }
  func.func @transform_0(%arg0: i32, %arg1: i32) -> (i32, i32, i32) {
    %c2_i32 = arith.constant 2 : i32
    %0 = arith.muli %arg1, %c2_i32 : i32
    %1 = arith.addi %0, %arg0 : i32
    %c0_i32 = arith.constant 0 : i32
    %c0_i32_0 = arith.constant 0 : i32
    %c0_i32_1 = arith.constant 0 : i32
    return %1, %c0_i32, %c0_i32_0 : i32, i32, i32
  }
  func.func @transform_1(%arg0: i32, %arg1: i32) -> (i32, i32, i32) {
    %c0_i32 = arith.constant 0 : i32
    %c0_i32_0 = arith.constant 0 : i32
    %c0_i32_1 = arith.constant 0 : i32
    return %arg0, %c0_i32, %c0_i32_0 : i32, i32, i32
  }
  func.func @transform_2(%arg0: i32, %arg1: i32) -> (i32, i32, i32) {
    %c0_i32 = arith.constant 0 : i32
    %c0_i32_0 = arith.constant 0 : i32
    %c0_i32_1 = arith.constant 0 : i32
    return %arg0, %c0_i32, %c0_i32_0 : i32, i32, i32
  }
  func.func @transform_3(%arg0: i32, %arg1: i32) -> (i32, i32, i32) {
    %c0_i32 = arith.constant 0 : i32
    %c0_i32_0 = arith.constant 0 : i32
    %c0_i32_1 = arith.constant 0 : i32
    return %arg0, %c0_i32, %c0_i32_0 : i32, i32, i32
  }
  func.func @transform_4(%arg0: i32, %arg1: i32) -> (i32, i32) {
    %c0_i32 = arith.constant 0 : i32
    %c0_i32_0 = arith.constant 0 : i32
    %c0_i32_1 = arith.constant 0 : i32
    return %c0_i32, %c0_i32_0 : i32, i32
  }
  func.func @transform_5(%arg0: i32, %arg1: i32) -> (i32, i32, i32) {
    %c2_i32 = arith.constant 2 : i32
    %0 = arith.muli %arg1, %c2_i32 : i32
    %1 = arith.addi %0, %arg0 : i32
    %c0_i32 = arith.constant 0 : i32
    %c0_i32_0 = arith.constant 0 : i32
    %c0_i32_1 = arith.constant 0 : i32
    return %1, %c0_i32, %c0_i32_0 : i32, i32, i32
  }
}

</mosaic_0001>

<bundles_post_ra>
// kernel: tpu_custom_call.1
= control target key start
LH: loop header
LB: loop body
LE: loop exit
PB: predicated region body
PF: predicated region fallthrough
CT: control target
= control target key end

     0   :  { %s5401_s0 = inlined_call_operand.hbm [shape: bf16[4,8,768], index: 0, kind: input, shape index: {}]   ;;  %s5402_s1 = inlined_call_operand.vmem [shape: bf16[2,8,216], index: 1, kind: input, shape index: {}]   ;;  %s5403_s2 = inlined_call_operand.vmem [shape: f32[2,8,1], index: 2, kind: input, shape index: {}]   ;;  %s5404_s3 = inlined_call_operand.vmem [shape: f32[2,8,1], index: 3, kind: input, shape index: {}]   ;;  %s5405_s4 = inlined_call_operand.hbm [shape: bf16[27,512], index: 4, kind: input, shape index: {}]   ;;  %s5406_s5 = inlined_call_operand.hbm [shape: f32[4,8,512], index: 5, kind: output, shape index: {}]  }
   0x1   :  { %5418 = sst [smem:[#allocation15_spill]] %s5405_s4 }
   0x2   :  { %10 = vsyncpa [#allocation4], 0 }
   0x3   :  { %12 = vsyncpa [#allocation4 + $0x1], 0 }
   0x4   :  { %13 = vsyncpa [#allocation7], 0 }
   0x5   :  { %14 = vsyncpa [#allocation5], 0 }
   0x6   :  { %16 = vsyncpa [#allocation5 + $0x1], 0  ;;  %s4272_s18 = smov 0   ;;  %s4274_s19 = smov 0  }
   0x7   :  { %s4276_s20 = smov 0   ;;  %s4278_s21 = smov 0  }
   0x8   :  { %s4280_s22 = smov 0   ;;  %s4282_s23 = smov 0  }
   0x9   :  { %s4284_s24 = smov 0   ;;  %s4286_s25 = smov 0  }
   0xa LB: > { %5419 = sst [smem:[#allocation12_spill]] %s4215_s24  ;;  %s3392_s26 = sadd.s32 4294967295, %s4219_s25   ;;  %s4219_s25 = sphi %s4286_s25, %s22_s25   ;;  %s4215_s24 = sphi %s4284_s24, %s5438_s24   ;;  %s4211_s23 = sphi %s4282_s23, %s5443_s23   ;;  %s4207_s22 = sphi %s4280_s22, %s5436_s22   ;;  %s4203_s21 = sphi %s4278_s21, %s5442_s21   ;;  %s4199_s20 = sphi %s4276_s20, %s5441_s20   ;;  %s4195_s19 = sphi %s4274_s19, %s5440_s19   ;;  %s4191_s18 = sphi %s4272_s18, %s5439_s18  }
   0xb   : > { %p3398_p0 = scmp.ge.s32.totalorder %s4219_s25, 1  ;;  %p4316_p1 = scmp.eq.s32.totalorder %s3392_s26, 0 }
   0xc   : > { %p198_p2 = scmp.lt.s32.totalorder %s4219_s25, 5  ;;  %s5421_s4 = sld [smem:[#allocation15_spill]] }
   0xd   : > { %s4221_s7 = smov [#allocation6]   ;;  %s4222_s9 = smov 256  }
   0xe   : > { %p4324_p3 = pnand %p3398_p0, %p198_p2  ;;  %s211_s8 = sshll.u32 %s4221_s7, 4  ;;  %s212_s8 = int_to_ptr.vmem [resolvable:$true] %s211_s8 }
   0xf   : > { %s4223_s10 = smov 16   ;;  %s3393_s11 = sadd.s32 4294967294, %s4219_s25  }
  0x10   : > { %p3693_p4 = pneg %p4324_p3  ;;  %s31_s12 = sadd.s32 1, %s4211_s23 }
  0x11   : > { %s34_s13 = sadd.s32 1, %s4215_s24  ;;  %p32_p6 = scmp.ge.s32.totalorder %s31_s12, 2 }
  0x12   : > { %s209_s30 = sshll.u32 %s5421_s4, 4  ;;  %p3694_p5 = pnand %p3693_p4, %p4316_p1  ;;  %s210_s30 = int_to_ptr.hbm [resolvable:$true] %s209_s30 }
  0x13   : > { %s3394_s14 = sshll.u32 %s4211_s23, 1  ;;  %s45_s16 = sadd.s32 1, %s4199_s20 }
  0x14   : > { %3696 = dma.hbm_to_vmem [thread:$0]  (!%p3694_p5), %s210_s30, 1024, %s212_s8, [#allocation7], %s4222_s9, %s4222_s9, %s4223_s10  }
  0x15   : > { %s39_s15 = sadd.s32 %s4215_s24, %s3394_s14  ;;  %s5445_s12 = smov (%p32_p6, %s31_s12), 0 }
  0x16   : > { %5423 = sst [smem:[#allocation13_spill]] %s5445_s12  ;;  %s5447_s13 = smov (!%p32_p6, %s34_s13), %s4215_s24 }
  0x17   : > { %s3395_s17 = sshll.u32 %s5445_s12, 1  ;;  %p52_p7 = scmp.ne.s32.totalorder %s4199_s20, %s4195_s19 }
  0x18   : > { %p36_p8 = scmp.ge.s32.totalorder %s5447_s13, 2  ;;  %p53_p9 = scmp.eq.s32.totalorder %s4219_s25, 0 }
  0x19   : > { %p58_p10 = scmp.ne.s32.totalorder %s4195_s19, %s4191_s18  ;;  %p185_p11 = scmp.eq.s32.totalorder %s3392_s26, 3 }
  0x1a   : > { %s5449_s13 = smov (%p36_p8, %s5447_s13), 0  ;;  %p4351_p12 = por %p53_p9, %p52_p7 }
  0x1b   : > { %5424 = sst [smem:[#allocation14_spill]] %s5449_s13  ;;  %p4357_p13 = por %p4316_p1, %p58_p10 }
  0x1c   : > { %s41_s30 = sadd.s32 %s3395_s17, %s5449_s13  ;;  %p4362_p0 = por %p185_p11, %p52_p7 }
  0x1d   : > { %s42_s8 = ssub.s32 %s39_s15, %s41_s30  ;;  %p191_p2 = scmp.eq.s32.totalorder %s3393_s11, 3 }
  0x1e   : > { %p43_p4 = scmp.eq.s32.totalorder %s42_s8, 0  ;;  %p3706_p5 = scmp.lt.s32.totalorder %s4219_s25, 4 }
  0x1f   : > { %p4367_p6 = por %p191_p2, %p58_p10  ;;  %s225_s9 = sand.u32 1, %s4199_s20  }
  0x20   : > { %s4373_s10 = scalar_select %p43_p4, %s4199_s20, %s45_s16  }
  0x21   : > { %s3682_s14 = smul.u32 24, %s225_s9  ;;  %p3698_p8 = pnand %p3706_p5, %p4351_p12 }
  0x22   : > { %s3683_s4 = smul.u32 24, %s39_s15  ;;  %s226_s8 = scalar_lea.sflag [#allocation4], %s225_s9 }
  0x23   : > { %s229_s24 = scalar_lea.vmem [#allocation3], %s3682_s14  ;;  %271 = sbr.rel (%p4324_p3) target bundleno = 1053 (0x41d), region = 40 }
  0x24   : > { %s236_s12 = scalar_lea.hbm %s5401_s0, %s3683_s4  ;;  %s240_s30 = sshll.u32 %s229_s24, 4  ;;  %s241_s30 = int_to_ptr.vmem [resolvable:$true] %s240_s30 }
  0x25   : > { %s238_s11 = sshll.u32 %s236_s12, 4  ;;  %s4383_s16 = sand.u32 (!%p4324_p3), 1, %s4195_s19   ;;  %s239_s11 = int_to_ptr.hbm [resolvable:$true] %s238_s11 }
  0x26   : > { %3700 = dma.hbm_to_vmem [thread:$0]  (!%p3698_p8), %s239_s11, 384, %s241_s30, %s226_s8  }
  0x27   : > { %s3684_s15 = smul.u32 (!%p4324_p3), 24, %s4383_s16  ;;  %s274_s28 = scalar_lea.sflag (!%p4324_p3), [#allocation4], %s4383_s16 }
  0x29   : > { %s4387_s13 = scalar_lea.vmem [#allocation3], %s3684_s15 }
  0x2a   : > { %4178 = dma.done.wait (%p4357_p13), %s274_s28, 384  }
  0x2b   : > { %4180 = vsyncadd (%p4357_p13), %s274_s28, 4294966912 }
  0x2c   : > { %4182 = dma.done.wait (%p4316_p1), [#allocation7], 1024  }
  0x2d   : > { %4184 = vsyncadd (%p4316_p1), [#allocation7], 4294966272  ;;  %v529_v0 = vld [vmem:[#allocation6] sm:$0x22]  ;;  %v344_v1 = vld [vmem:[#allocation6] sm:$0x11] }
  0x2e   : > { %v620_v2 = vld [vmem:[#allocation6 + $0x8] sm:$0x22]  ;;  %v533_v3 = vunpack.c.l.b16 %v529_v0  ;;  %v534_v4 = vunpack.c.h.b16 %v529_v0  ;;  %v348_v5 = vunpack.c.l.b16 %v344_v1  ;;  %v349_v6 = vunpack.c.h.b16 %v344_v1  ;;  %v345_v7 = vld [vmem:[#allocation6 + $0x8] sm:$0x11]  ;;  %v803_v41 = vld [vmem:[#allocation6] sm:$0x44] }
  0x2f   : > { %v625_v8 = vunpack.c.l.b16 %v620_v2  ;;  %v626_v9 = vunpack.c.h.b16 %v620_v2  ;;  %v350_v10 = vunpack.c.l.b16 %v345_v7  ;;  %v351_v11 = vunpack.c.h.b16 %v345_v7  ;;  %v530_v36 = vld [vmem:[#allocation6 + $0x8] sm:$0x22]  ;;  %v436_v46 = vld [vmem:[#allocation6 + $0x8] sm:$0x11]  ;;  %v898_v51 = vld [vmem:[#allocation6 + $0x8] sm:$0x88] }
  0x30   : > { %v537_v12 = vpack.c.b16 %v533_v3, %v533_v3  ;;  %v538_v13 = vpack.c.b16 %v534_v4, %v534_v4  ;;  %v352_v14 = vpack.c.b16 %v348_v5, %v348_v5  ;;  %v353_v15 = vpack.c.b16 %v349_v6, %v349_v6  ;;  %s4224_s4 = smov 57   ;;  %s4225_s24 = smov 55  }
  0x31   : > { %v629_v16 = vpack.c.b16 %v625_v8, %v625_v8  ;;  %v630_v17 = vpack.c.b16 %v626_v9, %v626_v9  ;;  %v354_v18 = vpack.c.b16 %v350_v10, %v350_v10  ;;  %v355_v19 = vpack.c.b16 %v351_v11, %v351_v11  ;;  %s4226_s27 = smov 63   ;;  %s4227_s6 = smov 65  }
  0x32   : > { %v542_v20 = vpack.i.b16 %v537_v12, %v537_v12  ;;  %v546_v21 = vpack.i.b16 %v538_v13, %v538_v13  ;;  %v357_v22 = vpack.i.b16 %v352_v14, %v352_v14  ;;  %v361_v23 = vpack.i.b16 %v353_v15, %v353_v15  ;;  %s4228_s12 = smov 56   ;;  %s4229_s29 = smov 71  }
  0x33   : > { %v642_v24 = vshrl.u32 %v629_v16, 16  ;;  %v647_v25 = vshrl.u32 %v630_v17, 16  ;;  %v365_v26 = vpack.i.b16 %v354_v18, %v354_v18  ;;  %v369_v27 = vpack.i.b16 %v355_v19, %v355_v19  ;;  %v435_v16 = vld [vmem:[#allocation6] sm:$0x11]  ;;  %s4230_s9 = smov 64   ;;  %s4231_s14 = smov 73  }
  0x34   : > { %v544_v28 = vperm.slane %v542_v20, 1  ;;  %v548_v29 = vperm.slane %v546_v21, 1  ;;  %v359_v30 = vperm.slane %v357_v22, 0  ;;  %v363_v31 = vperm.slane %v361_v23, 0  ;;  %s4232_s17 = smov 72   ;;  %s5412_s30 = smov 119  }
  0x35   : > { %v643_v32 = vpack.i.b16 %v642_v24, %v642_v24  ;;  %v648_v33 = vpack.i.b16 %v647_v25, %v647_v25  ;;  %v367_v34 = vperm.slane %v365_v26, 0  ;;  %v371_v35 = vperm.slane %v369_v27, 0  ;;  %s5410_s11 = smov 120   ;;  %s4235_s8 = smov 8  }
  0x36   : > { %v562_v37 = vunpack.c.l.bf16 %v544_v28  ;;  %v563_v38 = vunpack.c.l.bf16 %v548_v29  ;;  %v377_v39 = vunpack.c.l.bf16 %v359_v30  ;;  %v378_v40 = vunpack.c.l.bf16 %v363_v31  ;;  %v619_v29 = vld [vmem:[#allocation6] sm:$0x22]  ;;  %s4236_s15 = smov 9   ;;  %s5415_s28 = smov 121  }
  0x37   : > { %v645_v42 = vperm.slane %v643_v32, 1  ;;  %v650_v43 = vperm.slane %v648_v33, 1  ;;  %v379_v44 = vunpack.c.l.bf16 %v367_v34  ;;  %v380_v45 = vunpack.c.l.bf16 %v371_v35  ;;  %v713_v34 = vld [vmem:[#allocation6] sm:$0x44]  ;;  %p325_p1 = scmp.lt.s32.totalorder %s4207_s22, 1 }
  0x38   : > { %v3804_v47 = vpack.i.bf16 %v563_v38, %v562_v37  ;;  %v3794_v48 = vpack.i.bf16 %v378_v40, %v377_v39  ;;  %v535_v49 = vunpack.c.l.b16 %v530_v36  ;;  %v536_v50 = vunpack.c.h.b16 %v530_v36 }
  0x39   : > { %v658_v52 = vunpack.c.l.bf16 %v645_v42  ;;  %v659_v53 = vunpack.c.l.bf16 %v650_v43  ;;  %v3799_v54 = vpack.i.bf16 %v380_v45, %v379_v44  ;;  %v807_v55 = vunpack.c.l.b16 %v803_v41 }
  0x3a   : > { %3805 = vrot.lane.b32.xlu1 %v3804_v47, %s4224_s4  ;;  %3795 = vrot.lane.b32.xlu0 %v3794_v48, %s4225_s24  ;;  %v539_v56 = vpack.c.b16 %v535_v49, %v535_v49  ;;  %v540_v57 = vpack.c.b16 %v536_v50, %v536_v50  ;;  %v808_v58 = vunpack.c.h.b16 %v803_v41  ;;  %v441_v59 = vunpack.c.l.b16 %v436_v46  ;;  %v714_v47 = vld [vmem:[#allocation6 + $0x8] sm:$0x44] }
  0x3b   : > { %v3839_v60 = vpack.i.bf16 %v659_v53, %v658_v52  ;;  %v811_v61 = vpack.c.b16 %v807_v55, %v807_v55  ;;  %v442_v62 = vunpack.c.h.b16 %v436_v46  ;;  %v903_v63 = vunpack.c.l.b16 %v898_v51 }
  0x3c   : > { %v550_v0 = vpack.i.b16 %v539_v56, %v539_v56  ;;  %v554_v1 = vpack.i.b16 %v540_v57, %v540_v57  ;;  %v812_v2 = vpack.c.b16 %v808_v58, %v808_v58  ;;  %v445_v3 = vpack.c.b16 %v441_v59, %v441_v59 }
  0x3d   : > { %v816_v4 = vshrl.u32 %v811_v61, 16  ;;  %v446_v5 = vpack.c.b16 %v442_v62, %v442_v62  ;;  %v904_v6 = vunpack.c.h.b16 %v898_v51  ;;  %v907_v7 = vpack.c.b16 %v903_v63, %v903_v63 }
  0x3e   : > { %v552_v8 = vperm.slane %v550_v0, 1  ;;  %v556_v9 = vperm.slane %v554_v1, 1  ;;  %v821_v10 = vshrl.u32 %v812_v2, 16  ;;  %v458_v11 = vshrl.u32 %v445_v3, 16 }
  0x3f   : > { %v817_v12 = vpack.i.b16 %v816_v4, %v816_v4  ;;  %v463_v13 = vshrl.u32 %v446_v5, 16  ;;  %v908_v14 = vpack.c.b16 %v904_v6, %v904_v6  ;;  %v918_v15 = vpack.i.b16 %v907_v7, %v907_v7  ;;  %v804_v4 = vld [vmem:[#allocation6 + $0x8] sm:$0x44] }
  0x40   : > { %v564_v17 = vunpack.c.l.bf16 %v552_v8  ;;  %v565_v18 = vunpack.c.l.bf16 %v556_v9  ;;  %v822_v19 = vpack.i.b16 %v821_v10, %v821_v10  ;;  %v459_v20 = vpack.i.b16 %v458_v11, %v458_v11 }
  0x41   : > { %v819_v21 = vperm.slane %v817_v12, 2  ;;  %v464_v22 = vpack.i.b16 %v463_v13, %v463_v13  ;;  %v920_v23 = vperm.slane %v918_v15, 3  ;;  %v922_v24 = vpack.i.b16 %v908_v14, %v908_v14 }
  0x42   : > { %3840 = vrot.lane.b32.xlu1 %v3839_v60, %s4226_s27  ;;  %3800 = vrot.lane.b32.xlu0 %v3799_v54, %s4225_s24  ;;  %v3809_v25 = vpack.i.bf16 %v565_v18, %v564_v17  ;;  %v824_v26 = vperm.slane %v822_v19, 2  ;;  %v461_v27 = vperm.slane %v459_v20, 0  ;;  %v439_v28 = vunpack.c.l.b16 %v435_v16  ;;  %v897_v17 = vld [vmem:[#allocation6] sm:$0x88] }
  0x43   : > { %v840_v30 = vunpack.c.l.bf16 %v819_v21  ;;  %v466_v31 = vperm.slane %v464_v22, 0  ;;  %v924_v32 = vperm.slane %v922_v24, 3  ;;  %v932_v33 = vunpack.c.l.bf16 %v920_v23 }
  0x44   : > { %3810 = vrot.lane.b32.xlu2 %v3809_v25, %s4224_s4  ;;  %v841_v35 = vunpack.c.l.bf16 %v824_v26  ;;  %v474_v36 = vunpack.c.l.bf16 %v461_v27  ;;  %v440_v37 = vunpack.c.h.b16 %v435_v16  ;;  %v443_v38 = vpack.c.b16 %v439_v28, %v439_v28  ;;  %v987_v26 = vld [vmem:[#allocation6] sm:$0x88] }
  0x45   : > { %v475_v39 = vunpack.c.l.bf16 %v466_v31  ;;  %v933_v40 = vunpack.c.l.bf16 %v924_v32  ;;  %v623_v41 = vunpack.c.l.b16 %v619_v29  ;;  %v624_v42 = vunpack.c.h.b16 %v619_v29  ;;  %v988_v31 = vld [vmem:[#allocation6 + $0x8] sm:$0x88] }
  0x46   : > { %v3844_v43 = vpack.i.bf16 %v841_v35, %v840_v30  ;;  %v444_v44 = vpack.c.b16 %v440_v37, %v440_v37  ;;  %v448_v45 = vshrl.u32 %v443_v38, 16  ;;  %v717_v46 = vunpack.c.l.b16 %v713_v34 }
  0x47   : > { %v3819_v48 = vpack.i.bf16 %v475_v39, %v474_v36  ;;  %v3859_v49 = vpack.i.bf16 %v933_v40, %v932_v33  ;;  %v627_v50 = vpack.c.b16 %v623_v41, %v623_v41  ;;  %v628_v51 = vpack.c.b16 %v624_v42, %v624_v42 }
  0x48   : > { %v449_v52 = vpack.i.b16 %v448_v45, %v448_v45  ;;  %v453_v53 = vshrl.u32 %v444_v44, 16  ;;  %v718_v54 = vunpack.c.h.b16 %v713_v34  ;;  %v721_v55 = vpack.c.b16 %v717_v46, %v717_v46 }
  0x49   : > { %v632_v56 = vshrl.u32 %v627_v50, 16  ;;  %v637_v57 = vshrl.u32 %v628_v51, 16  ;;  %v719_v58 = vunpack.c.l.b16 %v714_v47  ;;  %v720_v59 = vunpack.c.h.b16 %v714_v47 }
  0x4a   : > { %3845 = vrot.lane.b32.xlu1 %v3844_v43, %s4227_s6  ;;  %3820 = vrot.lane.b32.xlu0 %v3819_v48, %s4228_s12  ;;  %v451_v60 = vperm.slane %v449_v52, 0  ;;  %v454_v61 = vpack.i.b16 %v453_v53, %v453_v53  ;;  %v722_v62 = vpack.c.b16 %v718_v54, %v718_v54  ;;  %v726_v63 = vpack.i.b16 %v721_v55, %v721_v55 }
  0x4b   : > { %v633_v0 = vpack.i.b16 %v632_v56, %v632_v56  ;;  %v638_v1 = vpack.i.b16 %v637_v57, %v637_v57  ;;  %v723_v2 = vpack.c.b16 %v719_v58, %v719_v58  ;;  %v724_v3 = vpack.c.b16 %v720_v59, %v720_v59  ;;  %v1081_v56 = vld [vmem:[#allocation6 + $0x10] sm:$0x11] }
  0x4c   : > { %v456_v5 = vperm.slane %v454_v61, 0  ;;  %v472_v6 = vunpack.c.l.bf16 %v451_v60  ;;  %v728_v7 = vperm.slane %v726_v63, 2  ;;  %v730_v8 = vpack.i.b16 %v722_v62, %v722_v62 }
  0x4d   : > { %v635_v9 = vperm.slane %v633_v0, 1  ;;  %v640_v10 = vperm.slane %v638_v1, 1  ;;  %v734_v11 = vpack.i.b16 %v723_v2, %v723_v2  ;;  %v738_v12 = vpack.i.b16 %v724_v3, %v724_v3 }
  0x4e   : > { %v473_v13 = vunpack.c.l.bf16 %v456_v5  ;;  %v732_v14 = vperm.slane %v730_v8, 2  ;;  %v746_v15 = vunpack.c.l.bf16 %v728_v7  ;;  %v809_v16 = vunpack.c.l.b16 %v804_v4 }
  0x4f   : > { %v656_v18 = vunpack.c.l.bf16 %v635_v9  ;;  %v657_v19 = vunpack.c.l.bf16 %v640_v10  ;;  %v736_v20 = vperm.slane %v734_v11, 2  ;;  %v740_v21 = vperm.slane %v738_v12, 2  ;;  %v1082_v9 = vld [vmem:[#allocation6 + $0x18] sm:$0x11]  ;;  %v1171_v11 = vld [vmem:[#allocation6 + $0x10] sm:$0x11] }
  0x50   : > { %v3814_v22 = vpack.i.bf16 %v473_v13, %v472_v6  ;;  %v747_v23 = vunpack.c.l.bf16 %v732_v14  ;;  %v810_v24 = vunpack.c.h.b16 %v804_v4  ;;  %v813_v25 = vpack.c.b16 %v809_v16, %v809_v16 }
  0x51   : > { %v3824_v27 = vpack.i.bf16 %v657_v19, %v656_v18  ;;  %v748_v28 = vunpack.c.l.bf16 %v736_v20  ;;  %v749_v29 = vunpack.c.l.bf16 %v740_v21  ;;  %v901_v30 = vunpack.c.l.b16 %v897_v17  ;;  %v1266_v20 = vld [vmem:[#allocation6 + $0x18] sm:$0x22] }
  0x52   : > { %3860 = vrot.lane.b32.xlu1 %v3859_v49, %s4229_s29  ;;  %3815 = vrot.lane.b32.xlu2 %v3814_v22, %s4228_s12  ;;  %v3829_v32 = vpack.i.bf16 %v747_v23, %v746_v15  ;;  %v814_v33 = vpack.c.b16 %v810_v24, %v810_v24  ;;  %v826_v34 = vshrl.u32 %v813_v25, 16  ;;  %v902_v35 = vunpack.c.h.b16 %v897_v17 }
  0x53   : > { %3825 = vrot.lane.b32.xlu0 %v3824_v27, %s4226_s27  ;;  %v3834_v36 = vpack.i.bf16 %v749_v29, %v748_v28  ;;  %v905_v37 = vpack.c.b16 %v901_v30, %v901_v30  ;;  %v991_v38 = vunpack.c.l.b16 %v987_v26  ;;  %v992_v39 = vunpack.c.h.b16 %v987_v26 }
  0x54   : > { %v827_v40 = vpack.i.b16 %v826_v34, %v826_v34  ;;  %v831_v41 = vshrl.u32 %v814_v33, 16  ;;  %v906_v42 = vpack.c.b16 %v902_v35, %v902_v35  ;;  %v993_v43 = vunpack.c.l.b16 %v988_v31  ;;  %v1172_v33 = vld [vmem:[#allocation6 + $0x18] sm:$0x11] }
  0x55   : > { %v910_v44 = vpack.i.b16 %v905_v37, %v905_v37  ;;  %v995_v45 = vpack.c.b16 %v991_v38, %v991_v38  ;;  %v996_v46 = vpack.c.b16 %v992_v39, %v992_v39  ;;  %v994_v47 = vunpack.c.h.b16 %v988_v31 }
  0x56   : > { %v829_v48 = vperm.slane %v827_v40, 2  ;;  %v832_v49 = vpack.i.b16 %v831_v41, %v831_v41  ;;  %v914_v50 = vpack.i.b16 %v906_v42, %v906_v42  ;;  %v997_v51 = vpack.c.b16 %v993_v43, %v993_v43 }
  0x57   : > { %v912_v52 = vperm.slane %v910_v44, 3  ;;  %v1000_v53 = vshrl.u32 %v995_v45, 16  ;;  %v1005_v54 = vshrl.u32 %v996_v46, 16  ;;  %v998_v55 = vpack.c.b16 %v994_v47, %v994_v47 }
  0x58   : > { %v834_v57 = vperm.slane %v832_v49, 2  ;;  %v842_v58 = vunpack.c.l.bf16 %v829_v48  ;;  %v916_v59 = vperm.slane %v914_v50, 3  ;;  %v1010_v60 = vshrl.u32 %v997_v51, 16  ;;  %v1265_v48 = vld [vmem:[#allocation6 + $0x10] sm:$0x22] }
  0x59   : > { %v930_v61 = vunpack.c.l.bf16 %v912_v52  ;;  %v1001_v62 = vpack.i.b16 %v1000_v53, %v1000_v53  ;;  %v1006_v63 = vpack.i.b16 %v1005_v54, %v1005_v54  ;;  %v1015_v0 = vshrl.u32 %v998_v55, 16 }
  0x5a   : > { %3830 = vrot.lane.b32.xlu2 %v3829_v32, %s4230_s9  ;;  %v843_v1 = vunpack.c.l.bf16 %v834_v57  ;;  %v931_v2 = vunpack.c.l.bf16 %v916_v59  ;;  %v1011_v3 = vpack.i.b16 %v1010_v60, %v1010_v60  ;;  %v1085_v4 = vunpack.c.l.b16 %v1081_v56 }
  0x5b   : > { %3835 = vrot.lane.b32.xlu0 %v3834_v36, %s4230_s9  ;;  %v1003_v5 = vperm.slane %v1001_v62, 3  ;;  %v1008_v6 = vperm.slane %v1006_v63, 3  ;;  %v1016_v7 = vpack.i.b16 %v1015_v0, %v1015_v0  ;;  %v1086_v8 = vunpack.c.h.b16 %v1081_v56 }
  0x5c   : > { %v1089_v10 = vpack.c.b16 %v1085_v4, %v1085_v4  ;;  %v3849_v12 = vpack.i.bf16 %v843_v1, %v842_v58  ;;  %v3854_v13 = vpack.i.bf16 %v931_v2, %v930_v61  ;;  %v1013_v14 = vperm.slane %v1011_v3, 3 }
  0x5d   : > { %v1090_v15 = vpack.c.b16 %v1086_v8, %v1086_v8  ;;  %v1024_v16 = vunpack.c.l.bf16 %v1003_v5  ;;  %v1087_v18 = vunpack.c.l.b16 %v1082_v9  ;;  %v1088_v19 = vunpack.c.h.b16 %v1082_v9 }
  0x5e   : > { %v1094_v17 = vpack.i.b16 %v1089_v10, %v1089_v10  ;;  %v1025_v21 = vunpack.c.l.bf16 %v1008_v6  ;;  %v1018_v22 = vperm.slane %v1016_v7, 3  ;;  %v1175_v24 = vunpack.c.l.b16 %v1171_v11 }
  0x5f   : > { %v1098_v23 = vpack.i.b16 %v1090_v15, %v1090_v15  ;;  %v1091_v26 = vpack.c.b16 %v1087_v18, %v1087_v18  ;;  %v1092_v27 = vpack.c.b16 %v1088_v19, %v1088_v19  ;;  %v1176_v28 = vunpack.c.h.b16 %v1171_v11 }
  0x60   : > { %v1096_v25 = vperm.slane %v1094_v17, 0  ;;  %v1026_v29 = vunpack.c.l.bf16 %v1013_v14  ;;  %v1179_v31 = vpack.c.b16 %v1175_v24, %v1175_v24  ;;  %v1271_v32 = vunpack.c.l.b16 %v1266_v20 }
  0x61   : > { %v1100_v30 = vperm.slane %v1098_v23, 0  ;;  %v1102_v35 = vpack.i.b16 %v1091_v26, %v1091_v26  ;;  %v1106_v36 = vpack.i.b16 %v1092_v27, %v1092_v27  ;;  %v1180_v37 = vpack.c.b16 %v1176_v28, %v1176_v28 }
  0x62   : > { %3850 = vrot.lane.b32.xlu2 %v3849_v12, %s4227_s6  ;;  %v1114_v34 = vunpack.c.l.bf16 %v1096_v25  ;;  %v1027_v38 = vunpack.c.l.bf16 %v1018_v22  ;;  %v1184_v40 = vshrl.u32 %v1179_v31, 16  ;;  %v1272_v41 = vunpack.c.h.b16 %v1266_v20 }
  0x63   : > { %3855 = vrot.lane.b32.xlu0 %v3854_v13, %s4229_s29  ;;  %v1115_v39 = vunpack.c.l.bf16 %v1100_v30  ;;  %v1189_v42 = vshrl.u32 %v1180_v37, 16  ;;  %v1177_v43 = vunpack.c.l.b16 %v1172_v33  ;;  %v1104_v45 = vperm.slane %v1102_v35, 0 }
  0x64   : > { %v1185_v46 = vpack.i.b16 %v1184_v40, %v1184_v40  ;;  %v1275_v47 = vpack.c.b16 %v1271_v32, %v1271_v32  ;;  %v3864_v49 = vpack.i.bf16 %v1025_v21, %v1024_v16  ;;  %v1108_v50 = vperm.slane %v1106_v36, 0  ;;  %v343_v32 = vld [vmem:[%s4387_s13 + $0x10] sm:$0xf] }
  0x65   : > { %v3874_v44 = vpack.i.bf16 %v1115_v39, %v1114_v34  ;;  %v1190_v51 = vpack.i.b16 %v1189_v42, %v1189_v42  ;;  %v1178_v52 = vunpack.c.h.b16 %v1172_v33  ;;  %v3869_v53 = vpack.i.bf16 %v1027_v38, %v1026_v29  ;;  %v528_v36 = vld [vmem:[%s4387_s13 + $0x10] sm:$0xf] }
  0x66   : > { %v1187_v54 = vperm.slane %v1185_v46, 0  ;;  %v1276_v55 = vpack.c.b16 %v1272_v41, %v1272_v41  ;;  %v1181_v56 = vpack.c.b16 %v1177_v43, %v1177_v43  ;;  %v1269_v59 = vunpack.c.l.b16 %v1265_v48 }
  0x67   : > { %3875 = vrot.lane.b32.xlu1 %v3874_v44, %s4231_s14  ;;  %v1192_v57 = vperm.slane %v1190_v51, 0  ;;  %v1182_v58 = vpack.c.b16 %v1178_v52, %v1178_v52  ;;  %v1116_v60 = vunpack.c.l.bf16 %v1104_v45  ;;  %v1286_v61 = vpack.i.b16 %v1275_v47, %v1275_v47  ;;  %v711_v47 = vld [vmem:[%s4387_s13 + $0x8] sm:$0xff] }
  0x68   : > { %v1194_v62 = vshrl.u32 %v1181_v56, 16  ;;  %v1117_v63 = vunpack.c.l.bf16 %v1108_v50  ;;  %v1270_v1 = vunpack.c.h.b16 %v1265_v48  ;;  %v1273_v2 = vpack.c.b16 %v1269_v59, %v1269_v59 }
  0x69   : > { %v1199_v0 = vshrl.u32 %v1182_v58, 16  ;;  %v1208_v3 = vunpack.c.l.bf16 %v1187_v54  ;;  %v1209_v4 = vunpack.c.l.bf16 %v1192_v57  ;;  %v1290_v5 = vpack.i.b16 %v1276_v55, %v1276_v55 }
  0x6a   : > { %3865 = vrot.lane.b32.xlu2 %v3864_v49, %s4232_s17  ;;  %v1195_v6 = vpack.i.b16 %v1194_v62, %v1194_v62  ;;  %v1274_v8 = vpack.c.b16 %v1270_v1, %v1270_v1  ;;  %v1278_v9 = vpack.i.b16 %v1273_v2, %v1273_v2  ;;  %v3879_v11 = vpack.i.bf16 %v1117_v63, %v1116_v60  ;;  %v896_v60 = vld [vmem:[%s4387_s13 + $0x10] sm:$0xf] }
  0x6b   : > { %3870 = vrot.lane.b32.xlu0 %v3869_v53, %s4232_s17  ;;  %v1200_v7 = vpack.i.b16 %v1199_v0, %v1199_v0  ;;  %v3884_v15 = vpack.i.bf16 %v1209_v4, %v1208_v3  ;;  %v1288_v16 = vperm.slane %v1286_v61, 1  ;;  %v1292_v17 = vperm.slane %v1290_v5, 1 }
  0x6c   : > { %v1197_v10 = vperm.slane %v1195_v6, 0  ;;  %v1280_v13 = vperm.slane %v1278_v9, 1  ;;  %v1282_v14 = vpack.i.b16 %v1274_v8, %v1274_v8  ;;  %v376_v35 = vunpack.c.l.bf16 %v343_v32 }
  0x6d   : > { %v1202_v12 = vperm.slane %v1200_v7, 0  ;;  %v1300_v24 = vunpack.c.l.bf16 %v1288_v16  ;;  %v1301_v25 = vunpack.c.l.bf16 %v1292_v17  ;;  %v561_v39 = vunpack.c.l.bf16 %v528_v36 }
  0x6e   : > { %v1210_v18 = vunpack.c.l.bf16 %v1197_v10  ;;  %v1284_v20 = vperm.slane %v1282_v14, 1  ;;  %v1298_v22 = vunpack.c.l.bf16 %v1280_v13  ;;  %vm702_vm0 = vcmask 531456   ;;  %v1080_v14 = vld [vmem:[%s4387_s13 + $0x10] sm:$0xf] }
  0x6f   : > { %v1211_v19 = vunpack.c.l.bf16 %v1202_v12  ;;  %v3899_v27 = vpack.i.bf16 %v1301_v25, %v1300_v24  ;;  %vm488_vm1 = vcmask 457728   ;;  %v4458_v55 = vunpack.c.l.bf16 %v711_v47 }
  0x70   : > { %v1299_v23 = vunpack.c.l.bf16 %v1284_v20  ;;  %v4460_v56 = vunpack.c.h.bf16 %v711_v47  ;;  %v929_v2 = vunpack.c.l.bf16 %v896_v60  ;;  %vm393_vm2 = vcmask 449536  }
  0x71   : > { %v3889_v21 = vpack.i.bf16 %v1211_v19, %v1210_v18  ;;  %v712_v18 = vld [vmem:[%s4387_s13 + $0x10] sm:$0xf]  ;;  %v1113_v20 = vunpack.c.l.bf16 %v1080_v14  ;;  %vm762_vm3 = vcmask 523264   ;;  %vm578_vm4 = vcmask 465920  }
  0x72   : > { %3880 = vrot.lane.b32.xlu2 %v3879_v11, %s4231_s14  ;;  %v3894_v26 = vpack.i.bf16 %v1299_v23, %v1298_v22  ;;  %v526_v11 = vld [vmem:[%s4387_s13] sm:$0xff]  ;;  %v745_v24 = vunpack.c.l.bf16 %v712_v18  ;;  %vm608_vm5 = vcmask 580608   ;;  %vm424_vm6 = vcmask 596992  }
  0x73   : > { %3885 = vrot.lane.b32.xlu0 %v3884_v15, %s5412_s30  ;;  %3890 = vrot.lane.b32.xlu1 %v3889_v21, %s5412_s30  ;;  %v4503_v15 = vunpack.c.l.bf16 %v526_v11  ;;  %v4505_v16 = vunpack.c.h.bf16 %v526_v11  ;;  %vm5414_vm7 = vcmask 982016   ;;  %vm672_vm8 = vcmask 515072   ;;  %s4239_s30 = smov 127  }
  0x74   : > { %vm518_vm9 = vcmask 588800   ;;  %vm5417_vm10 = vcmask 973824   ;;  %vm422_vm11 = vcmask 1043456   ;;  %vm1344_vm12 = vcmask 64512  }
  0x75   : > { %vm1254_vm13 = vcmask 72704   ;;  %vm1408_vm14 = vcmask 990208   ;;  %vm1438_vm15 = vcmask 56320  }
  0x7a   : > { %3895 = vrot.lane.b32.xlu2 %v3894_v26, %s5410_s11 }
  0x7b   : > { %3900 = vrot.lane.b32.xlu0 %v3899_v27, %s5410_s11  ;;  %s4238_s11 = smov 7  }
  0x9e   : > { %v4419_v28 = vpop.permute.xlu2 %3810 }
  0x9f   : > { %v3813_v41 = vunpack.i.h.bf16 %v4419_v28  ;;  %v3812_v60 = vunpack.i.l.bf16 %v4419_v28 }
  0xa1   : > { %v591_v43 = vmul.f32 %v3813_v41, %v561_v39  ;;  %v581_v14 = vsel %vm578_vm4, %v3812_v60, %v3813_v41 }
  0xa2   : > { %v590_v28 = vmul.f32 %v4460_v56, %v581_v14 }
  0xa3   : > { %v594_v61 = vpack.c.bf16 %v591_v43, %v591_v43 }
  0xac   : > { %v4421_v29 = vpop.permute.xlu1 %3805  ;;  %v4423_v30 = vpop.permute.xlu2 %3815 }
  0xad   : > { %v4425_v31 = vpop.permute.xlu0 %3795  ;;  %v3818_v44 = vunpack.i.h.bf16 %v4423_v30  ;;  %v3807_v36 = vunpack.i.l.bf16 %v4421_v29 }
  0xae   : > { %v3798_v4 = vunpack.i.h.bf16 %v4425_v31  ;;  %v3797_v5 = vunpack.i.l.bf16 %v4425_v31 }
  0xb0   : > { %v394_v13 = vsel %vm393_vm2, %v3797_v5, %v3798_v4  ;;  %v402_v19 = vmul.f32 %v3797_v5, %v4503_v15 }
  0xb1   : > { %v403_v21 = vmul.f32 %v4505_v16, %v394_v13 }
  0xb4   : > { %v4428_v33 = vpop.permute.xlu1 %3840  ;;  %v4430_v34 = vpop.permute.xlu2 %3830 }
  0xb5   : > { %v4433_v37 = vpop.permute.xlu0 %3800  ;;  %v3833_v22 = vunpack.i.h.bf16 %v4430_v34 }
  0xb6   : > { %v3803_v38 = vunpack.i.h.bf16 %v4433_v37  ;;  %v3802_v27 = vunpack.i.l.bf16 %v4433_v37 }
  0xb8   : > { %v406_v40 = vmul.f32 %v3803_v38, %v376_v35  ;;  %v3808_v35 = vunpack.i.h.bf16 %v4421_v29 }
  0xba   : > { %v409_v42 = vpack.c.bf16 %v406_v40, %v406_v40  ;;  %v407_v40 = vpack.c.bf16 %v403_v21, %v402_v19  ;;  %v580_v19 = vsel %vm578_vm4, %v3808_v35, %v3812_v60 }
  0xbc   : > { %v4442_v45 = vpop.permute.xlu1 %3845  ;;  %v4444_v46 = vpop.permute.xlu2 %3850  ;;  %417 = vrot.lane.b32.xlu2 %v409_v42, %s4231_s14 }
  0xbd   : > { %v3848_v48 = vunpack.i.h.bf16 %v4442_v45  ;;  %v3853_v49 = vunpack.i.h.bf16 %v4444_v46  ;;  %v3852_v50 = vunpack.i.l.bf16 %v4444_v46  ;;  %v4451_v51 = vpop.permute.xlu0 %3820 }
  0xbe   : > { %v3823_v52 = vunpack.i.h.bf16 %v4451_v51  ;;  %v3822_v53 = vunpack.i.l.bf16 %v4451_v51 }
  0xbf   : > { %v858_v54 = vsel %vm702_vm0, %v3848_v48, %v3852_v50  ;;  %v859_v57 = vsel %vm702_vm0, %v3852_v50, %v3853_v49 }
  0xc0   : > { %v490_v58 = vsel %vm488_vm1, %v3818_v44, %v3822_v53  ;;  %v491_v59 = vsel %vm488_vm1, %v3822_v53, %v3823_v52  ;;  %v4479_v0 = vmul.f32 %v858_v54, %v4458_v55  ;;  %v4482_v1 = vmul.f32 %v859_v57, %v4460_v56 }
  0xc1   : > { %v4473_v62 = vmul.f32 %v4458_v55, %v490_v58  ;;  %v4476_v63 = vmul.f32 %v4460_v56, %v491_v59  ;;  %v395_v53 = vsel %vm393_vm2, %v3798_v4, %v3802_v27  ;;  %v396_v54 = vsel %vm393_vm2, %v3802_v27, %v3803_v38 }
  0xc2   : > { %v871_v8 = vpack.c.bf16 %v4482_v1, %v4479_v0  ;;  %v579_v57 = vsel %vm578_vm4, %v3807_v36, %v3808_v35  ;;  %v404_v37 = vmul.f32 %v4458_v55, %v395_v53  ;;  %v405_v38 = vmul.f32 %v4460_v56, %v396_v54 }
  0xc3   : > { %v503_v3 = vpack.c.bf16 %v4476_v63, %v4473_v62  ;;  %v588_v11 = vmul.f32 %v579_v57, %v4505_v16 }
  0xc4   : > { %v4488_v6 = vpop.permute.xlu1 %3860  ;;  %v4490_v7 = vpop.permute.xlu2 %3865  ;;  %602 = vrot.lane.b32.xlu2 %v594_v61, %s4229_s29  ;;  %v408_v18 = vpack.c.bf16 %v405_v38, %v404_v37 }
  0xc5   : > { %v3863_v9 = vunpack.i.h.bf16 %v4488_v6  ;;  %v4496_v10 = vpop.permute.xlu0 %3825 }
  0xc7   : > { %v959_v12 = vmul.f32 %v3863_v9, %v929_v2  ;;  %v587_v2 = vmul.f32 %v3807_v36, %v4503_v15  ;;  %v589_v36 = vmul.f32 %v4458_v55, %v580_v19  ;;  %v802_v19 = vld [vmem:[%s4387_s13 + $0x10] sm:$0xf] }
  0xc9   : > { %v962_v17 = vpack.c.bf16 %v959_v12, %v959_v12 }
  0xcb   : > { %970 = vrot.lane.b32.xlu1 %v962_v17, %s4224_s4  ;;  %v3862_v17 = vunpack.i.l.bf16 %v4488_v6  ;;  %v593_v6 = vpack.c.bf16 %v590_v28, %v589_v36 }
  0xcc   : > { %v4512_v23 = vpop.permute.xlu2 %3880 }
  0xcd   : > { %v3883_v25 = vunpack.i.h.bf16 %v4512_v23  ;;  %v3836_v26 = vpop.permute.xlu0 %3835  ;;  %v949_v41 = vsel %vm608_vm5, %v3862_v17, %v3863_v9  ;;  %v3882_v53 = vunpack.i.l.bf16 %v4512_v23  ;;  %v986_v23 = vld [vmem:[%s4387_s13 + $0x10] sm:$0xf] }
  0xce   : > { %v3838_v31 = vunpack.i.h.bf16 %v3836_v26  ;;  %v3837_v32 = vunpack.i.l.bf16 %v3836_v26 }
  0xcf   : > { %v1143_v39 = vmul.f32 %v3883_v25, %v1113_v20  ;;  %v592_v20 = vpack.c.bf16 %v588_v11, %v587_v2 }
  0xd0   : > { %v775_v42 = vmul.f32 %v3838_v31, %v745_v24  ;;  %v764_v43 = vsel %vm762_vm3, %v3833_v22, %v3837_v32  ;;  %v765_v47 = vsel %vm762_vm3, %v3837_v32, %v3838_v31 }
  0xd1   : > { %v1146_v50 = vpack.c.bf16 %v1143_v39, %v1143_v39  ;;  %v773_v58 = vmul.f32 %v764_v43, %v4458_v55  ;;  %v774_v59 = vmul.f32 %v765_v47, %v4460_v56  ;;  %v3832_v39 = vunpack.i.l.bf16 %v4430_v34 }
  0xd2   : > { %v778_v29 = vpack.c.bf16 %v775_v42, %v775_v42  ;;  %v958_v43 = vmul.f32 %v949_v41, %v4460_v56  ;;  %v839_v41 = vunpack.c.l.bf16 %v802_v19 }
  0xd3   : > { %1154 = vrot.lane.b32.xlu2 %v1146_v50, %s4225_s24  ;;  %413 = vrot.lane.b32.xlu1 %v407_v40, %s4231_s14  ;;  %v777_v12 = vpack.c.bf16 %v774_v59, %v773_v58  ;;  %v763_v9 = vsel %vm762_vm3, %v3832_v39, %v3833_v22  ;;  %v771_v57 = vmul.f32 %v3832_v39, %v4503_v15  ;;  %v434_v22 = vld [vmem:[%s4387_s13 + $0x10] sm:$0xf] }
  0xd4   : > { %786 = vrot.lane.b32.xlu0 %v778_v29, %s4230_s9  ;;  %v772_v34 = vmul.f32 %v763_v9, %v4505_v16  ;;  %v1133_v59 = vsel %vm424_vm6, %v3882_v53, %v3883_v25  ;;  %v3896_v38 = vpop.permute.xlu2 %3895  ;;  %v471_v2 = vunpack.c.l.bf16 %v434_v22 }
  0xd5   : > { %v3856_v61 = vpop.permute.xlu0 %3855  ;;  %v3898_v11 = vunpack.i.h.bf16 %v3896_v38 }
  0xd6   : > { %v3858_v4 = vunpack.i.h.bf16 %v3856_v61  ;;  %v3857_v5 = vunpack.i.l.bf16 %v3856_v61  ;;  %v776_v37 = vpack.c.bf16 %v772_v34, %v771_v57  ;;  %v1170_v57 = vld [vmem:[%s4387_s13 + $0x10] sm:$0xf] }
  0xd8   : > { %v947_v13 = vsel %vm608_vm5, %v3857_v5, %v3858_v4  ;;  %v948_v24 = vsel %vm608_vm5, %v3858_v4, %v3862_v17  ;;  %v955_v26 = vmul.f32 %v3857_v5, %v4503_v15  ;;  %v1142_v5 = vmul.f32 %v1133_v59, %v4460_v56 }
  0xd9   : > { %v3876_v21 = vpop.permute.xlu1 %3875  ;;  %v956_v27 = vmul.f32 %v947_v13, %v4505_v16  ;;  %v957_v40 = vmul.f32 %v948_v24, %v4458_v55  ;;  %v501_v13 = vmul.f32 %v3823_v52, %v471_v2  ;;  %v3847_v59 = vunpack.i.l.bf16 %v4442_v45 }
  0xda   : > { %v3878_v32 = vunpack.i.h.bf16 %v3876_v21  ;;  %v3877_v35 = vunpack.i.l.bf16 %v3876_v21  ;;  %v3868_v45 = vunpack.i.h.bf16 %v4490_v7 }
  0xdb   : > { %784 = vrot.lane.b32.xlu2 %v777_v12, %s4230_s9  ;;  %415 = vrot.lane.b32.xlu1 %v408_v18, %s4231_s14  ;;  %v960_v42 = vpack.c.bf16 %v956_v27, %v955_v26  ;;  %v961_v50 = vpack.c.bf16 %v958_v43, %v957_v40  ;;  %v3897_v12 = vunpack.i.l.bf16 %v3896_v38  ;;  %v504_v28 = vpack.c.bf16 %v501_v13, %v501_v13  ;;  %v618_v40 = vld [vmem:[%s4387_s13 + $0x10] sm:$0xf] }
  0xdc   : > { %598 = vrot.lane.b32.xlu0 %v592_v20, %s4229_s29  ;;  %v1131_v47 = vsel %vm424_vm6, %v3877_v35, %v3878_v32  ;;  %v1139_v54 = vmul.f32 %v3877_v35, %v4503_v15  ;;  %v1132_v60 = vsel %vm424_vm6, %v3878_v32, %v3882_v53  ;;  %v1023_v20 = vunpack.c.l.bf16 %v986_v23 }
  0xdd   : > { %v4555_v31 = vpop.permute.xlu0 %3870  ;;  %v1140_v29 = vmul.f32 %v1131_v47, %v4505_v16  ;;  %v1141_v4 = vmul.f32 %v1132_v60, %v4458_v55  ;;  %v1315_v21 = vsel %vm5414_vm7, %v3897_v12, %v3898_v11  ;;  %v1323_v32 = vmul.f32 %v3897_v12, %v4503_v15 }
  0xde   : > { %v3873_v52 = vunpack.i.h.bf16 %v4555_v31  ;;  %v1324_v36 = vmul.f32 %v1315_v21, %v4505_v16  ;;  %v3828_v43 = vunpack.i.h.bf16 %v4496_v10  ;;  %v655_v9 = vunpack.c.l.bf16 %v618_v40 }
  0xdf   : > { %v1144_v61 = vpack.c.bf16 %v1140_v29, %v1139_v54  ;;  %v1145_v18 = vpack.c.bf16 %v1142_v5, %v1141_v4  ;;  %v3842_v53 = vunpack.i.l.bf16 %v4428_v33  ;;  %v1207_v60 = vunpack.c.l.bf16 %v1170_v57  ;;  %v1356_v57 = vld [vmem:[#allocation6 + $0x18] sm:$0x22] }
  0xe0   : > { %v1053_v39 = vmul.f32 %v3873_v52, %v1023_v20  ;;  %v1328_v47 = vpack.c.bf16 %v1324_v36, %v1323_v32  ;;  %v857_v4 = vsel %vm702_vm0, %v3847_v59, %v3848_v48  ;;  %v3817_v12 = vunpack.i.l.bf16 %v4423_v30  ;;  %v1355_v30 = vld [vmem:[#allocation6 + $0x10] sm:$0x22] }
  0xe1   : > { %v674_v54 = vsel %vm672_vm8, %v3828_v43, %v3842_v53  ;;  %v866_v23 = vmul.f32 %v857_v4, %v4505_v16  ;;  %v1359_v36 = vunpack.c.l.b16 %v1355_v30 }
  0xe2   : > { %v683_v22 = vmul.f32 %v4458_v55, %v674_v54  ;;  %v489_v62 = vsel %vm488_vm1, %v3817_v12, %v3818_v44  ;;  %v497_v44 = vmul.f32 %v3817_v12, %v4503_v15 }
  0xe3   : > { %600 = vrot.lane.b32.xlu1 %v593_v6, %s4229_s29  ;;  %966 = vrot.lane.b32.xlu2 %v960_v42, %s4224_s4  ;;  %v869_v42 = vmul.f32 %v3853_v49, %v839_v41  ;;  %v1056_v6 = vpack.c.bf16 %v1053_v39, %v1053_v39  ;;  %v1360_v39 = vunpack.c.h.b16 %v1355_v30 }
  0xe4   : > { %968 = vrot.lane.b32.xlu0 %v961_v50, %s4224_s4  ;;  %v3843_v50 = vunpack.i.h.bf16 %v4428_v33  ;;  %v3827_v33 = vunpack.i.l.bf16 %v4496_v10  ;;  %v865_v10 = vmul.f32 %v3847_v59, %v4503_v15 }
  0xe5   : > { %v4572_v58 = vpop.permute.xlu0 %3885  ;;  %v872_v29 = vpack.c.bf16 %v869_v42, %v869_v42  ;;  %v3891_v46 = vpop.permute.xlu1 %3890 }
  0xe6   : > { %v685_v49 = vmul.f32 %v3843_v50, %v655_v9  ;;  %v675_v34 = vsel %vm672_vm8, %v3842_v53, %v3843_v50  ;;  %v673_v5 = vsel %vm672_vm8, %v3827_v33, %v3828_v43  ;;  %v681_v48 = vmul.f32 %v3827_v33, %v4503_v15 }
  0xe7   : > { %v682_v13 = vmul.f32 %v673_v5, %v4505_v16  ;;  %v3892_v19 = vunpack.i.l.bf16 %v3891_v46  ;;  %v870_v63 = vpack.c.bf16 %v866_v23, %v865_v10  ;;  %v1363_v9 = vpack.c.b16 %v1359_v36, %v1359_v36 }
  0xe8   : > { %v688_v38 = vpack.c.bf16 %v685_v49, %v685_v49  ;;  %v1364_v50 = vpack.c.b16 %v1360_v39, %v1360_v39 }
  0xea   : > { %v1373_v49 = vshrl.u32 %v1364_v50, 16 }
  0xeb   : > { %782 = vrot.lane.b32.xlu1 %v776_v37, %s4230_s9  ;;  %v684_v37 = vmul.f32 %v4460_v56, %v675_v34  ;;  %v1361_v34 = vunpack.c.l.b16 %v1356_v57 }
  0xec   : > { %1150 = vrot.lane.b32.xlu0 %v1144_v61, %s4225_s24  ;;  %v3893_v61 = vunpack.i.h.bf16 %v3891_v46  ;;  %v1368_v46 = vshrl.u32 %v1363_v9, 16 }
  0xed   : > { %v4585_v25 = vpop.permute.xlu0 %3900  ;;  %v687_v2 = vpack.c.bf16 %v684_v37, %v683_v22  ;;  %v1362_v22 = vunpack.c.h.b16 %v1356_v57  ;;  %v1365_v59 = vpack.c.b16 %v1361_v34, %v1361_v34 }
  0xee   : > { %v3903_v14 = vunpack.i.h.bf16 %v4585_v25  ;;  %v3902_v17 = vunpack.i.l.bf16 %v4585_v25  ;;  %v1374_v25 = vpack.i.b16 %v1373_v49, %v1373_v49 }
  0xef   : > { %v1366_v33 = vpack.c.b16 %v1362_v22, %v1362_v22 }
  0xf0   : > { %v1316_v24 = vsel %vm5414_vm7, %v3898_v11, %v3902_v17  ;;  %v1317_v26 = vsel %vm5414_vm7, %v3902_v17, %v3903_v14  ;;  %v1237_v11 = vmul.f32 %v3893_v61, %v1207_v60  ;;  %v3872_v17 = vunpack.i.l.bf16 %v4555_v31  ;;  %v1264_v31 = vld [vmem:[%s4387_s13 + $0x10] sm:$0xf] }
  0xf1   : > { %v1325_v27 = vmul.f32 %v1316_v24, %v4458_v55  ;;  %v1326_v51 = vmul.f32 %v1317_v26, %v4460_v56  ;;  %v1227_v24 = vsel %vm5417_vm10, %v3892_v19, %v3893_v61  ;;  %v686_v26 = vpack.c.bf16 %v682_v13, %v681_v48 }
  0xf2   : > { %v1240_v20 = vpack.c.bf16 %v1237_v11, %v1237_v11  ;;  %v1236_v41 = vmul.f32 %v1227_v24, %v4460_v56  ;;  %v1297_v42 = vunpack.c.l.bf16 %v1264_v31  ;;  %vm1498_vm7 = vcmask 1039360  }
  0xf3   : > { %1152 = vrot.lane.b32.xlu1 %v1145_v18, %s4225_s24  ;;  %v1329_v35 = vpack.c.bf16 %v1326_v51, %v1325_v27  ;;  %v3888_v18 = vunpack.i.h.bf16 %v4572_v58  ;;  %v1043_v27 = vsel %vm518_vm9, %v3872_v17, %v3873_v52  ;;  %v498_v51 = vmul.f32 %v4505_v16, %v489_v62 }
  0xf4   : > { %512 = vrot.lane.b32.xlu0 %v504_v28, %s4232_s17  ;;  %v1052_v52 = vmul.f32 %v1043_v27, %v4460_v56  ;;  %v1327_v54 = vmul.f32 %v3903_v14, %v1297_v42  ;;  %v1378_v14 = vshrl.u32 %v1365_v59, 16 }
  0xf5   : > { %1336 = vrot.lane.b32.xlu2 %v1329_v35, %s4235_s8  ;;  %v1226_v21 = vsel %vm5417_vm10, %v3888_v18, %v3892_v19  ;;  %v3887_v35 = vunpack.i.l.bf16 %v4572_v58  ;;  %v502_v40 = vpack.c.bf16 %v498_v51, %v497_v44  ;;  %v3867_v58 = vunpack.i.l.bf16 %v4490_v7 }
  0xf6   : > { %v1235_v28 = vmul.f32 %v1226_v21, %v4458_v55  ;;  %v1330_v61 = vpack.c.bf16 %v1327_v54, %v1327_v54  ;;  %v1369_v7 = vpack.i.b16 %v1368_v46, %v1368_v46  ;;  %v1379_v5 = vpack.i.b16 %v1378_v14, %v1378_v14 }
  0xf7   : > { %v1233_v53 = vmul.f32 %v3887_v35, %v4503_v15  ;;  %v1041_v60 = vsel %vm518_vm9, %v3867_v58, %v3868_v45 }
  0xf8   : > { %v1239_v43 = vpack.c.bf16 %v1236_v41, %v1235_v28  ;;  %v1050_v4 = vmul.f32 %v1041_v60, %v4505_v16  ;;  %v1371_v10 = vperm.slane %v1369_v7, 1  ;;  %v1381_v48 = vperm.slane %v1379_v5, 1 }
  0xfa   : > { %v1392_v13 = vunpack.c.l.bf16 %v1371_v10 }
  0xfb   : > { %1334 = vrot.lane.b32.xlu1 %v1328_v47, %s4235_s8  ;;  %v1225_v47 = vsel %vm5417_vm10, %v3887_v35, %v3888_v18  ;;  %vm1528_vm10 = vcmask 7168  }
  0xfc   : > { %1064 = vrot.lane.b32.xlu0 %v1056_v6, %s4228_s12 }
  0xfd   : > { %880 = vrot.lane.b32.xlu2 %v872_v29, %s4226_s27  ;;  %v1234_v29 = vmul.f32 %v1225_v47, %v4505_v16 }
  0xff   : > { %v1238_v37 = vpack.c.bf16 %v1234_v29, %v1233_v53 }
 0x103   : > { %696 = vrot.lane.b32.xlu1 %v688_v38, %s4227_s6  ;;  %v1383_v38 = vshrl.u32 %v1366_v33, 16 }
 0x104   : > { %694 = vrot.lane.b32.xlu0 %v687_v2, %s4227_s6  ;;  %v1049_v2 = vmul.f32 %v3867_v58, %v4503_v15 }
 0x105   : > { %510 = vrot.lane.b32.xlu2 %v503_v3, %s4232_s17  ;;  %v1042_v3 = vsel %vm518_vm9, %v3868_v45, %v3872_v17  ;;  %v1384_v11 = vpack.i.b16 %v1383_v38, %v1383_v38  ;;  %v1376_v45 = vperm.slane %v1374_v25, 1 }
 0x106   : > { %v1051_v32 = vmul.f32 %v1042_v3, %v4458_v55  ;;  %v1054_v1 = vpack.c.bf16 %v1050_v4, %v1049_v2 }
 0x107   : > { %v1386_v0 = vperm.slane %v1384_v11, 1  ;;  %v1393_v17 = vunpack.c.l.bf16 %v1376_v45 }
 0x108   : > { %v1055_v6 = vpack.c.bf16 %v1052_v52, %v1051_v32 }
 0x109   : > { %v1395_v23 = vunpack.c.l.bf16 %v1386_v0  ;;  %v3904_v19 = vpack.i.bf16 %v1393_v17, %v1392_v13 }
 0x10b   : > { %1248 = vrot.lane.b32.xlu1 %v1240_v20, %s4236_s15 }
 0x10c   : > { %876 = vrot.lane.b32.xlu0 %v870_v63, %s4226_s27 }
 0x10d   : > { %692 = vrot.lane.b32.xlu2 %v686_v26, %s4227_s6 }
 0x113   : > { %508 = vrot.lane.b32.xlu1 %v502_v40, %s4232_s17 }
 0x114   : > { %1246 = vrot.lane.b32.xlu0 %v1239_v43, %s4236_s15 }
 0x115   : > { %1062 = vrot.lane.b32.xlu2 %v1055_v6, %s4228_s12 }
 0x116   : > { %v418_v12 = vpop.permute.xlu2 %417 }
 0x117   : > { %v421_v41 = vrot.slane %v418_v12, 4 }
 0x11b   : > { %878 = vrot.lane.b32.xlu1 %v871_v8, %s4226_s27  ;;  %v1394_v8 = vunpack.c.l.bf16 %v1381_v48 }
 0x11c   : > { %1338 = vrot.lane.b32.xlu0 %v1330_v61, %s4235_s8 }
 0x11d   : > { %1244 = vrot.lane.b32.xlu2 %v1238_v37, %s4236_s15  ;;  %v3909_v18 = vpack.i.bf16 %v1395_v23, %v1394_v8 }
 0x11e   : > { %v603_v20 = vpop.permute.xlu2 %602 }
 0x11f   : > { %v606_v6 = vrot.slane %v603_v20, 4 }
 0x123   : > { %1060 = vrot.lane.b32.xlu1 %v1054_v1, %s4228_s12 }
 0x125   : > { %3910 = vrot.lane.b32.xlu2 %v3909_v18, %s5415_s28 }
 0x12b   : > { %3905 = vrot.lane.b32.xlu1 %v3904_v19, %s5415_s28  ;;  %s4240_s28 = smov 1  }
 0x12d   : > { %v4682_v62 = vpop.permute.xlu2 %1154 }
 0x12e   : > { %v1158_v5 = vrot.slane %v4682_v62, 4 }
 0x135   : > { %v785_v63 = vpop.permute.xlu2 %784 }
 0x136   : > { %v789_v27 = vrot.slane %v785_v63, 4 }
 0x13d   : > { %v971_v3 = vpop.permute.xlu1 %970  ;;  %v967_v24 = vpop.permute.xlu2 %966 }
 0x13e   : > { %v972_v43 = vrot.slane %v967_v24, 4  ;;  %v974_v53 = vrot.slane %v971_v3, 4 }
 0x145   : > { %v414_v21 = vpop.permute.xlu1 %413 }
 0x146   : > { %v787_v26 = vpop.permute.xlu0 %786  ;;  %v419_v32 = vrot.slane %v414_v21, 4 }
 0x147   : > { %v790_v30 = vrot.slane %v787_v26, 4 }
 0x149   : > { %v794_v44 = vsel %vm422_vm11, %v789_v27, %v790_v30 }
 0x14a   : > { %v795_v51 = vsel %vm762_vm3, %v785_v63, %v794_v44 }
 0x14b   : > { %799 = vst [vmem:[#allocation2 + $0x48] sm:$0xff] %v795_v51 }
 0x14d   : > { %v416_v28 = vpop.permute.xlu1 %415 }
 0x14e   : > { %v599_v35 = vpop.permute.xlu0 %598  ;;  %v420_v31 = vrot.slane %v416_v28, 4 }
 0x14f   : > { %v4686_v52 = vpop.permute.xlu2 %1336  ;;  %v604_v9 = vrot.slane %v599_v35, 4 }
 0x150   : > { %v423_v36 = vsel %vm422_vm11, %v419_v32, %v420_v31  ;;  %v426_v39 = vsel %vm422_vm11, %v420_v31, %v421_v41  ;;  %v1341_v19 = vrot.slane %v4686_v52, 4 }
 0x151   : > { %v425_v40 = vsel %vm424_vm6, %v414_v21, %v423_v36  ;;  %v427_v42 = vsel %vm424_vm6, %v416_v28, %v426_v39 }
 0x152   : > { %430 = vst [vmem:[#allocation2] sm:$0xff] %v425_v40 }
 0x153   : > { %431 = vst [vmem:[#allocation2 + $0x8] sm:$0xff] %v427_v42  ;;  %v1354_v42 = vld [vmem:[%s4387_s13 + $0x10] sm:$0xf] }
 0x155   : > { %v601_v47 = vpop.permute.xlu1 %600 }
 0x156   : > { %v969_v50 = vpop.permute.xlu0 %968  ;;  %v605_v58 = vrot.slane %v601_v47, 4 }
 0x157   : > { %v973_v54 = vrot.slane %v969_v50, 4  ;;  %v4692_v29 = vpop.permute.xlu2 %880 }
 0x158   : > { %v607_v57 = vsel %vm422_vm11, %v604_v9, %v605_v58  ;;  %v610_v46 = vsel %vm422_vm11, %v605_v58, %v606_v6  ;;  %v1391_v6 = vunpack.c.l.bf16 %v1354_v42 }
 0x159   : > { %v975_v49 = vsel %vm422_vm11, %v972_v43, %v973_v54  ;;  %v978_v34 = vsel %vm422_vm11, %v973_v54, %v974_v53  ;;  %v609_v22 = vsel %vm608_vm5, %v599_v35, %v607_v57  ;;  %v611_v60 = vsel %vm608_vm5, %v601_v47, %v610_v46 }
 0x15a   : > { %v977_v59 = vsel %vm578_vm4, %v967_v24, %v975_v49  ;;  %v979_v33 = vsel %vm578_vm4, %v969_v50, %v978_v34  ;;  %614 = vst [vmem:[#allocation2 + $0x20] sm:$0xff] %v609_v22 }
 0x15b   : > { %982 = vst [vmem:[#allocation2 + $0x60] sm:$0xff] %v977_v59 }
 0x15c   : > { %983 = vst [vmem:[#allocation2 + $0x68] sm:$0xff] %v979_v33 }
 0x15d   : > { %615 = vst [vmem:[#allocation2 + $0x28] sm:$0xff] %v611_v60  ;;  %v783_v61 = vpop.permute.xlu1 %782 }
 0x15e   : > { %v1151_v37 = vpop.permute.xlu0 %1150  ;;  %v788_v7 = vrot.slane %v783_v61, 4 }
 0x15f   : > { %v4702_v25 = vpop.permute.xlu2 %510  ;;  %v1156_v2 = vrot.slane %v1151_v37, 4 }
 0x160   : > { %v791_v14 = vsel %vm422_vm11, %v788_v7, %v789_v27  ;;  %v515_v10 = vrot.slane %v4702_v25, 4 }
 0x161   : > { %v793_v38 = vsel %vm762_vm3, %v783_v61, %v791_v14  ;;  %v884_v14 = vrot.slane %v4692_v29, 4  ;;  %v1449_v29 = vld [vmem:[#allocation6 + $0x10] sm:$0x44] }
 0x162   : > { %798 = vst [vmem:[#allocation2 + $0x40] sm:$0xff] %v793_v38 }
 0x165   : > { %v1153_v4 = vpop.permute.xlu1 %1152 }
 0x166   : > { %v513_v11 = vpop.permute.xlu0 %512  ;;  %v1157_v12 = vrot.slane %v1153_v4, 4 }
 0x167   : > { %v516_v45 = vrot.slane %v513_v11, 4  ;;  %v693_v48 = vpop.permute.xlu2 %692 }
 0x168   : > { %v1159_v0 = vsel %vm422_vm11, %v1156_v2, %v1157_v12  ;;  %v1162_v1 = vsel %vm422_vm11, %v1157_v12, %v1158_v5  ;;  %v698_v41 = vrot.slane %v693_v48, 4 }
 0x169   : > { %v520_v8 = vsel %vm422_vm11, %v515_v10, %v516_v45  ;;  %v1161_v23 = vsel %vm393_vm2, %v1151_v37, %v1159_v0  ;;  %v1163_v13 = vsel %vm393_vm2, %v1153_v4, %v1162_v1 }
 0x16a   : > { %v521_v17 = vsel %vm518_vm9, %v4702_v25, %v520_v8  ;;  %1166 = vst [vmem:[#allocation2 + $0x80] sm:$0xff] %v1161_v23 }
 0x16b   : > { %525 = vst [vmem:[#allocation2 + $0x18] sm:$0xff] %v521_v17  ;;  %v1453_v17 = vunpack.c.l.b16 %v1449_v29 }
 0x16c   : > { %1167 = vst [vmem:[#allocation2 + $0x88] sm:$0xff] %v1163_v13 }
 0x16d   : > { %v1335_v18 = vpop.permute.xlu1 %1334 }
 0x16e   : > { %v1065_v20 = vpop.permute.xlu0 %1064  ;;  %v1340_v62 = vrot.slane %v1335_v18, 4 }
 0x16f   : > { %v1068_v63 = vrot.slane %v1065_v20, 4  ;;  %v4716_v3 = vpop.permute.xlu2 %1062 }
 0x170   : > { %v1343_v21 = vsel %vm422_vm11, %v1340_v62, %v1341_v19  ;;  %v1067_v24 = vrot.slane %v4716_v3, 4 }
 0x171   : > { %v1345_v26 = vsel %vm1344_vm12, %v1335_v18, %v1343_v21  ;;  %v1454_v18 = vunpack.c.h.b16 %v1449_v29  ;;  %v4766_v29 = vld [vmem:[%s4387_s13 + $0x10] sm:$0xf] }
 0x172   : > { %1350 = vst [vmem:[#allocation2 + $0xa0] sm:$0xff] %v1345_v26  ;;  %v1072_v27 = vsel %vm422_vm11, %v1067_v24, %v1068_v63  ;;  %v1457_v26 = vpack.c.b16 %v1453_v17, %v1453_v17 }
 0x173   : > { %v1073_v30 = vsel %vm488_vm1, %v4716_v3, %v1072_v27  ;;  %v1458_v27 = vpack.c.b16 %v1454_v18, %v1454_v18 }
 0x174   : > { %1077 = vst [vmem:[#allocation2 + $0x78] sm:$0xff] %v1073_v30 }
 0x175   : > { %v697_v44 = vpop.permute.xlu1 %696 }
 0x176   : > { %v695_v51 = vpop.permute.xlu0 %694  ;;  %v700_v28 = vrot.slane %v697_v44, 4 }
 0x177   : > { %v699_v32 = vrot.slane %v695_v51, 4  ;;  %v1245_v35 = vpop.permute.xlu2 %1244 }
 0x178   : > { %v1250_v49 = vrot.slane %v1245_v35, 4 }
 0x179   : > { %v701_v31 = vsel %vm422_vm11, %v698_v41, %v699_v32  ;;  %v704_v36 = vsel %vm422_vm11, %v699_v32, %v700_v28  ;;  %v1462_v41 = vpack.i.b16 %v1457_v26, %v1457_v26  ;;  %v1466_v32 = vpack.i.b16 %v1458_v27, %v1458_v27 }
 0x17a   : > { %v703_v39 = vsel %vm702_vm0, %v693_v48, %v701_v31  ;;  %v705_v40 = vsel %vm702_vm0, %v695_v51, %v704_v36  ;;  %v1481_v26 = vunpack.c.l.bf16 %v4766_v29 }
 0x17b   : > { %708 = vst [vmem:[#allocation2 + $0x30] sm:$0xff] %v703_v39 }
 0x17c   : > { %709 = vst [vmem:[#allocation2 + $0x38] sm:$0xff] %v705_v40 }
 0x17d   : > { %v1249_v43 = vpop.permute.xlu1 %1248 }
 0x17e   : > { %v877_v47 = vpop.permute.xlu0 %876  ;;  %v1252_v34 = vrot.slane %v1249_v43, 4 }
 0x17f   : > { %v4731_v9 = vpop.permute.xlu2 %3910  ;;  %v882_v38 = vrot.slane %v877_v47, 4 }
 0x180   : > { %v3913_v50 = vunpack.i.h.bf16 %v4731_v9  ;;  %v3912_v63 = vunpack.i.l.bf16 %v4731_v9  ;;  %v1468_v9 = vperm.slane %v1466_v32, 2 }
 0x182   : > { %v1421_v58 = vmul.f32 %v3913_v50, %v1391_v6  ;;  %v1411_v44 = vsel %vm1408_vm14, %v3912_v63, %v3913_v50  ;;  %v1464_v6 = vperm.slane %v1462_v41, 2 }
 0x184   : > { %v1424_v53 = vpack.c.bf16 %v1421_v58, %v1421_v58 }
 0x185   : > { %v509_v54 = vpop.permute.xlu1 %508 }
 0x186   : > { %v1247_v57 = vpop.permute.xlu0 %1246  ;;  %v514_v46 = vrot.slane %v509_v54, 4  ;;  %1432 = vrot.lane.b32.xlu2 %v1424_v53, %s4238_s11 }
 0x187   : > { %v1251_v22 = vrot.slane %v1247_v57, 4 }
 0x188   : > { %v517_v59 = vsel %vm422_vm11, %v514_v46, %v515_v10  ;;  %v1450_v10 = vld [vmem:[#allocation6 + $0x18] sm:$0x44]  ;;  %v1483_v46 = vunpack.c.l.bf16 %v1468_v9 }
 0x189   : > { %v1253_v33 = vsel %vm422_vm11, %v1250_v49, %v1251_v22  ;;  %v1256_v60 = vsel %vm422_vm11, %v1251_v22, %v1252_v34  ;;  %v519_v61 = vsel %vm518_vm9, %v509_v54, %v517_v59  ;;  %v1455_v8 = vunpack.c.l.b16 %v1450_v10  ;;  %v1590_v59 = vld [vmem:[#allocation6 + $0x18] sm:$0x88] }
 0x18a   : > { %v1255_v37 = vsel %vm1254_vm13, %v1245_v35, %v1253_v33  ;;  %v1257_v7 = vsel %vm1254_vm13, %v1247_v57, %v1256_v60  ;;  %524 = vst [vmem:[#allocation2 + $0x10] sm:$0xff] %v519_v61  ;;  %v1456_v23 = vunpack.c.h.b16 %v1450_v10  ;;  %v1482_v57 = vunpack.c.l.bf16 %v1464_v6  ;;  %v1589_v33 = vld [vmem:[#allocation6 + $0x10] sm:$0x88]  ;;  %v2678_v10 = vld [vmem:[#allocation6 + $0x38] sm:$0x22] }
 0x18b   : > { %1260 = vst [vmem:[#allocation2 + $0x90] sm:$0xff] %v1255_v37  ;;  %v1459_v62 = vpack.c.b16 %v1455_v8, %v1455_v8  ;;  %v1595_v37 = vunpack.c.l.b16 %v1590_v59  ;;  %v2683_v18 = vunpack.c.l.b16 %v2678_v10 }
 0x18c   : > { %1261 = vst [vmem:[#allocation2 + $0x98] sm:$0xff] %v1257_v7  ;;  %v1460_v21 = vpack.c.b16 %v1456_v23, %v1456_v23  ;;  %v3914_v34 = vpack.i.bf16 %v1483_v46, %v1482_v57  ;;  %v1596_v7 = vunpack.c.h.b16 %v1590_v59 }
 0x18d   : > { %v879_v25 = vpop.permute.xlu1 %878  ;;  %v1470_v30 = vpack.i.b16 %v1459_v62, %v1459_v62 }
 0x18e   : > { %v1339_v2 = vpop.permute.xlu0 %1338  ;;  %v883_v4 = vrot.slane %v879_v25, 4  ;;  %v1474_v51 = vpack.i.b16 %v1460_v21, %v1460_v21 }
 0x18f   : > { %v1342_v5 = vrot.slane %v1339_v2, 4  ;;  %v1472_v31 = vperm.slane %v1470_v30, 2 }
 0x190   : > { %v885_v11 = vsel %vm422_vm11, %v882_v38, %v883_v4  ;;  %v888_v12 = vsel %vm422_vm11, %v883_v4, %v884_v14  ;;  %v1476_v42 = vperm.slane %v1474_v51, 2  ;;  %v1594_v14 = vunpack.c.h.b16 %v1589_v33 }
 0x191   : > { %v1346_v45 = vsel %vm422_vm11, %v1341_v19, %v1342_v5  ;;  %v887_v48 = vsel %vm672_vm8, %v877_v47, %v885_v11  ;;  %v889_v0 = vsel %vm672_vm8, %v879_v25, %v888_v12  ;;  %v1484_v53 = vunpack.c.l.bf16 %v1472_v31 }
 0x192   : > { %v1347_v1 = vsel %vm1344_vm12, %v4686_v52, %v1346_v45  ;;  %892 = vst [vmem:[#allocation2 + $0x50] sm:$0xff] %v887_v48  ;;  %v1485_v54 = vunpack.c.l.bf16 %v1476_v42  ;;  %v1593_v25 = vunpack.c.l.b16 %v1589_v33  ;;  %v1599_v4 = vpack.c.b16 %v1595_v37, %v1595_v37  ;;  %v1680_v37 = vld [vmem:[#allocation6 + $0x18] sm:$0x88] }
 0x193   : > { %1351 = vst [vmem:[#allocation2 + $0xa8] sm:$0xff] %v1347_v1  ;;  %v1600_v5 = vpack.c.b16 %v1596_v7, %v1596_v7  ;;  %v1598_v12 = vpack.c.b16 %v1594_v14, %v1594_v14  ;;  %v2677_v1 = vld [vmem:[#allocation6 + $0x30] sm:$0x22] }
 0x194   : > { %893 = vst [vmem:[#allocation2 + $0x58] sm:$0xff] %v889_v0  ;;  %v3919_v49 = vpack.i.bf16 %v1485_v54, %v1484_v53  ;;  %v1597_v11 = vpack.c.b16 %v1593_v25, %v1593_v25  ;;  %v1610_v8 = vpack.i.b16 %v1599_v4, %v1599_v4  ;;  %v2682_v21 = vunpack.c.h.b16 %v2677_v1 }
 0x195   : > { %v1061_v13 = vpop.permute.xlu1 %1060  ;;  %v1614_v23 = vpack.i.b16 %v1600_v5, %v1600_v5 }
 0x196   : > { %v1066_v20 = vrot.slane %v1061_v13, 4  ;;  %v1602_v17 = vpack.i.b16 %v1597_v11, %v1597_v11  ;;  %v2686_v42 = vpack.c.b16 %v2682_v21, %v2682_v21 }
 0x197   : > { %v1616_v41 = vperm.slane %v1614_v23, 3 }
 0x198   : > { %v1069_v19 = vsel %vm422_vm11, %v1066_v20, %v1067_v24  ;;  %v1420_v24 = vmul.f32 %v1411_v44, %v4460_v56  ;;  %v2684_v20 = vunpack.c.h.b16 %v2678_v10 }
 0x199   : > { %v1071_v52 = vsel %vm488_vm1, %v1061_v13, %v1069_v19  ;;  %v4769_v13 = vld [vmem:[%s4387_s13] sm:$0xff]  ;;  %v1606_v19 = vpack.i.b16 %v1598_v12, %v1598_v12 }
 0x19a   : > { %1076 = vst [vmem:[#allocation2 + $0x70] sm:$0xff] %v1071_v52  ;;  %v2585_v52 = vld [vmem:[#allocation6 + $0x30] sm:$0x11]  ;;  %v1477_v51 = vunpack.c.l.bf16 %v4769_v13  ;;  %v2318_v12 = vld [vmem:[#allocation6 + $0x28] sm:$0x88] }
 0x19b   : > { %v2589_v44 = vunpack.c.l.b16 %v2585_v52  ;;  %v2590_v32 = vunpack.c.h.b16 %v2585_v52  ;;  %v2323_v21 = vunpack.c.l.b16 %v2318_v12 }
 0x19d   : > { %v3906_v28 = vpop.permute.xlu1 %3905  ;;  %v2593_v31 = vpack.c.b16 %v2589_v44, %v2589_v44 }
 0x19e   : > { %v3908_v35 = vunpack.i.h.bf16 %v3906_v28  ;;  %v3907_v3 = vunpack.i.l.bf16 %v3906_v28  ;;  %v1612_v28 = vperm.slane %v1610_v8, 3 }
 0x1a0   : > { %v1410_v36 = vsel %vm1408_vm14, %v3908_v35, %v3912_v63  ;;  %v1409_v39 = vsel %vm1408_vm14, %v3907_v3, %v3908_v35  ;;  %v1417_v40 = vmul.f32 %v3907_v3, %v4503_v15  ;;  %v1679_v15 = vld [vmem:[#allocation6 + $0x10] sm:$0x88]  ;;  %v2681_v63 = vunpack.c.l.b16 %v2677_v1 }
 0x1a1   : > { %v1419_v43 = vmul.f32 %v1410_v36, %v4458_v55  ;;  %v1418_v47 = vmul.f32 %v1409_v39, %v4505_v16  ;;  %v1683_v16 = vunpack.c.l.b16 %v1679_v15  ;;  %v1684_v22 = vunpack.c.h.b16 %v1679_v15  ;;  %v2498_v36 = vld [vmem:[#allocation6 + $0x38] sm:$0x11] }
 0x1a2   : > { %v4773_v35 = vperm.slane %v1602_v17, 3  ;;  %v2687_v3 = vpack.c.b16 %v2683_v18, %v2683_v18  ;;  %v4775_v39 = vperm.slane %v1606_v19, 3  ;;  %v2503_v53 = vunpack.c.l.b16 %v2498_v36 }
 0x1a3   : > { %v1423_v50 = vpack.c.bf16 %v1420_v24, %v1419_v43  ;;  %v1422_v58 = vpack.c.bf16 %v1418_v47, %v1417_v40  ;;  %v1687_v60 = vpack.c.b16 %v1683_v16, %v1683_v16  ;;  %v1688_v61 = vpack.c.b16 %v1684_v22, %v1684_v22 }
 0x1a4   : > { %v2688_v24 = vpack.c.b16 %v2684_v20, %v2684_v20  ;;  %v2685_v40 = vpack.c.b16 %v2681_v63, %v2681_v63  ;;  %v2594_v43 = vpack.c.b16 %v2590_v32, %v2590_v32  ;;  %v1624_v46 = vunpack.c.l.bf16 %v1612_v28 }
 0x1a5   : > { %1430 = vrot.lane.b32.xlu1 %v1423_v50, %s4238_s11  ;;  %1428 = vrot.lane.b32.xlu0 %v1422_v58, %s4238_s11  ;;  %v1692_v38 = vshrl.u32 %v1687_v60, 16  ;;  %v1697_v2 = vshrl.u32 %v1688_v61, 16  ;;  %v2598_v58 = vshrl.u32 %v2593_v31, 16  ;;  %v2504_v22 = vunpack.c.h.b16 %v2498_v36 }
 0x1a6   : > { %v2702_v15 = vpack.i.b16 %v2688_v24, %v2688_v24  ;;  %v2603_v16 = vshrl.u32 %v2594_v43, 16  ;;  %v2690_v60 = vpack.i.b16 %v2685_v40, %v2685_v40  ;;  %v2694_v61 = vpack.i.b16 %v2686_v42, %v2686_v42 }
 0x1a7   : > { %v1693_v48 = vpack.i.b16 %v1692_v38, %v1692_v38  ;;  %v1698_v0 = vpack.i.b16 %v1697_v2, %v1697_v2  ;;  %v4785_v14 = vpack.i.b16 %v2598_v58, %v2598_v58  ;;  %v2507_v38 = vpack.c.b16 %v2503_v53, %v2503_v53 }
 0x1a8   : > { %v1478_v2 = vunpack.c.h.bf16 %v4769_v13  ;;  %v1622_v5 = vunpack.c.l.bf16 %v4773_v35  ;;  %v1623_v11 = vunpack.c.l.bf16 %v4775_v39  ;;  %v2604_v10 = vpack.i.b16 %v2603_v16, %v2603_v16 }
 0x1a9   : > { %v1695_v27 = vperm.slane %v1693_v48, 3  ;;  %v1700_v30 = vperm.slane %v1698_v0, 3  ;;  %v1685_v48 = vunpack.c.l.b16 %v1680_v37  ;;  %v1686_v0 = vunpack.c.h.b16 %v1680_v37 }
 0x1aa   : > { %v2704_v23 = vperm.slane %v2702_v15, 1  ;;  %v4794_v17 = vperm.slane %v2690_v60, 1  ;;  %v2601_v19 = vperm.slane %v4785_v14, 0  ;;  %v2518_v63 = vpack.i.b16 %v2507_v38, %v2507_v38 }
 0x1ab   : > { %v4777_v9 = vunpack.c.l.bf16 %v1695_v27  ;;  %v4779_v50 = vunpack.c.l.bf16 %v1700_v30  ;;  %v2606_v28 = vperm.slane %v2604_v10, 0  ;;  %v1689_v32 = vpack.c.b16 %v1685_v48, %v1685_v48 }
 0x1ac   : > { %v1690_v35 = vpack.c.b16 %v1686_v0, %v1686_v0  ;;  %v2324_v58 = vunpack.c.h.b16 %v2318_v12  ;;  %v2327_v53 = vpack.c.b16 %v2323_v21, %v2323_v21 }
 0x1ad   : > { %3920 = vrot.lane.b32.xlu1 %v3919_v49, %s4239_s30  ;;  %3915 = vrot.lane.b32.xlu0 %v3914_v34, %s4239_s30  ;;  %v1625_v49 = vunpack.c.l.bf16 %v1616_v41  ;;  %v2698_v34 = vpack.i.b16 %v2687_v3, %v2687_v3  ;;  %v3934_v4 = vpack.i.bf16 %v4779_v50, %v4777_v9  ;;  %v2317_v3 = vld [vmem:[#allocation6 + $0x20] sm:$0x88]  ;;  %v4815_v14 = vunpack.c.l.bf16 %v2606_v28 }
 0x1ae   : > { %v2338_v60 = vpack.i.b16 %v2327_v53, %v2327_v53 }
 0x1af   : > { %v4792_v1 = vpack.i.bf16 %v1625_v49, %v1624_v46  ;;  %v2700_v8 = vperm.slane %v2698_v34, 1  ;;  %v1707_v46 = vshrl.u32 %v1690_v35, 16  ;;  %v2497_v49 = vld [vmem:[#allocation6 + $0x30] sm:$0x11]  ;;  %v3924_v34 = vpack.i.bf16 %v1623_v11, %v1622_v5 }
 0x1b0   : > { %v2501_v37 = vunpack.c.l.b16 %v2497_v49  ;;  %v2502_v12 = vunpack.c.h.b16 %v2497_v49 }
 0x1b1   : > { %v2712_v13 = vunpack.c.l.bf16 %v2700_v8  ;;  %v2406_v8 = vld [vmem:[#allocation6 + $0x28] sm:$0x88] }
 0x1b2   : > { %v2505_v0 = vpack.c.b16 %v2501_v37, %v2501_v37  ;;  %v2411_v28 = vunpack.c.l.b16 %v2406_v8  ;;  %v2412_v50 = vunpack.c.h.b16 %v2406_v8 }
 0x1e0   : > { %v1433_v45 = vpop.permute.xlu2 %1432 }
 0x1e1   : > { %v1436_v62 = vrot.slane %v1433_v45, 4  ;;  %v2508_v45 = vpack.c.b16 %v2504_v22, %v2504_v22  ;;  %v1708_v22 = vpack.i.b16 %v1707_v46, %v1707_v46  ;;  %v2416_v46 = vpack.c.b16 %v2412_v50, %v2412_v50 }
 0x1e3   : > { %v2522_v41 = vpack.i.b16 %v2508_v45, %v2508_v45  ;;  %v1710_v5 = vperm.slane %v1708_v22, 3 }
 0x1e5   : > { %v2524_v15 = vperm.slane %v2522_v41, 0 }
 0x1e7   : > { %v2533_v48 = vunpack.c.l.bf16 %v2524_v15 }
 0x217   : > { %v1431_v47 = vpop.permute.xlu1 %1430  ;;  %v1429_v6 = vpop.permute.xlu0 %1428 }
 0x218   : > { %v1435_v54 = vrot.slane %v1431_v47, 4  ;;  %v1434_v57 = vrot.slane %v1429_v6, 4 }
 0x21a   : > { %v1440_v59 = vsel %vm422_vm11, %v1435_v54, %v1436_v62  ;;  %v1437_v33 = vsel %vm422_vm11, %v1434_v57, %v1435_v54  ;;  %v4796_v62 = vperm.slane %v2694_v61, 1  ;;  %v2321_v54 = vunpack.c.l.b16 %v2317_v3 }
 0x21b   : > { %v1441_v7 = vsel %vm1438_vm15, %v1431_v47, %v1440_v59  ;;  %v1439_v25 = vsel %vm1438_vm15, %v1429_v6, %v1437_v33  ;;  %v1702_v57 = vshrl.u32 %v1689_v32, 16  ;;  %v2137_v59 = vld [vmem:[#allocation6 + $0x20] sm:$0x44]  ;;  %v2328_v33 = vpack.c.b16 %v2324_v58, %v2324_v58 }
 0x21c   : > { %1445 = vst [vmem:[#allocation2 + $0xb8] sm:$0xff] %v1441_v7  ;;  %v2322_v61 = vunpack.c.h.b16 %v2317_v3  ;;  %v2711_v7 = vunpack.c.l.bf16 %v4796_v62  ;;  %v2325_v38 = vpack.c.b16 %v2321_v54, %v2321_v54  ;;  %v2141_v11 = vunpack.c.l.b16 %v2137_v59  ;;  %v2586_v62 = vld [vmem:[#allocation6 + $0x38] sm:$0x11] }
 0x21d   : > { %1444 = vst [vmem:[#allocation2 + $0xb0] sm:$0xff] %v1439_v25  ;;  %v1703_v16 = vpack.i.b16 %v1702_v57, %v1702_v57  ;;  %v4813_v25 = vunpack.c.l.bf16 %v2601_v19  ;;  %v2510_v32 = vpack.i.b16 %v2505_v0, %v2505_v0  ;;  %v2591_v3 = vunpack.c.l.b16 %v2586_v62 }
 0x21e   : > { %v2330_v21 = vpack.i.b16 %v2325_v38, %v2325_v38 }
 0x21f   : > { %v3921_v18 = vpop.permute.xlu1 %3920  ;;  %v3916_v20 = vpop.permute.xlu0 %3915  ;;  %v2512_v53 = vperm.slane %v2510_v32, 0 }
 0x220   : > { %v3923_v52 = vunpack.i.h.bf16 %v3921_v18  ;;  %v3922_v27 = vunpack.i.l.bf16 %v3921_v18  ;;  %v3918_v30 = vunpack.i.h.bf16 %v3916_v20  ;;  %v3917_v44 = vunpack.i.l.bf16 %v3916_v20 }
 0x221   : > { %v2326_v18 = vpack.c.b16 %v2322_v61, %v2322_v61  ;;  %v2506_v20 = vpack.c.b16 %v2502_v12, %v2502_v12  ;;  %v2530_v61 = vunpack.c.l.bf16 %v2512_v53 }
 0x222   : > { %v1511_v24 = vmul.f32 %v3923_v52, %v1481_v26  ;;  %v1501_v31 = vsel %vm1498_vm7, %v3922_v27, %v3923_v52  ;;  %v1500_v36 = vsel %vm1498_vm7, %v3918_v30, %v3922_v27  ;;  %v1499_v39 = vsel %vm1498_vm7, %v3917_v44, %v3918_v30 }
 0x223   : > { %v1507_v40 = vmul.f32 %v3917_v44, %v1477_v51  ;;  %v1509_v42 = vmul.f32 %v1500_v36, %v4458_v55  ;;  %v1510_v43 = vmul.f32 %v1501_v31, %v4460_v56  ;;  %v1508_v47 = vmul.f32 %v1499_v39, %v1478_v2 }
 0x224   : > { %v1514_v6 = vpack.c.bf16 %v1511_v24, %v1511_v24  ;;  %v2713_v51 = vunpack.c.l.bf16 %v2704_v23  ;;  %v2710_v55 = vunpack.c.l.bf16 %v4794_v17  ;;  %v2520_v56 = vperm.slane %v2518_v63, 0  ;;  %v2226_v24 = vld [vmem:[#allocation6 + $0x28] sm:$0x44] }
 0x225   : > { %v1513_v29 = vpack.c.bf16 %v1510_v43, %v1509_v42  ;;  %v1512_v26 = vpack.c.bf16 %v1508_v47, %v1507_v40  ;;  %v1705_v2 = vperm.slane %v1703_v16, 3  ;;  %v4817_v23 = vperm.slane %v2338_v60, 3  ;;  %v2225_v43 = vld [vmem:[#allocation6 + $0x20] sm:$0x44] }
 0x226   : > { %1522 = vrot.lane.b32.xlu1 %v1514_v6, %s4240_s28  ;;  %v3949_v10 = vpack.i.bf16 %v2713_v51, %v2712_v13  ;;  %v2532_v45 = vunpack.c.l.bf16 %v2520_v56  ;;  %v2342_v17 = vpack.i.b16 %v2328_v33, %v2328_v33  ;;  %v3944_v19 = vpack.i.bf16 %v2711_v7, %v2710_v55  ;;  %v2405_v33 = vld [vmem:[#allocation6 + $0x20] sm:$0x88] }
 0x227   : > { %1520 = vrot.lane.b32.xlu0 %v1513_v29, %s4240_s28  ;;  %1518 = vrot.lane.b32.xlu2 %v1512_v26, %s4240_s28  ;;  %v3964_v63 = vpack.i.bf16 %v4815_v14, %v4813_v25  ;;  %v2142_v52 = vunpack.c.h.b16 %v2137_v59  ;;  %v1718_v27 = vunpack.c.l.bf16 %v1705_v2  ;;  %v1719_v30 = vunpack.c.l.bf16 %v1710_v5 }
 0x228   : > { %v2145_v44 = vpack.c.b16 %v2141_v11, %v2141_v11  ;;  %v4828_v41 = vpack.i.bf16 %v2533_v48, %v2532_v45  ;;  %v2514_v35 = vpack.i.b16 %v2506_v20, %v2506_v20  ;;  %v2344_v31 = vperm.slane %v2342_v17, 3 }
 0x229   : > { %v2352_v36 = vunpack.c.l.bf16 %v4817_v23  ;;  %v2334_v9 = vpack.i.b16 %v2326_v18, %v2326_v18  ;;  %v2146_v39 = vpack.c.b16 %v2142_v52, %v2142_v52  ;;  %v2592_v40 = vunpack.c.h.b16 %v2586_v62  ;;  %v1958_v18 = vld [vmem:[#allocation6 + $0x28] sm:$0x22] }
 0x22a   : > { %v2595_v42 = vpack.c.b16 %v2591_v3, %v2591_v3  ;;  %v3939_v47 = vpack.i.bf16 %v1719_v30, %v1718_v27  ;;  %v2415_v6 = vpack.c.b16 %v2411_v28, %v2411_v28  ;;  %v2231_v58 = vunpack.c.l.b16 %v2226_v24  ;;  %v2045_v28 = vld [vmem:[#allocation6 + $0x20] sm:$0x22] }
 0x22b   : > { %v2516_v54 = vperm.slane %v2514_v35, 0  ;;  %v2596_v29 = vpack.c.b16 %v2592_v40, %v2592_v40  ;;  %v2336_v57 = vperm.slane %v2334_v9, 3  ;;  %v2232_v49 = vunpack.c.h.b16 %v2226_v24 }
 0x22c   : > { %v2608_v26 = vshrl.u32 %v2595_v42, 16  ;;  %v2353_v13 = vunpack.c.l.bf16 %v2344_v31  ;;  %v2154_v51 = vpack.i.b16 %v2146_v39, %v2146_v39  ;;  %v2230_v56 = vunpack.c.h.b16 %v2225_v43  ;;  %v2138_v31 = vld [vmem:[#allocation6 + $0x28] sm:$0x44] }
 0x22d   : > { %v2613_v55 = vshrl.u32 %v2596_v29, 16  ;;  %v2428_v16 = vshrl.u32 %v2415_v6, 16  ;;  %v2235_v59 = vpack.c.b16 %v2231_v58, %v2231_v58  ;;  %v2531_v37 = vunpack.c.l.bf16 %v2516_v54 }
 0x22e   : > { %3935 = vrot.lane.b32.xlu1 %v3934_v4, %s4238_s11  ;;  %v2332_v4 = vperm.slane %v2330_v21, 3  ;;  %v2609_v22 = vpack.i.b16 %v2608_v26, %v2608_v26  ;;  %v2351_v38 = vunpack.c.l.bf16 %v2336_v57  ;;  %v2433_v2 = vshrl.u32 %v2416_v46, 16 }
 0x22f   : > { %3930 = vrot.lane.b32.xlu0 %v4792_v1, %s4240_s28  ;;  %3925 = vrot.lane.b32.xlu2 %v3924_v34, %s4240_s28  ;;  %v2150_v1 = vpack.i.b16 %v2145_v44, %v2145_v44  ;;  %v2229_v34 = vunpack.c.l.b16 %v2225_v43  ;;  %v2614_v7 = vpack.i.b16 %v2613_v55, %v2613_v55  ;;  %v2236_v5 = vpack.c.b16 %v2232_v49, %v2232_v49  ;;  %s3405_s28 = sshll.u32 %s4383_s16, 5 }
 0x230   : > { %v2350_v60 = vunpack.c.l.bf16 %v2332_v4  ;;  %v3979_v12 = vpack.i.bf16 %v2353_v13, %v2352_v36  ;;  %v2234_v45 = vpack.c.b16 %v2230_v56, %v2230_v56  ;;  %v2409_v48 = vunpack.c.l.b16 %v2405_v33 }
 0x231   : > { %v4832_v15 = vperm.slane %v2150_v1, 2  ;;  %v2233_v11 = vpack.c.b16 %v2229_v34, %v2229_v34  ;;  %v2429_v8 = vpack.i.b16 %v2428_v16, %v2428_v16  ;;  %v2611_v23 = vperm.slane %v2609_v22, 0 }
 0x232   : > { %v2248_v17 = vshrl.u32 %v2235_v59, 16  ;;  %v3954_v20 = vpack.i.bf16 %v2531_v37, %v2530_v61  ;;  %v2616_v62 = vperm.slane %v2614_v7, 0  ;;  %v2413_v21 = vpack.c.b16 %v2409_v48, %v2409_v48 }
 0x233   : > { %v2170_v0 = vunpack.c.l.bf16 %v4832_v15  ;;  %v3974_v52 = vpack.i.bf16 %v2351_v38, %v2350_v60  ;;  %v2434_v27 = vpack.i.b16 %v2433_v2, %v2433_v2  ;;  %v2253_v30 = vshrl.u32 %v2236_v5, 16 }
 0x234   : > { %v2238_v44 = vshrl.u32 %v2233_v11, 16  ;;  %v2243_v32 = vshrl.u32 %v2234_v45, 16  ;;  %v2418_v3 = vshrl.u32 %v2413_v21, 16  ;;  %v1963_v24 = vunpack.c.l.b16 %v1958_v18  ;;  %v1774_v21 = vld [vmem:[#allocation6 + $0x28] sm:$0x11] }
 0x235   : > { %v2431_v36 = vperm.slane %v2429_v8, 3  ;;  %v2624_v9 = vunpack.c.l.bf16 %v2611_v23  ;;  %v2249_v50 = vpack.i.b16 %v2248_v17, %v2248_v17  ;;  %v1964_v4 = vunpack.c.h.b16 %v1958_v18 }
 0x236   : > { %3950 = vrot.lane.b32.xlu1 %v3949_v10, %s4231_s14  ;;  %v4836_v10 = vperm.slane %v2154_v51, 2  ;;  %v2625_v39 = vunpack.c.l.bf16 %v2616_v62  ;;  %v2419_v40 = vpack.i.b16 %v2418_v3, %v2418_v3  ;;  %v2049_v43 = vunpack.c.l.b16 %v2045_v28 }
 0x237   : > { %3945 = vrot.lane.b32.xlu0 %v3944_v19, %s4231_s14  ;;  %3940 = vrot.lane.b32.xlu2 %v3939_v47, %s4238_s11  ;;  %v2410_v19 = vunpack.c.h.b16 %v2405_v33  ;;  %v2254_v47 = vpack.i.b16 %v2253_v30, %v2253_v30  ;;  %v2239_v1 = vpack.i.b16 %v2238_v44, %v2238_v44  ;;  %v2050_v6 = vunpack.c.h.b16 %v2045_v28  ;;  %s5429_s11 = smov 121  }
 0x238   : > { %v2143_v58 = vunpack.c.l.b16 %v2138_v31  ;;  %v2244_v53 = vpack.i.b16 %v2243_v32, %v2243_v32  ;;  %v1967_v14 = vpack.c.b16 %v1963_v24, %v1963_v24  ;;  %v2436_v54 = vperm.slane %v2434_v27, 3 }
 0x239   : > { %v2414_v35 = vpack.c.b16 %v2410_v19, %v2410_v19  ;;  %v2421_v29 = vperm.slane %v2419_v40, 3  ;;  %v1968_v26 = vpack.c.b16 %v1964_v4, %v1964_v4  ;;  %v2144_v57 = vunpack.c.h.b16 %v2138_v31 }
 0x23a   : > { %v3969_v46 = vpack.i.bf16 %v2625_v39, %v2624_v9  ;;  %v2054_v49 = vpack.c.b16 %v2050_v6, %v2050_v6  ;;  %v2147_v34 = vpack.c.b16 %v2143_v58, %v2143_v58  ;;  %v2171_v13 = vunpack.c.l.bf16 %v4836_v10  ;;  %v1773_v10 = vld [vmem:[#allocation6 + $0x20] sm:$0x11]  ;;  %v1864_v9 = vld [vmem:[#allocation6 + $0x28] sm:$0x11] }
 0x23b   : > { %v2423_v42 = vshrl.u32 %v2414_v35, 16  ;;  %v2251_v51 = vperm.slane %v2249_v50, 2  ;;  %v2148_v56 = vpack.c.b16 %v2144_v57, %v2144_v57  ;;  %v2256_v16 = vperm.slane %v2254_v47, 2  ;;  %v1957_v35 = vld [vmem:[#allocation6 + $0x20] sm:$0x22] }
 0x23c   : > { %v2241_v22 = vperm.slane %v2239_v1, 2  ;;  %v2246_v59 = vperm.slane %v2244_v53, 2  ;;  %v1978_v33 = vpack.i.b16 %v1967_v14, %v1967_v14  ;;  %v2444_v60 = vunpack.c.l.bf16 %v2431_v36  ;;  %v2046_v47 = vld [vmem:[#allocation6 + $0x28] sm:$0x22] }
 0x23d   : > { %v2424_v25 = vpack.i.b16 %v2423_v42, %v2423_v42  ;;  %v2445_v61 = vunpack.c.l.bf16 %v2436_v54  ;;  %v2442_v37 = vunpack.c.l.bf16 %v2421_v29  ;;  %v1982_v7 = vpack.i.b16 %v1968_v26, %v1968_v26 }
 0x23e   : > { %3965 = vrot.lane.b32.xlu1 %v3964_v63, %s4232_s17  ;;  %v2053_v63 = vpack.c.b16 %v2049_v43, %v2049_v43  ;;  %v2063_v2 = vshrl.u32 %v2054_v49, 16  ;;  %v2158_v5 = vpack.i.b16 %v2147_v34, %v2147_v34  ;;  %v2162_v11 = vpack.i.b16 %v2148_v56, %v2148_v56 }
 0x23f   : > { %3960 = vrot.lane.b32.xlu0 %v4828_v41, %s4229_s29  ;;  %3955 = vrot.lane.b32.xlu2 %v3954_v20, %s4229_s29  ;;  %v2426_v41 = vperm.slane %v2424_v25, 3  ;;  %v2264_v45 = vunpack.c.l.bf16 %v2251_v51  ;;  %v2265_v8 = vunpack.c.l.bf16 %v2256_v16  ;;  %v2262_v23 = vunpack.c.l.bf16 %v2241_v22 }
 0x240   : > { %v2058_v55 = vshrl.u32 %v2053_v63, 16  ;;  %v2263_v17 = vunpack.c.l.bf16 %v2246_v59  ;;  %v4850_v18 = vperm.slane %v1978_v33, 1  ;;  %v3989_v20 = vpack.i.bf16 %v2445_v61, %v2444_v60 }
 0x241   : > { %v2443_v38 = vunpack.c.l.bf16 %v2426_v41  ;;  %v1984_v62 = vperm.slane %v1982_v7, 1  ;;  %v1777_v19 = vunpack.c.l.b16 %v1773_v10  ;;  %v2064_v27 = vpack.i.b16 %v2063_v2, %v2063_v2 }
 0x242   : > { %v2059_v48 = vpack.i.b16 %v2058_v55, %v2058_v55  ;;  %v2160_v30 = vperm.slane %v2158_v5, 2  ;;  %v2164_v44 = vperm.slane %v2162_v11, 2  ;;  %v1778_v32 = vunpack.c.h.b16 %v1773_v10 }
 0x243   : > { %v4009_v3 = vpack.i.bf16 %v2265_v8, %v2264_v45  ;;  %v4004_v24 = vpack.i.bf16 %v2263_v17, %v2262_v23  ;;  %v1992_v31 = vunpack.c.l.bf16 %v4850_v18  ;;  %v1779_v36 = vunpack.c.l.b16 %v1774_v21 }
 0x244   : > { %v2061_v28 = vperm.slane %v2059_v48, 1  ;;  %v1993_v15 = vunpack.c.l.bf16 %v1984_v62  ;;  %v1961_v50 = vunpack.c.l.b16 %v1957_v35  ;;  %v1962_v4 = vunpack.c.h.b16 %v1957_v35 }
 0x245   : > { %v2066_v39 = vperm.slane %v2064_v27, 1  ;;  %v2172_v40 = vunpack.c.l.bf16 %v2160_v30  ;;  %v2173_v42 = vunpack.c.l.bf16 %v2164_v44  ;;  %v1781_v43 = vpack.c.b16 %v1777_v19, %v1777_v19 }
 0x246   : > { %3980 = vrot.lane.b32.xlu1 %v3979_v12, %s4230_s9  ;;  %v3994_v12 = vpack.i.bf16 %v2171_v13, %v2170_v0  ;;  %v1780_v0 = vunpack.c.h.b16 %v1774_v21  ;;  %v2082_v1 = vunpack.c.l.bf16 %v2061_v28  ;;  %v1782_v6 = vpack.c.b16 %v1778_v32, %v1778_v32 }
 0x247   : > { %3975 = vrot.lane.b32.xlu0 %v3974_v52, %s4230_s9  ;;  %3970 = vrot.lane.b32.xlu2 %v3969_v46, %s4232_s17  ;;  %v3984_v52 = vpack.i.bf16 %v2443_v38, %v2442_v37  ;;  %v1965_v58 = vpack.c.b16 %v1961_v50, %v1961_v50  ;;  %v1966_v53 = vpack.c.b16 %v1962_v4, %v1962_v4  ;;  %v1869_v14 = vunpack.c.l.b16 %v1864_v9 }
 0x248   : > { %v1783_v25 = vpack.c.b16 %v1779_v36, %v1779_v36  ;;  %v1870_v63 = vunpack.c.h.b16 %v1864_v9  ;;  %v2051_v54 = vunpack.c.l.b16 %v2046_v47  ;;  %v1784_v29 = vpack.c.b16 %v1780_v0, %v1780_v0 }
 0x249   : > { %v1970_v26 = vpack.i.b16 %v1965_v58, %v1965_v58  ;;  %v1974_v57 = vpack.i.b16 %v1966_v53, %v1966_v53  ;;  %v2052_v46 = vunpack.c.h.b16 %v2046_v47  ;;  %v2083_v41 = vunpack.c.l.bf16 %v2066_v39 }
 0x24a   : > { %v3999_v49 = vpack.i.bf16 %v2173_v42, %v2172_v40  ;;  %v1786_v34 = vpack.i.b16 %v1781_v43, %v1781_v43  ;;  %v2055_v13 = vpack.c.b16 %v2051_v54, %v2051_v54  ;;  %v1790_v51 = vpack.i.b16 %v1782_v6, %v1782_v6  ;;  %v1538_v54 = vld [vmem:[#allocation6 + $0x10] sm:$0x44] }
 0x24b   : > { %v1972_v55 = vperm.slane %v1970_v26, 1  ;;  %v1976_v56 = vperm.slane %v1974_v57, 1  ;;  %v2056_v16 = vpack.c.b16 %v2052_v46, %v2052_v46  ;;  %v1794_v22 = vpack.i.b16 %v1783_v25, %v1783_v25 }
 0x24c   : > { %v1873_v59 = vpack.c.b16 %v1869_v14, %v1869_v14  ;;  %v1874_v33 = vpack.c.b16 %v1870_v63, %v1870_v63  ;;  %v2068_v60 = vshrl.u32 %v2055_v13, 16  ;;  %v1798_v61 = vpack.i.b16 %v1784_v29, %v1784_v29 }
 0x24d   : > { %v1990_v37 = vunpack.c.l.bf16 %v1972_v55  ;;  %v1991_v7 = vunpack.c.l.bf16 %v1976_v56  ;;  %v2073_v38 = vshrl.u32 %v2056_v16, 16  ;;  %v4019_v5 = vpack.i.bf16 %v1993_v15, %v1992_v31 }
 0x24e   : > { %3995 = vrot.lane.b32.xlu1 %v3994_v12, %s4224_s4  ;;  %v2069_v2 = vpack.i.b16 %v2068_v60, %v2068_v60  ;;  %v4024_v10 = vpack.i.bf16 %v2083_v41, %v2082_v1  ;;  %v1788_v45 = vperm.slane %v1786_v34, 0  ;;  %v1792_v48 = vperm.slane %v1790_v51, 0  ;;  %v1586_v51 = vld [vmem:[%s4387_s13 + $0x4] sm:$0xff] }
 0x24f   : > { %3990 = vrot.lane.b32.xlu0 %v3989_v20, %s4227_s6  ;;  %3985 = vrot.lane.b32.xlu2 %v3984_v52, %s4227_s6  ;;  %v2074_v11 = vpack.i.b16 %v2073_v38, %v2073_v38  ;;  %v1796_v8 = vperm.slane %v1794_v22, 0  ;;  %v1800_v23 = vperm.slane %v1798_v61, 0  ;;  %v1886_v17 = vshrl.u32 %v1873_v59, 16  ;;  %v1863_v20 = vld [vmem:[#allocation6 + $0x20] sm:$0x11] }
 0x250   : > { %v1891_v18 = vshrl.u32 %v1874_v33, 16  ;;  %v4014_v12 = vpack.i.bf16 %v1991_v7, %v1990_v37  ;;  %v2071_v62 = vperm.slane %v2069_v2, 1  ;;  %v1867_v21 = vunpack.c.l.b16 %v1863_v20 }
 0x251   : > { %v2076_v19 = vperm.slane %v2074_v11, 1  ;;  %v1868_v52 = vunpack.c.h.b16 %v1863_v20  ;;  %v1806_v27 = vunpack.c.l.bf16 %v1788_v45  ;;  %v1807_v30 = vunpack.c.l.bf16 %v1792_v48 }
 0x252   : > { %v1871_v44 = vpack.c.b16 %v1867_v21, %v1867_v21  ;;  %v1808_v32 = vunpack.c.l.bf16 %v1796_v8  ;;  %v1809_v35 = vunpack.c.l.bf16 %v1800_v23  ;;  %v2084_v31 = vunpack.c.l.bf16 %v2071_v62 }
 0x253   : > { %v1872_v28 = vpack.c.b16 %v1868_v52, %v1868_v52  ;;  %v2085_v36 = vunpack.c.l.bf16 %v2076_v19  ;;  %v4034_v4 = vpack.i.bf16 %v1807_v30, %v1806_v27  ;;  %v1542_v29 = vunpack.c.l.b16 %v1538_v54  ;;  %v1677_v52 = vld [vmem:[%s4387_s13 + $0xc] sm:$0xff] }
 0x254   : > { %v1876_v15 = vshrl.u32 %v1871_v44, 16  ;;  %v4039_v39 = vpack.i.bf16 %v1809_v35, %v1808_v32  ;;  %v1543_v26 = vunpack.c.h.b16 %v1538_v54  ;;  %v4870_v16 = vunpack.c.l.bf16 %v1586_v51  ;;  %v1539_v44 = vld [vmem:[#allocation6 + $0x18] sm:$0x44] }
 0x255   : > { %v1881_v0 = vshrl.u32 %v1872_v28, 16  ;;  %v4029_v43 = vpack.i.bf16 %v2085_v36, %v2084_v31  ;;  %v1546_v57 = vpack.c.b16 %v1542_v29, %v1542_v29  ;;  %v4872_v22 = vunpack.c.h.bf16 %v1586_v51 }
 0x256   : > { %4010 = vrot.lane.b32.xlu1 %v4009_v3, %s4226_s27  ;;  %v1887_v3 = vpack.i.b16 %v1886_v17, %v1886_v17  ;;  %v1877_v9 = vpack.i.b16 %v1876_v15, %v1876_v15  ;;  %v1547_v46 = vpack.c.b16 %v1543_v26, %v1543_v26  ;;  %v4891_v35 = vunpack.c.h.bf16 %v1677_v52 }
 0x257   : > { %4005 = vrot.lane.b32.xlu0 %v4004_v24, %s4226_s27  ;;  %4000 = vrot.lane.b32.xlu2 %v3999_v49, %s4224_s4  ;;  %v1892_v24 = vpack.i.b16 %v1891_v18, %v1891_v18  ;;  %v1882_v50 = vpack.i.b16 %v1881_v0, %v1881_v0  ;;  %v1551_v41 = vshrl.u32 %v1546_v57, 16 }
 0x258   : > { %v1889_v40 = vperm.slane %v1887_v3, 0  ;;  %v1879_v47 = vperm.slane %v1877_v9, 0  ;;  %v1556_v49 = vshrl.u32 %v1547_v46, 16 }
 0x259   : > { %v1894_v42 = vperm.slane %v1892_v24, 0  ;;  %v1884_v1 = vperm.slane %v1882_v50, 0  ;;  %v1552_v34 = vpack.i.b16 %v1551_v41, %v1551_v41  ;;  %v1544_v24 = vunpack.c.l.b16 %v1539_v44 }
 0x25a   : > { %v1902_v6 = vunpack.c.l.bf16 %v1889_v40  ;;  %v1900_v53 = vunpack.c.l.bf16 %v1879_v47  ;;  %v1557_v13 = vpack.i.b16 %v1556_v49, %v1556_v49 }
 0x25b   : > { %v1903_v58 = vunpack.c.l.bf16 %v1894_v42  ;;  %v1901_v25 = vunpack.c.l.bf16 %v1884_v1  ;;  %v1554_v55 = vperm.slane %v1552_v34, 2 }
 0x25c   : > { %v1559_v56 = vperm.slane %v1557_v13, 2 }
 0x25d   : > { %v4049_v14 = vpack.i.bf16 %v1903_v58, %v1902_v6  ;;  %v4044_v63 = vpack.i.bf16 %v1901_v25, %v1900_v53  ;;  %v1574_v59 = vunpack.c.l.bf16 %v1554_v55  ;;  %v1548_v58 = vpack.c.b16 %v1544_v24, %v1544_v24 }
 0x25e   : > { %4025 = vrot.lane.b32.xlu1 %v4024_v10, %s4228_s12  ;;  %v1575_v33 = vunpack.c.l.bf16 %v1559_v56 }
 0x25f   : > { %4020 = vrot.lane.b32.xlu0 %v4019_v5, %s4225_s24  ;;  %4015 = vrot.lane.b32.xlu2 %v4014_v12, %s4225_s24  ;;  %v1578_v60 = vmul.f32 %v4870_v16, %v1574_v59  ;;  %v1561_v13 = vshrl.u32 %v1548_v58, 16 }
 0x260   : > { %v1579_v61 = vmul.f32 %v4872_v22, %v1575_v33 }
 0x262   : > { %v1582_v37 = vpack.c.bf16 %v1579_v61, %v1578_v60 }
 0x264   : > { %1584 = vst [vmem:[#allocation2 + $0xd0] sm:$0xff] %v1582_v37 }
 0x266   : > { %4040 = vrot.lane.b32.xlu1 %v4039_v39, %s4235_s8  ;;  %v1545_v39 = vunpack.c.h.b16 %v1539_v44 }
 0x267   : > { %4035 = vrot.lane.b32.xlu0 %v4034_v4, %s4235_s8  ;;  %4030 = vrot.lane.b32.xlu2 %v4029_v43, %s4228_s12  ;;  %v4900_v4 = vunpack.c.l.bf16 %v1677_v52  ;;  %s4137_s8 = scalar_lea.hbm %s5406_s5, 128 }
 0x268   : > { %v1549_v46 = vpack.c.b16 %v1545_v39, %v1545_v39 }
 0x26f   : > { %4050 = vrot.lane.b32.xlu0 %v4049_v14, %s4236_s15  ;;  %4045 = vrot.lane.b32.xlu2 %v4044_v63, %s4236_s15 }
 0x281   : > { %v1519_v7 = vpop.permute.xlu2 %1518 }
 0x282   : > { %v1524_v12 = vrot.slane %v1519_v7, 4 }
 0x289   : > { %v3926_v38 = vpop.permute.xlu2 %3925 }
 0x28a   : > { %v3928_v2 = vunpack.i.h.bf16 %v3926_v38  ;;  %v3927_v5 = vunpack.i.l.bf16 %v3926_v38 }
 0x28c   : > { %v1639_v11 = vsel %vm1528_vm10, %v3927_v5, %v3928_v2  ;;  %v1647_v10 = vmul.f32 %v3927_v5, %v4870_v16 }
 0x28d   : > { %v1648_v45 = vmul.f32 %v1639_v11, %v4872_v22  ;;  %v1562_v11 = vpack.i.b16 %v1561_v13, %v1561_v13 }
 0x28f   : > { %v1652_v48 = vpack.c.bf16 %v1648_v45, %v1647_v10 }
 0x291   : > { %1658 = vrot.lane.b32.xlu1 %v1652_v48, %s4239_s30  ;;  %v4880_v8 = vpop.permute.xlu2 %3940 }
 0x292   : > { %v3943_v19 = vunpack.i.h.bf16 %v4880_v8  ;;  %v3942_v21 = vunpack.i.l.bf16 %v4880_v8 }
 0x294   : > { %v1735_v3 = vsel %vm1438_vm15, %v3942_v21, %v3943_v19 }
 0x295   : > { %v1744_v43 = vmul.f32 %v1735_v3, %v4891_v35 }
 0x298   : > { %v1523_v23 = vpop.permute.xlu1 %1522 }
 0x299   : > { %v1526_v17 = vrot.slane %v1523_v23, 4  ;;  %v1521_v18 = vpop.permute.xlu0 %1520  ;;  %v4882_v62 = vpop.permute.xlu2 %3955 }
 0x29a   : > { %v1525_v20 = vrot.slane %v1521_v18, 4  ;;  %v3958_v36 = vunpack.i.h.bf16 %v4882_v62  ;;  %v3957_v15 = vunpack.i.l.bf16 %v4882_v62 }
 0x29c   : > { %v1527_v27 = vsel %vm422_vm11, %v1524_v12, %v1525_v20  ;;  %v1530_v30 = vsel %vm422_vm11, %v1525_v20, %v1526_v17  ;;  %v2546_v63 = vsel %vm608_vm5, %v3957_v15, %v3958_v36  ;;  %v2554_v55 = vmul.f32 %v3957_v15, %v4870_v16 }
 0x29d   : > { %v1529_v28 = vsel %vm1528_vm10, %v1519_v7, %v1527_v27  ;;  %v1531_v32 = vsel %vm1528_vm10, %v1521_v18, %v1530_v30  ;;  %v2555_v59 = vmul.f32 %v2546_v63, %v4872_v22  ;;  %v1566_v7 = vshrl.u32 %v1549_v46, 16  ;;  %v1537_v27 = vld [vmem:[%s4387_s13 + $0xc] sm:$0xff] }
 0x29e   : > { %1534 = vst [vmem:[#allocation2 + $0xc0] sm:$0xff] %v1529_v28  ;;  %v1564_v28 = vperm.slane %v1562_v11, 2  ;;  %v1572_v39 = vunpack.c.l.bf16 %v1537_v27 }
 0x29f   : > { %1535 = vst [vmem:[#allocation2 + $0xc8] sm:$0xff] %v1531_v32  ;;  %v1567_v10 = vpack.i.b16 %v1566_v7, %v1566_v7  ;;  %v2559_v12 = vpack.c.bf16 %v2555_v59, %v2554_v55 }
 0x2a0   : > { %v3936_v31 = vpop.permute.xlu1 %3935 }
 0x2a1   : > { %v3938_v0 = vunpack.i.h.bf16 %v3936_v31  ;;  %v3937_v9 = vunpack.i.l.bf16 %v3936_v31  ;;  %v4898_v50 = vpop.permute.xlu0 %3930  ;;  %v4916_v54 = vpop.permute.xlu2 %3970  ;;  %v1569_v24 = vperm.slane %v1567_v10, 2 }
 0x2a2   : > { %v3933_v40 = vunpack.i.h.bf16 %v4898_v50  ;;  %v3932_v42 = vunpack.i.l.bf16 %v4898_v50  ;;  %v3973_v56 = vunpack.i.h.bf16 %v4916_v54  ;;  %v3972_v37 = vunpack.i.l.bf16 %v4916_v54 }
 0x2a3   : > { %v1733_v47 = vsel %vm1438_vm15, %v3937_v9, %v3938_v0  ;;  %v1741_v1 = vmul.f32 %v3937_v9, %v4870_v16  ;;  %v1734_v6 = vsel %vm1438_vm15, %v3938_v0, %v3942_v21 }
 0x2a4   : > { %v1640_v53 = vsel %vm1528_vm10, %v3928_v2, %v3932_v42  ;;  %v1641_v25 = vsel %vm1528_vm10, %v3932_v42, %v3933_v40  ;;  %v1742_v14 = vmul.f32 %v1733_v47, %v4872_v22  ;;  %v1743_v29 = vmul.f32 %v1734_v6, %v4900_v4 }
 0x2a5   : > { %v1649_v26 = vmul.f32 %v4900_v4, %v1640_v53  ;;  %v1650_v57 = vmul.f32 %v4891_v35, %v1641_v25  ;;  %v2640_v18 = vsel %vm518_vm9, %v3972_v37, %v3973_v56  ;;  %v1576_v25 = vunpack.c.l.bf16 %v1564_v28 }
 0x2a6   : > { %v1746_v41 = vpack.c.bf16 %v1742_v14, %v1741_v1  ;;  %v1747_v49 = vpack.c.bf16 %v1744_v43, %v1743_v29  ;;  %v2649_v3 = vmul.f32 %v2640_v18, %v4891_v35  ;;  %v1573_v1 = vunpack.c.h.bf16 %v1537_v27 }
 0x2a7   : > { %v1653_v34 = vpack.c.bf16 %v1650_v57, %v1649_v26  ;;  %v1577_v26 = vunpack.c.l.bf16 %v1569_v24  ;;  %v1580_v13 = vmul.f32 %v1576_v25, %v1572_v39  ;;  %v2676_v25 = vld [vmem:[%s4387_s13 + $0x14] sm:$0xf] }
 0x2a8   : > { %v4921_v51 = vpop.permute.xlu1 %3950  ;;  %1752 = vrot.lane.b32.xlu0 %v1746_v41, %s5429_s11  ;;  %1754 = vrot.lane.b32.xlu1 %v1747_v49, %s5429_s11 }
 0x2a9   : > { %v3953_v33 = vunpack.i.h.bf16 %v4921_v51  ;;  %v3952_v60 = vunpack.i.l.bf16 %v4921_v51  ;;  %v3946_v61 = vpop.permute.xlu0 %3945  ;;  %1660 = vrot.lane.b32.xlu2 %v1653_v34, %s4239_s30  ;;  %v4944_v52 = vpop.permute.xlu2 %3985 }
 0x2aa   : > { %v3948_v38 = vunpack.i.h.bf16 %v3946_v61  ;;  %v3947_v2 = vunpack.i.l.bf16 %v3946_v61  ;;  %v3988_v9 = vunpack.i.h.bf16 %v4944_v52  ;;  %v3987_v47 = vunpack.i.l.bf16 %v4944_v52 }
 0x2ab   : > { %v2728_v5 = vsel %vm424_vm6, %v3952_v60, %v3953_v33 }
 0x2ac   : > { %v2727_v45 = vsel %vm424_vm6, %v3948_v38, %v3952_v60  ;;  %v2726_v48 = vsel %vm424_vm6, %v3947_v2, %v3948_v38  ;;  %v2734_v23 = vmul.f32 %v3947_v2, %v4870_v16  ;;  %v2737_v17 = vmul.f32 %v2728_v5, %v4891_v35 }
 0x2ad   : > { %v2736_v20 = vmul.f32 %v2727_v45, %v4900_v4  ;;  %v2735_v21 = vmul.f32 %v2726_v48, %v4872_v22  ;;  %v2458_v49 = vsel %vm702_vm0, %v3987_v47, %v3988_v9  ;;  %v1581_v60 = vmul.f32 %v1577_v26, %v1573_v1 }
 0x2ae   : > { %v2466_v7 = vmul.f32 %v3987_v47, %v4870_v16  ;;  %v2467_v2 = vmul.f32 %v2458_v49, %v4872_v22  ;;  %v2709_v49 = vunpack.c.l.bf16 %v2676_v25 }
 0x2af   : > { %v2740_v30 = vpack.c.bf16 %v2737_v17, %v2736_v20  ;;  %v2739_v44 = vpack.c.bf16 %v2735_v21, %v2734_v23  ;;  %v1583_v23 = vpack.c.bf16 %v1581_v60, %v1580_v13 }
 0x2b0   : > { %v3966_v32 = vpop.permute.xlu1 %3965  ;;  %2565 = vrot.lane.b32.xlu1 %v2559_v12, %s4224_s4  ;;  %v2471_v21 = vpack.c.bf16 %v2467_v2, %v2466_v7  ;;  %v2738_v2 = vmul.f32 %v3953_v33, %v2709_v49 }
 0x2b1   : > { %v3968_v31 = vunpack.i.h.bf16 %v3966_v32  ;;  %v3967_v15 = vunpack.i.l.bf16 %v3966_v32  ;;  %v4949_v0 = vpop.permute.xlu0 %3960  ;;  %2747 = vrot.lane.b32.xlu0 %v2740_v30, %s4225_s24  ;;  %2745 = vrot.lane.b32.xlu2 %v2739_v44, %s4225_s24  ;;  %v4975_v59 = vpop.permute.xlu2 %4000  ;;  %1585 = vst [vmem:[#allocation2 + $0xd8] sm:$0xff] %v1583_v23 }
 0x2b2   : > { %v3963_v42 = vunpack.i.h.bf16 %v4949_v0  ;;  %v3962_v43 = vunpack.i.l.bf16 %v4949_v0  ;;  %v4003_v45 = vunpack.i.h.bf16 %v4975_v59  ;;  %v4002_v48 = vunpack.i.l.bf16 %v4975_v59  ;;  %v1956_v0 = vld [vmem:[%s4387_s13 + $0x14] sm:$0xf] }
 0x2b3   : > { %v2638_v6 = vsel %vm518_vm9, %v3967_v15, %v3968_v31  ;;  %v2646_v58 = vmul.f32 %v3967_v15, %v4870_v16  ;;  %v2639_v53 = vsel %vm518_vm9, %v3968_v31, %v3972_v37  ;;  %v1862_v59 = vld [vmem:[%s4387_s13 + $0x14] sm:$0xf] }
 0x2b4   : > { %v2547_v14 = vsel %vm608_vm5, %v3958_v36, %v3962_v43  ;;  %v2548_v63 = vsel %vm608_vm5, %v3962_v43, %v3963_v42  ;;  %v2648_v29 = vmul.f32 %v2639_v53, %v4900_v4  ;;  %v2647_v57 = vmul.f32 %v2638_v6, %v4872_v22 }
 0x2b5   : > { %v2556_v46 = vmul.f32 %v2547_v14, %v4900_v4  ;;  %v2557_v41 = vmul.f32 %v2548_v63, %v4891_v35  ;;  %v2188_v44 = vsel %vm578_vm4, %v4002_v48, %v4003_v45 }
 0x2b6   : > { %v2652_v62 = vpack.c.bf16 %v2649_v3, %v2648_v29  ;;  %v2651_v34 = vpack.c.bf16 %v2647_v57, %v2646_v58  ;;  %v2197_v47 = vmul.f32 %v2188_v44, %v4891_v35 }
 0x2b7   : > { %v2560_v36 = vpack.c.bf16 %v2557_v41, %v2556_v46 }
 0x2b8   : > { %v4973_v55 = vpop.permute.xlu1 %3980  ;;  %2659 = vrot.lane.b32.xlu1 %v2652_v62, %s4228_s12 }
 0x2b9   : > { %v3983_v61 = vunpack.i.h.bf16 %v4973_v55  ;;  %v3982_v37 = vunpack.i.l.bf16 %v4973_v55  ;;  %v3976_v38 = vpop.permute.xlu0 %3975  ;;  %2657 = vrot.lane.b32.xlu0 %v2651_v34, %s4228_s12  ;;  %2567 = vrot.lane.b32.xlu2 %v2560_v36, %s4224_s4  ;;  %v5006_v1 = vpop.permute.xlu2 %4015 }
 0x2ba   : > { %v3978_v5 = vunpack.i.h.bf16 %v3976_v38  ;;  %v3977_v11 = vunpack.i.l.bf16 %v3976_v38  ;;  %v4018_v7 = vunpack.i.h.bf16 %v5006_v1  ;;  %v4017_v38 = vunpack.i.l.bf16 %v5006_v1 }
 0x2bb   : > { %v2368_v10 = vsel %vm762_vm3, %v3982_v37, %v3983_v61 }
 0x2bc   : > { %v2367_v17 = vsel %vm762_vm3, %v3978_v5, %v3982_v37  ;;  %v2366_v18 = vsel %vm762_vm3, %v3977_v11, %v3978_v5  ;;  %v2374_v12 = vmul.f32 %v3977_v11, %v4870_v16  ;;  %v2377_v20 = vmul.f32 %v2368_v10, %v4891_v35  ;;  %v1678_v11 = vld [vmem:[%s4387_s13 + $0x14] sm:$0xf] }
 0x2bd   : > { %v2376_v27 = vmul.f32 %v2367_v17, %v4900_v4  ;;  %v2375_v30 = vmul.f32 %v2366_v18, %v4872_v22  ;;  %v2006_v33 = vsel %vm393_vm2, %v4017_v38, %v4018_v7 }
 0x2bf   : > { %v2380_v28 = vpack.c.bf16 %v2377_v20, %v2376_v27  ;;  %v2379_v32 = vpack.c.bf16 %v2375_v30, %v2374_v12  ;;  %v1588_v12 = vld [vmem:[%s4387_s13 + $0x14] sm:$0xf]  ;;  %v2741_v27 = vpack.c.bf16 %v2738_v2, %v2738_v2 }
 0x2c0   : > { %v3996_v3 = vpop.permute.xlu1 %3995  ;;  %2477 = vrot.lane.b32.xlu1 %v2471_v21, %s4226_s27  ;;  %v1715_v21 = vunpack.c.l.bf16 %v1678_v11 }
 0x2c1   : > { %v3998_v24 = vunpack.i.h.bf16 %v3996_v3  ;;  %v3997_v31 = vunpack.i.l.bf16 %v3996_v3  ;;  %v4999_v15 = vpop.permute.xlu0 %3990  ;;  %2387 = vrot.lane.b32.xlu0 %v2380_v28, %s4230_s9  ;;  %2385 = vrot.lane.b32.xlu2 %v2379_v32, %s4230_s9  ;;  %v5041_v18 = vpop.permute.xlu2 %4030  ;;  %v1621_v28 = vunpack.c.l.bf16 %v1588_v12  ;;  %v2014_v3 = vmul.f32 %v4017_v38, %v4870_v16 }
 0x2c2   : > { %v3993_v39 = vunpack.i.h.bf16 %v4999_v15  ;;  %v3992_v43 = vunpack.i.l.bf16 %v4999_v15  ;;  %v1772_v15 = vld [vmem:[%s4387_s13 + $0x14] sm:$0xf] }
 0x2c3   : > { %v2186_v6 = vsel %vm578_vm4, %v3997_v31, %v3998_v24  ;;  %v2194_v58 = vmul.f32 %v3997_v31, %v4870_v16  ;;  %v2187_v53 = vsel %vm578_vm4, %v3998_v24, %v4002_v48  ;;  %v4033_v31 = vunpack.i.h.bf16 %v5041_v18 }
 0x2c4   : > { %v2459_v14 = vsel %vm702_vm0, %v3988_v9, %v3992_v43  ;;  %v2460_v63 = vsel %vm702_vm0, %v3992_v43, %v3993_v39  ;;  %v2196_v29 = vmul.f32 %v2187_v53, %v4900_v4  ;;  %v2195_v26 = vmul.f32 %v2186_v6, %v4872_v22 }
 0x2c5   : > { %v2468_v57 = vmul.f32 %v2459_v14, %v4900_v4  ;;  %v2469_v46 = vmul.f32 %v2460_v63, %v4891_v35  ;;  %v4032_v43 = vunpack.i.l.bf16 %v5041_v18  ;;  %v1651_v53 = vmul.f32 %v3933_v40, %v1621_v28 }
 0x2c6   : > { %v2200_v41 = vpack.c.bf16 %v2197_v47, %v2196_v29  ;;  %v2199_v62 = vpack.c.bf16 %v2195_v26, %v2194_v58  ;;  %v2015_v47 = vmul.f32 %v2006_v33, %v4872_v22  ;;  %v1745_v58 = vmul.f32 %v3943_v19, %v1715_v21 }
 0x2c7   : > { %v2472_v34 = vpack.c.bf16 %v2469_v46, %v2468_v57  ;;  %v2100_v63 = vsel %vm488_vm1, %v4032_v43, %v4033_v31  ;;  %v1654_v50 = vpack.c.bf16 %v1651_v53, %v1651_v53 }
 0x2c8   : > { %v5022_v52 = vpop.permute.xlu1 %4010  ;;  %2207 = vrot.lane.b32.xlu1 %v2200_v41, %s4229_s29  ;;  %v2019_v29 = vpack.c.bf16 %v2015_v47, %v2014_v3  ;;  %v1748_v41 = vpack.c.bf16 %v1745_v58, %v1745_v58  ;;  %v2109_v40 = vmul.f32 %v2100_v63, %v4891_v35  ;;  %v2496_v47 = vld [vmem:[%s4387_s13 + $0x14] sm:$0xf] }
 0x2c9   : > { %v4013_v9 = vunpack.i.h.bf16 %v5022_v52  ;;  %v4012_v36 = vunpack.i.l.bf16 %v5022_v52  ;;  %v4006_v13 = vpop.permute.xlu0 %4005  ;;  %2205 = vrot.lane.b32.xlu0 %v2199_v62, %s4229_s29  ;;  %2479 = vrot.lane.b32.xlu2 %v2472_v34, %s4226_s27  ;;  %v4046_v46 = vpop.permute.xlu2 %4045 }
 0x2ca   : > { %v4008_v60 = vunpack.i.h.bf16 %v4006_v13  ;;  %v4007_v37 = vunpack.i.l.bf16 %v4006_v13 }
 0x2cb   : > { %v2280_v5 = vsel %vm672_vm8, %v4012_v36, %v4013_v9 }
 0x2cc   : > { %v2279_v10 = vsel %vm672_vm8, %v4008_v60, %v4012_v36  ;;  %v2278_v48 = vsel %vm672_vm8, %v4007_v37, %v4008_v60  ;;  %v2286_v23 = vmul.f32 %v4007_v37, %v4870_v16  ;;  %v2289_v17 = vmul.f32 %v2280_v5, %v4891_v35 }
 0x2cd   : > { %v2288_v20 = vmul.f32 %v2279_v10, %v4900_v4  ;;  %v2287_v51 = vmul.f32 %v2278_v48, %v4872_v22  ;;  %v4048_v36 = vunpack.i.h.bf16 %v4046_v46 }
 0x2cf   : > { %v2292_v30 = vpack.c.bf16 %v2289_v17, %v2288_v20  ;;  %v2291_v44 = vpack.c.bf16 %v2287_v51, %v2286_v23 }
 0x2d0   : > { %v4026_v32 = vpop.permute.xlu1 %4025  ;;  %2749 = vrot.lane.b32.xlu1 %v2741_v27, %s4225_s24  ;;  %s5430_s24 = smov 119  }
 0x2d1   : > { %2299 = vrot.lane.b32.xlu0 %v2292_v30, %s4227_s6  ;;  %v5050_v24 = vpop.permute.xlu0 %4020  ;;  %2297 = vrot.lane.b32.xlu2 %v2291_v44, %s4227_s6  ;;  %v4028_v1 = vunpack.i.h.bf16 %v4026_v32  ;;  %v4027_v6 = vunpack.i.l.bf16 %v4026_v32 }
 0x2d2   : > { %v4022_v25 = vunpack.i.l.bf16 %v5050_v24  ;;  %v4023_v14 = vunpack.i.h.bf16 %v5050_v24 }
 0x2d3   : > { %v2098_v26 = vsel %vm488_vm1, %v4027_v6, %v4028_v1  ;;  %v2099_v57 = vsel %vm488_vm1, %v4028_v1, %v4032_v43  ;;  %v2106_v19 = vmul.f32 %v4027_v6, %v4870_v16  ;;  %v2584_v43 = vld [vmem:[%s4387_s13 + $0x14] sm:$0xf] }
 0x2d4   : > { %v2007_v8 = vsel %vm393_vm2, %v4018_v7, %v4022_v25  ;;  %v2008_v62 = vsel %vm393_vm2, %v4022_v25, %v4023_v14  ;;  %v2108_v13 = vmul.f32 %v2099_v57, %v4900_v4  ;;  %v2107_v60 = vmul.f32 %v2098_v26, %v4872_v22 }
 0x2d5   : > { %v4047_v7 = vunpack.i.l.bf16 %v4046_v46  ;;  %v2016_v11 = vmul.f32 %v2007_v8, %v4900_v4  ;;  %v2017_v10 = vmul.f32 %v2008_v62, %v4891_v35  ;;  %v2621_v63 = vunpack.c.l.bf16 %v2584_v43  ;;  %v2136_v46 = vld [vmem:[%s4387_s13 + $0x14] sm:$0xf] }
 0x2d6   : > { %v2112_v48 = vpack.c.bf16 %v2109_v40, %v2108_v13  ;;  %v2111_v23 = vpack.c.bf16 %v2107_v60, %v2106_v19  ;;  %v2169_v40 = vunpack.c.l.bf16 %v2136_v46  ;;  %v2224_v60 = vld [vmem:[%s4387_s13 + $0x14] sm:$0xf] }
 0x2d7   : > { %v1917_v17 = vsel %vm1254_vm13, %v4047_v7, %v4048_v36  ;;  %v1925_v33 = vmul.f32 %v4047_v7, %v4870_v16  ;;  %v2020_v21 = vpack.c.bf16 %v2017_v10, %v2016_v11  ;;  %v2261_v11 = vunpack.c.l.bf16 %v2224_v60 }
 0x2d8   : > { %v5070_v49 = vpop.permute.xlu1 %4040  ;;  %2025 = vrot.lane.b32.xlu1 %v2019_v29, %s4231_s14  ;;  %v1926_v27 = vmul.f32 %v1917_v17, %v4872_v22  ;;  %v2529_v29 = vunpack.c.l.bf16 %v2496_v47  ;;  %v1805_v17 = vunpack.c.l.bf16 %v1772_v15  ;;  %v3649_v15 = vld [vmem:[#allocation2 + $0xa4] sm:$0xf] }
 0x2d9   : > { %1756 = vrot.lane.b32.xlu0 %v1748_v41, %s5429_s11  ;;  %v4036_v34 = vpop.permute.xlu0 %4035  ;;  %1662 = vrot.lane.b32.xlu2 %v1654_v50, %s4239_s30  ;;  %v4043_v38 = vunpack.i.h.bf16 %v5070_v49  ;;  %v4042_v2 = vunpack.i.l.bf16 %v5070_v49  ;;  %s5431_s30 = smov 120   ;;  %v2404_v41 = vld [vmem:[%s4387_s13 + $0x14] sm:$0xf]  ;;  %s5350_s11 = scalar_lea.vmem [#allocation8], %s3405_s28 }
 0x2da   : > { %v4038_v37 = vunpack.i.h.bf16 %v4036_v34  ;;  %v4037_v5 = vunpack.i.l.bf16 %v4036_v34  ;;  %v1930_v58 = vpack.c.bf16 %v1926_v27, %v1925_v33  ;;  %v2558_v57 = vmul.f32 %v3963_v42, %v2529_v29  ;;  %v2316_v50 = vld [vmem:[%s4387_s13 + $0x14] sm:$0xf] }
 0x2db   : > { %v1825_v20 = vsel %vm1344_vm12, %v4042_v2, %v4043_v38  ;;  %v2441_v62 = vunpack.c.l.bf16 %v2404_v41  ;;  %v2349_v13 = vunpack.c.l.bf16 %v2316_v50  ;;  %v2044_v42 = vld [vmem:[%s4387_s13 + $0x14] sm:$0xf]  ;;  %v1835_v52 = vmul.f32 %v4043_v38, %v1805_v17  ;;  %v3478_v17 = vld [vmem:[#allocation2 + $0x90] sm:$0xf0]  ;;  %s326_s13 = scalar_select %p325_p1, %s4207_s22, 1 }
 0x2dc   : > { %v1824_v12 = vsel %vm1344_vm12, %v4038_v37, %v4042_v2  ;;  %v1823_v51 = vsel %vm1344_vm12, %v4037_v5, %v4038_v37  ;;  %v1834_v44 = vmul.f32 %v1825_v20, %v4891_v35  ;;  %v1831_v28 = vmul.f32 %v4037_v5, %v4870_v16 }
 0x2dd   : > { %v1833_v30 = vmul.f32 %v1824_v12, %v4900_v4  ;;  %v1832_v3 = vmul.f32 %v1823_v51, %v4872_v22  ;;  %v2650_v22 = vmul.f32 %v3973_v56, %v2621_v63  ;;  %v2378_v56 = vmul.f32 %v3983_v61, %v2349_v13 }
 0x2de   : > { %v1989_v37 = vunpack.c.l.bf16 %v1956_v0  ;;  %v2081_v7 = vunpack.c.l.bf16 %v2044_v42 }
 0x2df   : > { %v1837_v53 = vpack.c.bf16 %v1834_v44, %v1833_v30  ;;  %v1836_v25 = vpack.c.bf16 %v1832_v3, %v1831_v28  ;;  %v2653_v34 = vpack.c.bf16 %v2650_v22, %v2650_v22  ;;  %v2381_v10 = vpack.c.bf16 %v2378_v56, %v2378_v56  ;;  %v3655_v22 = vld [vmem:[#allocation2 + $0xcc] sm:$0xf0] }
 0x2e0   : > { %2119 = vrot.lane.b32.xlu1 %v2112_v48, %s4232_s17  ;;  %v2018_v55 = vmul.f32 %v4023_v14, %v1989_v37  ;;  %v2110_v61 = vmul.f32 %v4033_v31, %v2081_v7 }
 0x2e1   : > { %2117 = vrot.lane.b32.xlu0 %v2111_v23, %s4232_s17  ;;  %2027 = vrot.lane.b32.xlu2 %v2020_v21, %s4231_s14  ;;  %v4051_v32 = vpop.permute.xlu0 %4050  ;;  %v1838_v21 = vpack.c.bf16 %v1835_v52, %v1835_v52 }
 0x2e2   : > { %v4053_v1 = vunpack.i.h.bf16 %v4051_v32  ;;  %v4052_v6 = vunpack.i.l.bf16 %v4051_v32  ;;  %v2113_v48 = vpack.c.bf16 %v2110_v61, %v2110_v61  ;;  %v2021_v23 = vpack.c.bf16 %v2018_v55, %v2018_v55 }
 0x2e4   : > { %v1918_v26 = vsel %vm1254_vm13, %v4048_v36, %v4052_v6  ;;  %v1919_v16 = vsel %vm1254_vm13, %v4052_v6, %v4053_v1  ;;  %v2561_v36 = vpack.c.bf16 %v2558_v57, %v2558_v57  ;;  %v3510_v57 = vld [vmem:[#allocation2 + $0xd0] sm:$0xf0] }
 0x2e5   : > { %v1927_v8 = vmul.f32 %v1918_v26, %v4900_v4  ;;  %v1928_v19 = vmul.f32 %v1919_v16, %v4891_v35  ;;  %v2198_v4 = vmul.f32 %v4003_v45, %v2169_v40  ;;  %v2470_v35 = vmul.f32 %v3993_v39, %v2441_v62 }
 0x2e6   : > { %v2290_v45 = vmul.f32 %v4013_v9, %v2261_v11  ;;  %v1899_v39 = vunpack.c.l.bf16 %v1862_v59  ;;  %v3494_v59 = vld [vmem:[#allocation2 + $0xb0] sm:$0xf0] }
 0x2e7   : > { %v1931_v54 = vpack.c.bf16 %v1928_v19, %v1927_v8  ;;  %v2201_v2 = vpack.c.bf16 %v2198_v4, %v2198_v4  ;;  %v2473_v5 = vpack.c.bf16 %v2470_v35, %v2470_v35 }
 0x2e8   : > { %1936 = vrot.lane.b32.xlu1 %v1930_v58, %s5430_s24  ;;  %v2293_v12 = vpack.c.bf16 %v2290_v45, %v2290_v45  ;;  %v1929_v20 = vmul.f32 %v4053_v1, %v1899_v39  ;;  %v3492_v45 = vld [vmem:[#allocation2 + $0xa0] sm:$0xf] }
 0x2e9   : > { %1844 = vrot.lane.b32.xlu0 %v1837_v53, %s5431_s30  ;;  %1842 = vrot.lane.b32.xlu2 %v1836_v25, %s5431_s30 }
 0x2ea   : > { %v1932_v14 = vpack.c.bf16 %v1929_v20, %v1929_v20  ;;  %v3645_v20 = vld [vmem:[#allocation2 + $0x84] sm:$0xf] }
 0x2f0   : > { %2661 = vrot.lane.b32.xlu1 %v2653_v34, %s4228_s12  ;;  %v3508_v34 = vld [vmem:[#allocation2 + $0xc0] sm:$0xf] }
 0x2f1   : > { %2569 = vrot.lane.b32.xlu0 %v2561_v36, %s4224_s4  ;;  %1938 = vrot.lane.b32.xlu2 %v1931_v54, %s5430_s24  ;;  %v3653_v36 = vld [vmem:[#allocation2 + $0xc4] sm:$0xf]  ;;  %v3509_v42 = vor.u32 %v3655_v22, %v3508_v34  ;;  %s5252_s4 = sshll.u32 %s326_s13, 3 }
 0x2f2   : > { %v3513_v60 = vor.u32 %v3653_v36, %v3510_v57  ;;  %v3639_v36 = vld [vmem:[#allocation2 + $0x4c] sm:$0xf0]  ;;  %s329_s12 = scalar_lea.vmem %s5402_s1, %s5252_s4  ;;  %s337_s15 = scalar_lea.vmem %s5404_s3, %s5252_s4 }
 0x2f8   : > { %2209 = vrot.lane.b32.xlu1 %v2201_v2, %s4229_s29 }
 0x2f9   : > { %2481 = vrot.lane.b32.xlu0 %v2473_v5, %s4226_s27  ;;  %2389 = vrot.lane.b32.xlu2 %v2381_v10, %s4230_s9  ;;  %v3651_v10 = vld [vmem:[#allocation2 + $0xac] sm:$0xf0] }
 0x2fa   : > { %v3493_v39 = vor.u32 %v3651_v10, %v3492_v45  ;;  %v3428_v10 = vld [vmem:[#allocation2 + $0x20] sm:$0xf] }
 0x300   : > { %2121 = vrot.lane.b32.xlu1 %v2113_v48, %s4232_s17  ;;  %v3497_v48 = vor.u32 %v3649_v15, %v3494_v59  ;;  %v3633_v59 = vld [vmem:[#allocation2 + $0x24] sm:$0xf]  ;;  %v3631_v15 = vld [vmem:[#allocation2 + $0xc] sm:$0xf0] }
 0x301   : > { %2029 = vrot.lane.b32.xlu0 %v2021_v23, %s4231_s14  ;;  %2301 = vrot.lane.b32.xlu2 %v2293_v12, %s4227_s6  ;;  %v3647_v23 = vld [vmem:[#allocation2 + $0x8c] sm:$0xf0]  ;;  %v3476_v12 = vld [vmem:[#allocation2 + $0x80] sm:$0xf]  ;;  %s333_s14 = scalar_lea.vmem %s5403_s2, %s5252_s4 }
 0x303   : > { %v5141_v24 = vpop.permute.xlu2 %1660  ;;  %v1659_v18 = vpop.permute.xlu1 %1658 }
 0x304   : > { %v1665_v9 = vrot.slane %v5141_v24, 4  ;;  %v1664_v31 = vrot.slane %v1659_v18, 4 }
 0x306   : > { %v1667_v51 = vsel %vm422_vm11, %v1664_v31, %v1665_v9  ;;  %v3477_v31 = vor.u32 %v3647_v23, %v3476_v12 }
 0x307   : > { %v1669_v33 = vsel %vm1498_vm7, %v1659_v18, %v1667_v51 }
 0x308   : > { %1674 = vst [vmem:[#allocation2 + $0xe0] sm:$0xff] %v1669_v33 }
 0x309   : > { %1940 = vrot.lane.b32.xlu0 %v1932_v14, %s5430_s24  ;;  %1846 = vrot.lane.b32.xlu2 %v1838_v21, %s5431_s30  ;;  %v3481_v14 = vor.u32 %v3645_v20, %v3478_v17  ;;  %s3623_s24 = sshll.u32 %s4203_s21, 1 }
 0x30a   : > { %s3251_s30 = sadd.s32 %s4207_s22, %s3623_s24  ;;  %s3243_s22 = scalar_lea.sflag [#allocation5], %s4383_s16 }
 0x30b   : > { %v2746_v27 = vpop.permute.xlu2 %2745  ;;  %s3681_s13 = sshll.u32 %s3251_s30, 5 }
 0x30c   : > { %v2751_v6 = vrot.slane %v2746_v27, 4  ;;  %s3256_s6 = scalar_lea.hbm %s5406_s5, %s3681_s13 }
 0x30d   : > { %s3260_s21 = sshll.u32 %s3256_s6, 4  ;;  %s3261_s21 = int_to_ptr.hbm [resolvable:$true] %s3260_s21 }
 0x30e   : > { %s4131_s29 = sshra.s32 %s3261_s21, 4  ;;  %s4132_s29 = int_to_ptr.hbm [resolvable:$true] %s4131_s29 }
 0x30f   : > { %v3524_v16 = vld [vmem:[#allocation2 + $0xe0] sm:$0xf]  ;;  %v3657_v19 = vld [vmem:[#allocation2 + $0xe4] sm:$0xf]  ;;  %s4133_s9 = scalar_lea.hbm %s4132_s29, 32  ;;  %p4138_p10 = scmp.lt.s32.totalorder %s4132_s29, %s5406_s5 }
 0x310   : > { %p4134_p3 = scmp.ne.s32.totalorder %s4132_s29, %s4133_s9  ;;  %p4139_p11 = scmp.lt.s32.totalorder %s4137_s8, %s4133_s9 }
 0x312   : > { %p4135_p7 = pnand %p4134_p3, %p4362_p0  ;;  %p4140_p12 = por %p4139_p11, %p4138_p10 }
 0x313   : > { %v5152_v30 = vpop.permute.xlu2 %2567 }
 0x314   : > { %v2572_v58 = vrot.slane %v5152_v30, 4  ;;  %p4136_p9 = pneg %p4135_p7 }
 0x316   : > { %p4141_p13 = pnand %p4140_p12, %p4136_p9 }
 0x31a   : > { %v1753_v49 = vpop.permute.xlu0 %1752  ;;  %v5154_v44 = vpop.permute.xlu1 %1754 }
 0x31b   : > { %v1758_v38 = vrot.slane %v1753_v49, 4  ;;  %v1759_v28 = vrot.slane %v5154_v44, 4  ;;  %v5157_v32 = vpop.permute.xlu2 %2385 }
 0x31c   : > { %v2391_v51 = vrot.slane %v5157_v32, 4 }
 0x31d   : > { %v1761_v3 = vsel %vm422_vm11, %v1758_v38, %v1759_v28  ;;  %v3643_v38 = vld [vmem:[#allocation2 + $0x6c] sm:$0xf0] }
 0x31e   : > { %v1763_v43 = vsel %vm1408_vm14, %v1753_v49, %v1761_v3 }
 0x31f   : > { %1768 = vst [vmem:[#allocation2 + $0xf0] sm:$0xff] %v1763_v43  ;;  %v3462_v43 = vld [vmem:[#allocation2 + $0x70] sm:$0xf0] }
 0x322   : > { %v2566_v47 = vpop.permute.xlu1 %2565 }
 0x323   : > { %v5163_v1 = vpop.permute.xlu0 %2747  ;;  %v2571_v53 = vrot.slane %v2566_v47, 4  ;;  %v5167_v63 = vpop.permute.xlu2 %2479 }
 0x324   : > { %v2752_v25 = vrot.slane %v5163_v1, 4  ;;  %v2484_v33 = vrot.slane %v5167_v63, 4 }
 0x325   : > { %v2574_v29 = vsel %vm422_vm11, %v2571_v53, %v2572_v58  ;;  %v3460_v53 = vld [vmem:[#allocation2 + $0x60] sm:$0xf] }
 0x326   : > { %v2754_v26 = vsel %vm422_vm11, %v2751_v6, %v2752_v25  ;;  %v2575_v46 = vsel %vm578_vm4, %v2566_v47, %v2574_v29  ;;  %v3659_v8 = vld [vmem:[#allocation2 + $0xec] sm:$0xf0]  ;;  %v3526_v50 = vld [vmem:[#allocation2 + $0xf0] sm:$0xf0]  ;;  %v3641_v29 = vld [vmem:[#allocation2 + $0x64] sm:$0xf] }
 0x327   : > { %v2755_v41 = vsel %vm393_vm2, %v2746_v27, %v2754_v26  ;;  %2580 = vst [vmem:[#allocation2 + $0x180] sm:$0xff] %v2575_v46  ;;  %v3525_v40 = vor.u32 %v3659_v8, %v3524_v16  ;;  %v3529_v62 = vor.u32 %v3657_v19, %v3526_v50  ;;  %v3461_v46 = vor.u32 %v3643_v38, %v3460_v53 }
 0x328   : > { %v2981_v13 = vunpack.c.l.b16 %v2755_v41  ;;  %v2982_v54 = vunpack.c.h.b16 %v2755_v41 }
 0x329   : > { %3110 = vmatpush.bf16.msra.mxu0 %v3525_v40  ;;  %3136 = vmatpush.bf16.msra.mxu2 %v3529_v62  ;;  %v3465_v40 = vor.u32 %v3641_v29, %v3462_v43 }
 0x32a   : > { %v3037_v4 = vpack.c.b16 %v2981_v13, %v2981_v13  ;;  %v3038_v35 = vpack.c.b16 %v2982_v54, %v2982_v54  ;;  %v5177_v56 = vpop.permute.xlu1 %2659  ;;  %v3446_v13 = vld [vmem:[#allocation2 + $0x50] sm:$0xf0]  ;;  %v3444_v54 = vld [vmem:[#allocation2 + $0x40] sm:$0xf] }
 0x32b   : > { %v2658_v0 = vpop.permute.xlu0 %2657  ;;  %v2664_v37 = vrot.slane %v5177_v56, 4  ;;  %v5180_v2 = vpop.permute.xlu2 %2297 }
 0x32c   : > { %v2663_v7 = vrot.slane %v2658_v0, 4  ;;  %v3099_v5 = vsel %vm422_vm11, %v3037_v4, 0  ;;  %v3102_v11 = vsel %vm422_vm11, %v3038_v35, 0  ;;  %v3637_v4 = vld [vmem:[#allocation2 + $0x44] sm:$0xf]  ;;  %v2303_v38 = vrot.slane %v5180_v2, 4 }
 0x32d   : > { %3125 = vmatpush.bf16.msra.mxu1 %v3099_v5  ;;  %3151 = vmatpush.bf16.msra.mxu3 %v3102_v11  ;;  %v3430_v5 = vld [vmem:[#allocation2 + $0x30] sm:$0xf0] }
 0x32e   : > { %v2666_v55 = vsel %vm422_vm11, %v2663_v7, %v2664_v37  ;;  %3111 = vmatpush.bf16.msra.mxu0 %v3509_v42  ;;  %3137 = vmatpush.bf16.msra.mxu2 %v3513_v60  ;;  %v3604_v26 = vld [vmem:[#allocation2 + $0x180] sm:$0xf]  ;;  %v3677_v8 = vld [vmem:[#allocation2 + $0x184] sm:$0xf]  ;;  %v3445_v42 = vor.u32 %v3639_v36, %v3444_v54  ;;  %v3449_v60 = vor.u32 %v3637_v4, %v3446_v13  ;;  %v3635_v7 = vld [vmem:[#allocation2 + $0x2c] sm:$0xf0] }
 0x32f   : > { %v2667_v61 = vsel %vm488_vm1, %v2658_v0, %v2666_v55 }
 0x330   : > { %2672 = vst [vmem:[#allocation2 + $0x190] sm:$0xff] %v2667_v61 }
 0x332   : > { %3112 = vmatpush.bf16.msra.mxu0 %v3493_v39  ;;  %3138 = vmatpush.bf16.msra.mxu2 %v3497_v48  ;;  %v2478_v18 = vpop.permute.xlu1 %2477  ;;  %v3429_v39 = vor.u32 %v3635_v7, %v3428_v10  ;;  %v3433_v48 = vor.u32 %v3633_v59, %v3430_v5 }
 0x333   : > { %v5188_v52 = vpop.permute.xlu0 %2387  ;;  %v2483_v21 = vrot.slane %v2478_v18, 4  ;;  %v1663_v49 = vpop.permute.xlu2 %1662 }
 0x334   : > { %v2392_v27 = vrot.slane %v5188_v52, 4  ;;  %v1666_v3 = vrot.slane %v1663_v49, 4  ;;  %v3629_v49 = vld [vmem:[#allocation2 + $0x4] sm:$0xf] }
 0x335   : > { %v2486_v47 = vsel %vm422_vm11, %v2483_v21, %v2484_v33 }
 0x336   : > { %v2394_v6 = vsel %vm422_vm11, %v2391_v51, %v2392_v27  ;;  %3113 = vmatpush.bf16.msra.mxu0 %v3477_v31  ;;  %3139 = vmatpush.bf16.msra.mxu2 %v3481_v14  ;;  %v2487_v16 = vsel %vm672_vm8, %v2478_v18, %v2486_v47  ;;  %v1670_v57 = vsel %vm422_vm11, %v1665_v9, %v1666_v3  ;;  %v3414_v18 = vld [vmem:[#allocation2 + $0x10] sm:$0xf0]  ;;  %v3412_v31 = vld [vmem:[#allocation2] sm:$0xf] }
 0x337   : > { %v2395_v22 = vsel %vm762_vm3, %v5157_v32, %v2394_v6  ;;  %v3679_v41 = vld [vmem:[#allocation2 + $0x18c] sm:$0xf0]  ;;  %v3606_v19 = vld [vmem:[#allocation2 + $0x190] sm:$0xf0]  ;;  %2492 = vst [vmem:[#allocation2 + $0x170] sm:$0xff] %v2487_v16  ;;  %v1671_v50 = vsel %vm1498_vm7, %v5141_v24, %v1670_v57  ;;  %v3413_v21 = vor.u32 %v3631_v15, %v3412_v31  ;;  %v3417_v6 = vor.u32 %v3629_v49, %v3414_v18 }
 0x338   : > { %v3605_v62 = vor.u32 %v3679_v41, %v3604_v26  ;;  %v3609_v34 = vor.u32 %v3677_v8, %v3606_v19  ;;  %2400 = vst [vmem:[#allocation2 + $0x160] sm:$0xff] %v2395_v22 }
 0x339   : > { %1675 = vst [vmem:[#allocation2 + $0xe8] sm:$0xff] %v1671_v50 }
 0x33a   : > { %3114 = vmatpush.bf16.msra.mxu0 %v3461_v46  ;;  %3140 = vmatpush.bf16.msra.mxu2 %v3465_v40  ;;  %v5207_v9 = vpop.permute.xlu1 %2207 }
 0x33b   : > { %3126 = vmatpush.bf16.msra.mxu1 %v3605_v62  ;;  %3152 = vmatpush.bf16.msra.mxu3 %v3609_v34  ;;  %v2206_v32 = vpop.permute.xlu0 %2205  ;;  %v2212_v35 = vrot.slane %v5207_v9, 4  ;;  %v5210_v24 = vpop.permute.xlu2 %2027 }
 0x33c   : > { %v2211_v0 = vrot.slane %v2206_v32, 4  ;;  %v2032_v41 = vrot.slane %v5210_v24, 4 }
 0x33e   : > { %v2214_v11 = vsel %vm422_vm11, %v2211_v0, %v2212_v35  ;;  %3115 = vmatpush.bf16.msra.mxu0 %v3445_v42  ;;  %3141 = vmatpush.bf16.msra.mxu2 %v3449_v60  ;;  %v3675_v61 = vld [vmem:[#allocation2 + $0x16c] sm:$0xf0]  ;;  %v3590_v45 = vld [vmem:[#allocation2 + $0x170] sm:$0xf0] }
 0x33f   : > { %v2215_v55 = vsel %vm608_vm5, %v2206_v32, %v2214_v11  ;;  %v3588_v23 = vld [vmem:[#allocation2 + $0x160] sm:$0xf]  ;;  %v3673_v17 = vld [vmem:[#allocation2 + $0x164] sm:$0xf] }
 0x340   : > { %2220 = vst [vmem:[#allocation2 + $0x140] sm:$0xff] %v2215_v55  ;;  %v3589_v12 = vor.u32 %v3675_v61, %v3588_v23  ;;  %v3593_v20 = vor.u32 %v3673_v17, %v3590_v45  ;;  %v3658_v61 = vld [vmem:[#allocation2 + $0xec] sm:$0xf]  ;;  %v3518_v23 = vld [vmem:[#allocation2 + $0xd8] sm:$0xf0] }
 0x342   : > { %3116 = vmatpush.bf16.msra.mxu0 %v3429_v39  ;;  %3142 = vmatpush.bf16.msra.mxu2 %v3433_v48  ;;  %v2750_v14 = vpop.permute.xlu1 %2749  ;;  %v5268_v39 = vld [vmem:[%s329_s12] sm:$0xff]  ;;  %v3654_v48 = vld [vmem:[#allocation2 + $0xcc] sm:$0xf]  ;;  %s3258_s12 = sshll.u32 %s5350_s11, 4  ;;  %s3259_s12 = int_to_ptr.vmem [resolvable:$true] %s3258_s12 }
 0x343   : > { %3127 = vmatpush.bf16.msra.mxu1 %v3589_v12  ;;  %3153 = vmatpush.bf16.msra.mxu3 %v3593_v20  ;;  %v5216_v51 = vpop.permute.xlu0 %2299  ;;  %v2753_v3 = vrot.slane %v2750_v14, 4  ;;  %v5220_v47 = vpop.permute.xlu2 %1842  ;;  %v2818_v17 = vunpack.c.l.b16 %v5268_v39 }
 0x344   : > { %v2304_v43 = vrot.slane %v5216_v51, 4  ;;  %v1848_v12 = vrot.slane %v5220_v47, 4 }
 0x345   : > { %v2756_v53 = vsel %vm422_vm11, %v2752_v25, %v2753_v3 }
 0x346   : > { %v2306_v29 = vsel %vm422_vm11, %v2303_v38, %v2304_v43  ;;  %3117 = vmatpush.bf16.msra.mxu0 %v3413_v21  ;;  %3143 = vmatpush.bf16.msra.mxu2 %v3417_v6  ;;  %v5230_v26 = vsel %vm393_vm2, %v5163_v1, %v2756_v53  ;;  %v5273_v21 = vpack.c.b16 %v2818_v17, %v2818_v17  ;;  %vm5432_vm2 = vcmask 973824  }
 0x347   : > { %v2307_v16 = vsel %vm702_vm0, %v5180_v2, %v2306_v29  ;;  %v2984_v22 = vunpack.c.h.b16 %v5230_v26  ;;  %v3572_v36 = vld [vmem:[#allocation2 + $0x140] sm:$0xf]  ;;  %v3669_v13 = vld [vmem:[#allocation2 + $0x144] sm:$0xf]  ;;  %v3521_v38 = vor.u32 %v3654_v48, %v3518_v23  ;;  %v3502_v29 = vld [vmem:[#allocation2 + $0xb8] sm:$0xf0] }
 0x348   : > { %2312 = vst [vmem:[#allocation2 + $0x150] sm:$0xff] %v2307_v16  ;;  %v3532_v23 = vld [vmem:[#allocation2 + $0xe8] sm:$0xf] }
 0x349   : > { %v3040_v57 = vpack.c.b16 %v2984_v22, %v2984_v22  ;;  %3144 = vmatmul.bf16.vlgmr.msra.gmra.mxu2 %v5273_v21  ;;  %3118 = vmatmul.bf16.vlgmr.msra.gmra.mxu0 %v5273_v21 }
 0x34a   : > { %v2026_v46 = vpop.permute.xlu1 %2025 }
 0x34b   : > { %v1757_v25 = vpop.permute.xlu0 %1756  ;;  %v2031_v8 = vrot.slane %v2026_v46, 4  ;;  %v5237_v50 = vpop.permute.xlu2 %1938  ;;  %v3108_v1 = vsel %vm422_vm11, %v3040_v57, 0 }
 0x34c   : > { %v1760_v19 = vrot.slane %v1757_v25, 4  ;;  %3203 = vmatpush.bf16.msrb.mxu2 %v3108_v1 }
 0x34d   : > { %v2034_v2 = vsel %vm422_vm11, %v2031_v8, %v2032_v41 }
 0x34e   : > { %v1764_v40 = vsel %vm422_vm11, %v1759_v28, %v1760_v19  ;;  %v2035_v62 = vsel %vm424_vm6, %v2026_v46, %v2034_v2 }
 0x34f   : > { %v1765_v34 = vsel %vm1408_vm14, %v5154_v44, %v1764_v40  ;;  %2040 = vst [vmem:[#allocation2 + $0x120] sm:$0xff] %v2035_v62  ;;  %v3671_v32 = vld [vmem:[#allocation2 + $0x14c] sm:$0xf0]  ;;  %v3574_v54 = vld [vmem:[#allocation2 + $0x150] sm:$0xf0] }
 0x350   : > { %1769 = vst [vmem:[#allocation2 + $0xf8] sm:$0xff] %v1765_v34  ;;  %v3573_v4 = vor.u32 %v3671_v32, %v3572_v36  ;;  %v3577_v0 = vor.u32 %v3669_v13, %v3574_v54  ;;  %v3650_v40 = vld [vmem:[#allocation2 + $0xac] sm:$0xf] }
 0x351   : > { %v3505_v62 = vor.u32 %v3650_v40, %v3502_v29  ;;  %v3646_v54 = vld [vmem:[#allocation2 + $0x8c] sm:$0xf] }
 0x352   : > { %3128 = vmatpush.bf16.msra.mxu1 %v3573_v4  ;;  %3154 = vmatpush.bf16.msra.mxu3 %v3577_v0  ;;  %v5250_v42 = vpop.permute.xlu1 %2119  ;;  %v2983_v4 = vunpack.c.l.b16 %v5230_v26 }
 0x353   : > { %v2118_v60 = vpop.permute.xlu0 %2117  ;;  %v2124_v28 = vrot.slane %v5250_v42, 4  ;;  %v2390_v7 = vpop.permute.xlu2 %2389 }
 0x354   : > { %v2123_v44 = vrot.slane %v2118_v60, 4  ;;  %v2393_v5 = vrot.slane %v2390_v7, 4  ;;  %v3470_v7 = vld [vmem:[#allocation2 + $0x78] sm:$0xf0] }
 0x356   : > { %v2126_v11 = vsel %vm422_vm11, %v2123_v44, %v2124_v28  ;;  %v2396_v59 = vsel %vm422_vm11, %v2392_v27, %v2393_v5  ;;  %v1943_v27 = vrot.slane %v5237_v50, 4  ;;  %v3556_v53 = vld [vmem:[#allocation2 + $0x120] sm:$0xf]  ;;  %v3665_v25 = vld [vmem:[#allocation2 + $0x124] sm:$0xf]  ;;  %v2819_v5 = vunpack.c.h.b16 %v5268_v39 }
 0x357   : > { %v2127_v10 = vsel %vm518_vm9, %v2118_v60, %v2126_v11  ;;  %v2397_v55 = vsel %vm762_vm3, %v5188_v52, %v2396_v59  ;;  %v3534_v45 = vld [vmem:[#allocation2 + $0xf8] sm:$0xf0]  ;;  %vm5433_vm3 = vcmask 982016  }
 0x358   : > { %2132 = vst [vmem:[#allocation2 + $0x130] sm:$0xff] %v2127_v10  ;;  %v3537_v15 = vor.u32 %v3658_v61, %v3534_v45  ;;  %v3660_v61 = vld [vmem:[#allocation2 + $0xf4] sm:$0xf0] }
 0x359   : > { %2401 = vst [vmem:[#allocation2 + $0x168] sm:$0xff] %v2397_v55  ;;  %v3533_v17 = vor.u32 %v3660_v61, %v3532_v23  ;;  %v3640_v23 = vld [vmem:[#allocation2 + $0x54] sm:$0xf0] }
 0x35a   : > { %3188 = vmatpush.bf16.msrb.mxu0 %v3537_v15  ;;  %v1937_v20 = vpop.permute.xlu1 %1936  ;;  %v3039_v15 = vpack.c.b16 %v2983_v4, %v2983_v4  ;;  %v3648_v4 = vld [vmem:[#allocation2 + $0x94] sm:$0xf0] }
 0x35b   : > { %v1845_v18 = vpop.permute.xlu0 %1844  ;;  %v1942_v31 = vrot.slane %v1937_v20, 4  ;;  %v2302_v52 = vpop.permute.xlu2 %2301 }
 0x35c   : > { %v1849_v14 = vrot.slane %v1845_v18, 4  ;;  %v2305_v49 = vrot.slane %v2302_v52, 4  ;;  %v3656_v52 = vld [vmem:[#allocation2 + $0xd4] sm:$0xf0] }
 0x35d   : > { %v1945_v3 = vsel %vm422_vm11, %v1942_v31, %v1943_v27 }
 0x35e   : > { %v1851_v6 = vsel %vm422_vm11, %v1848_v12, %v1849_v14  ;;  %v1947_v16 = vsel %vm5432_vm2, %v1937_v20, %v1945_v3  ;;  %v2308_v57 = vsel %vm422_vm11, %v2304_v43, %v2305_v49  ;;  %3189 = vmatpush.bf16.msrb.mxu0 %v3521_v38  ;;  %v3454_v12 = vld [vmem:[#allocation2 + $0x58] sm:$0xf0]  ;;  %v5303_v20 = vpack.c.b16 %v2819_v5, %v2819_v5 }
 0x35f   : > { %v1853_v22 = vsel %vm5433_vm3, %v5220_v47, %v1851_v6  ;;  %v3667_v46 = vld [vmem:[#allocation2 + $0x12c] sm:$0xf0]  ;;  %v3558_v8 = vld [vmem:[#allocation2 + $0x130] sm:$0xf0]  ;;  %1952 = vst [vmem:[#allocation2 + $0x110] sm:$0xff] %v1947_v16  ;;  %v2309_v19 = vsel %vm702_vm0, %v5216_v51, %v2308_v57  ;;  %vm5434_vm0 = vmmov %vm5433_vm3  ;;  %v3105_v3 = vsel %vm422_vm11, %v3039_v15, 0 }
 0x360   : > { %v3557_v1 = vor.u32 %v3667_v46, %v3556_v53  ;;  %v3561_v2 = vor.u32 %v3665_v25, %v3558_v8  ;;  %1858 = vst [vmem:[#allocation2 + $0x100] sm:$0xff] %v1853_v22  ;;  %v3486_v47 = vld [vmem:[#allocation2 + $0x98] sm:$0xf0]  ;;  %v3638_v6 = vld [vmem:[#allocation2 + $0x4c] sm:$0xf]  ;;  %v3214_v46 = vld [vmem:[%s333_s14] sm:$0xff] }
 0x361   : > { %2313 = vst [vmem:[#allocation2 + $0x158] sm:$0xff] %v2309_v19  ;;  %v3489_v51 = vor.u32 %v3646_v54, %v3486_v47  ;;  %v3457_v53 = vor.u32 %v3638_v6, %v3454_v12  ;;  %v3438_v57 = vld [vmem:[#allocation2 + $0x38] sm:$0xf0]  ;;  %v3224_v25 = vld [vmem:[%s337_s15] sm:$0xff]  ;;  %v3674_v61 = vld [vmem:[#allocation2 + $0x16c] sm:$0xf] }
 0x362   : > { %3129 = vmatpush.bf16.msra.mxu1 %v3557_v1  ;;  %3155 = vmatpush.bf16.msra.mxu3 %v3561_v2  ;;  %v2662_v34 = vpop.permute.xlu1 %2661  ;;  %v3652_v2 = vld [vmem:[#allocation2 + $0xb4] sm:$0xf0]  ;;  %v3422_v54 = vld [vmem:[#allocation2 + $0x18] sm:$0xf0] }
 0x363   : > { %3190 = vmatpush.bf16.msrb.mxu0 %v3505_v62  ;;  %v2570_v43 = vpop.permute.xlu0 %2569  ;;  %v2665_v36 = vrot.slane %v2662_v34, 4  ;;  %v1847_v32 = vpop.permute.xlu2 %1846  ;;  %v3634_v34 = vld [vmem:[#allocation2 + $0x2c] sm:$0xf]  ;;  %v3636_v6 = vld [vmem:[#allocation2 + $0x34] sm:$0xf0] }
 0x364   : > { %v2573_v13 = vrot.slane %v2570_v43, 4  ;;  %v1850_v0 = vrot.slane %v1847_v32, 4 }
 0x365   : > { %v2668_v60 = vsel %vm422_vm11, %v2664_v37, %v2665_v36  ;;  %v3500_v36 = vld [vmem:[#allocation2 + $0xa8] sm:$0xf] }
 0x366   : > { %v2576_v44 = vsel %vm422_vm11, %v2572_v58, %v2573_v13  ;;  %v2669_v11 = vsel %vm488_vm1, %v5177_v56, %v2668_v60  ;;  %v1854_v26 = vsel %vm422_vm11, %v1849_v14, %v1850_v0  ;;  %v3663_v59 = vld [vmem:[#allocation2 + $0x10c] sm:$0xf0]  ;;  %v3542_v55 = vld [vmem:[#allocation2 + $0x110] sm:$0xf0]  ;;  %v3642_v56 = vld [vmem:[#allocation2 + $0x6c] sm:$0xf] }
 0x367   : > { %v2577_v10 = vsel %vm578_vm4, %v5152_v30, %v2576_v44  ;;  %3191 = vmatpush.bf16.msrb.mxu0 %v3489_v51  ;;  %2673 = vst [vmem:[#allocation2 + $0x198] sm:$0xff] %v2669_v11  ;;  %v1855_v37 = vsel %vm5434_vm0, %v1845_v18, %v1854_v26  ;;  %v3540_v45 = vld [vmem:[#allocation2 + $0x100] sm:$0xf]  ;;  %v3661_v58 = vld [vmem:[#allocation2 + $0x104] sm:$0xf]  ;;  %v3473_v30 = vor.u32 %v3642_v56, %v3470_v7  ;;  %vm3093_vm1 = vcmask 719872   ;;  %vm5435_vm4 = vmmov %vm5432_vm2 }
 0x368   : > { %2581 = vst [vmem:[#allocation2 + $0x188] sm:$0xff] %v2577_v10  ;;  %v3541_v39 = vor.u32 %v3663_v59, %v3540_v45  ;;  %v3545_v48 = vor.u32 %v3661_v58, %v3542_v55  ;;  %v3516_v14 = vld [vmem:[#allocation2 + $0xc8] sm:$0xf]  ;;  %v3630_v60 = vld [vmem:[#allocation2 + $0xc] sm:$0xf] }
 0x369   : > { %1859 = vst [vmem:[#allocation2 + $0x108] sm:$0xff] %v1855_v37  ;;  %v3517_v22 = vor.u32 %v3656_v52, %v3516_v14  ;;  %v3484_v44 = vld [vmem:[#allocation2 + $0x88] sm:$0xf]  ;;  %v3425_v11 = vor.u32 %v3630_v60, %v3422_v54  ;;  %v3644_v37 = vld [vmem:[#allocation2 + $0x74] sm:$0xf0] }
 0x36a   : > { %3130 = vmatpush.bf16.msra.mxu1 %v3541_v39  ;;  %3156 = vmatpush.bf16.msra.mxu3 %v3545_v48  ;;  %v2210_v31 = vpop.permute.xlu1 %2209  ;;  %v3485_v10 = vor.u32 %v3648_v4, %v3484_v44  ;;  %v3596_v55 = vld [vmem:[#allocation2 + $0x168] sm:$0xf] }
 0x36b   : > { %v2482_v18 = vpop.permute.xlu0 %2481  ;;  %3192 = vmatpush.bf16.msrb.mxu0 %v3473_v30  ;;  %v2213_v49 = vrot.slane %v2210_v31, 4  ;;  %v3672_v30 = vld [vmem:[#allocation2 + $0x154] sm:$0xf0] }
 0x36c   : > { %v2485_v38 = vrot.slane %v2482_v18, 4  ;;  %v3452_v18 = vld [vmem:[#allocation2 + $0x48] sm:$0xf] }
 0x36d   : > { %v2216_v29 = vsel %vm422_vm11, %v2212_v35, %v2213_v49  ;;  %3619 = vmatmul.msk.bf16.vlgmr.msra.gmra.mxu3 %vm3093_vm1, %v5303_v20  ;;  %3618 = vmatmul.msk.bf16.vlgmr.msra.gmra.mxu1 %vm3093_vm1, %v5303_v20  ;;  %v3453_v52 = vor.u32 %v3640_v23, %v3452_v18 }
 0x36e   : > { %3162 = vmatpush.bf16.msrb.mxu1 %v3533_v17  ;;  %3177 = vmatpush.bf16.msrb.mxu3 %v3105_v3  ;;  %v2488_v16 = vsel %vm422_vm11, %v2484_v33, %v2485_v38  ;;  %v2217_v8 = vsel %vm608_vm5, %v5207_v9, %v2216_v29  ;;  %v3680_v19 = vld [vmem:[#allocation2 + $0x194] sm:$0xf0]  ;;  %v3614_v1 = vld [vmem:[#allocation2 + $0x198] sm:$0xf0]  ;;  %v4241_v33 = vmov 0   ;;  %v3441_v9 = vor.u32 %v3634_v34, %v3438_v57 }
 0x36f   : > { %v2489_v35 = vsel %vm672_vm8, %v5167_v63, %v2488_v16  ;;  %4054 = vset.pattern.permute.xlu1 %v4241_v33  ;;  %4055 = vset.pattern.permute.xlu2 %v4241_v33  ;;  %2221 = vst [vmem:[#allocation2 + $0x148] sm:$0xff] %v2217_v8  ;;  %v3612_v40 = vld [vmem:[#allocation2 + $0x188] sm:$0xf]  ;;  %v3678_v62 = vld [vmem:[#allocation2 + $0x18c] sm:$0xf]  ;;  %v3501_v63 = vor.u32 %v3652_v2, %v3500_v36 }
 0x370   : > { %3193 = vmatpush.bf16.msrb.mxu0 %v3457_v53  ;;  %2493 = vst [vmem:[#allocation2 + $0x178] sm:$0xff] %v2489_v35  ;;  %v3613_v47 = vor.u32 %v3680_v19, %v3612_v40  ;;  %v3617_v43 = vor.u32 %v3678_v62, %v3614_v1  ;;  %3217 = vperm.xlu1 %4054, %v3214_v46   ;;  %v3582_v17 = vld [vmem:[#allocation2 + $0x158] sm:$0xf0]  ;;  %v3436_v57 = vld [vmem:[#allocation2 + $0x28] sm:$0xf] }
 0x371   : > { %3227 = vperm.xlu2 %4055, %v3224_v25   ;;  %4056 = vset.pattern.permute.xlu0 %v4241_v33  ;;  %v3437_v46 = vor.u32 %v3636_v6, %v3436_v57  ;;  %v3420_v25 = vld [vmem:[#allocation2 + $0x8] sm:$0xf]  ;;  %v3662_v19 = vld [vmem:[#allocation2 + $0x10c] sm:$0xf] }
 0x372   : > { %3163 = vmatpush.bf16.msrb.mxu1 %v3517_v22  ;;  %3178 = vmatpush.bf16.msrb.mxu3 %v3613_v47  ;;  %v2122_v13 = vpop.permute.xlu1 %2121 }
 0x373   : > { %3204 = vmatpush.bf16.msrb.mxu2 %v3617_v43  ;;  %v2030_v32 = vpop.permute.xlu0 %2029  ;;  %v2125_v0 = vrot.slane %v2122_v13, 4 }
 0x374   : > { %3194 = vmatpush.bf16.msrb.mxu0 %v3441_v9  ;;  %v2033_v51 = vrot.slane %v2030_v32, 4 }
 0x375   : > { %v2128_v7 = vsel %vm422_vm11, %v2124_v28, %v2125_v0 }
 0x376   : > { %3164 = vmatpush.bf16.msrb.mxu1 %v3501_v63  ;;  %v2036_v5 = vsel %vm422_vm11, %v2032_v41, %v2033_v51  ;;  %v2129_v26 = vsel %vm518_vm9, %v5250_v42, %v2128_v7  ;;  %v3468_v41 = vld [vmem:[#allocation2 + $0x68] sm:$0xf]  ;;  %v3670_v56 = vld [vmem:[#allocation2 + $0x14c] sm:$0xf] }
 0x377   : > { %v2037_v59 = vsel %vm424_vm6, %v5210_v24, %v2036_v5  ;;  %2133 = vst [vmem:[#allocation2 + $0x138] sm:$0xff] %v2129_v26  ;;  %v3676_v45 = vld [vmem:[#allocation2 + $0x174] sm:$0xf0]  ;;  %v3598_v28 = vld [vmem:[#allocation2 + $0x178] sm:$0xf0]  ;;  %v3469_v39 = vor.u32 %v3644_v37, %v3468_v41  ;;  %v3585_v31 = vor.u32 %v3670_v56, %v3582_v17 }
 0x378   : > { %3195 = vmatpush.bf16.msrb.mxu0 %v3425_v11  ;;  %2041 = vst [vmem:[#allocation2 + $0x128] sm:$0xff] %v2037_v59  ;;  %v3597_v58 = vor.u32 %v3676_v45, %v3596_v55  ;;  %v3601_v15 = vor.u32 %v3674_v61, %v3598_v28  ;;  %v3580_v48 = vld [vmem:[#allocation2 + $0x148] sm:$0xf] }
 0x379   : > { %v3581_v12 = vor.u32 %v3672_v30, %v3580_v48 }
 0x37a   : > { %3165 = vmatpush.bf16.msrb.mxu1 %v3485_v10  ;;  %3179 = vmatpush.bf16.msrb.mxu3 %v3597_v58 }
 0x37b   : > { %3205 = vmatpush.bf16.msrb.mxu2 %v3601_v15  ;;  %v1941_v42 = vpop.permute.xlu0 %1940  ;;  %3196 = vmatmul.bf16.vlgmr.msrb.gmra.mxu0 %v5273_v21 }
 0x37c   : > { %v1944_v24 = vrot.slane %v1941_v42, 4 }
 0x37e   : > { %3166 = vmatpush.bf16.msrb.mxu1 %v3469_v39  ;;  %v1948_v14 = vsel %vm422_vm11, %v1943_v27, %v1944_v24  ;;  %3180 = vmatpush.bf16.msrb.mxu3 %v3581_v12  ;;  %v3668_v38 = vld [vmem:[#allocation2 + $0x134] sm:$0xf0]  ;;  %v3566_v3 = vld [vmem:[#allocation2 + $0x138] sm:$0xf0] }
 0x37f   : > { %v1949_v49 = vsel %vm5435_vm4, %v5237_v50, %v1948_v14  ;;  %3206 = vmatpush.bf16.msrb.mxu2 %v3585_v31  ;;  %v3564_v53 = vld [vmem:[#allocation2 + $0x128] sm:$0xf]  ;;  %v3666_v29 = vld [vmem:[#allocation2 + $0x12c] sm:$0xf]  ;;  %v3632_v27 = vld [vmem:[#allocation2 + $0x14] sm:$0xf0] }
 0x380   : > { %1953 = vst [vmem:[#allocation2 + $0x118] sm:$0xff] %v1949_v49  ;;  %v3565_v16 = vor.u32 %v3668_v38, %v3564_v53  ;;  %v3569_v22 = vor.u32 %v3666_v29, %v3566_v3  ;;  %v3421_v8 = vor.u32 %v3632_v27, %v3420_v25  ;;  %v3548_v50 = vld [vmem:[#allocation2 + $0x108] sm:$0xf] }
 0x382   : > { %3167 = vmatpush.bf16.msrb.mxu1 %v3453_v52  ;;  %3181 = vmatpush.bf16.msrb.mxu3 %v3565_v16 }
 0x383   : > { %3207 = vmatpush.bf16.msrb.mxu2 %v3569_v22 }
 0x386   : > { %3168 = vmatpush.bf16.msrb.mxu1 %v3437_v46 }
 0x387   : > { %v3664_v35 = vld [vmem:[#allocation2 + $0x114] sm:$0xf0]  ;;  %v3550_v1 = vld [vmem:[#allocation2 + $0x118] sm:$0xf0] }
 0x388   : > { %v3549_v2 = vor.u32 %v3664_v35, %v3548_v50  ;;  %v3553_v33 = vor.u32 %v3662_v19, %v3550_v1 }
 0x38a   : > { %3169 = vmatpush.bf16.msrb.mxu1 %v3421_v8  ;;  %3182 = vmatpush.bf16.msrb.mxu3 %v3549_v2 }
 0x38b   : > { %3208 = vmatpush.bf16.msrb.mxu2 %v3553_v33 }
 0x38d   : > { %3170 = vmatmul.bf16.vlgmr.msrb.gmra.mxu1 %v5273_v21  ;;  %3620 = vmatmul.msk.bf16.vlgmr.msrb.gmra.mxu3 %vm3093_vm1, %v5303_v20 }
 0x38e   : > { %3621 = vmatmul.msk.bf16.vlgmr.msrb.gmra.mxu2 %vm3093_vm1, %v5303_v20 }
 0x3c6   : > { %v3119_v40 = vpop.f32.mrf.mxu0 }
 0x3cb   : > { %v3228_v63 = vpop.permute.xlu2 %3227 }
 0x3cc   : > { %v3145_v62 = vpop.f32.mrf.mxu2 }
 0x3ce   : > { %v3121_v47 = vpop.f32.mrf.mxu0 }
 0x3d4   : > { %v3147_v34 = vpop.f32.mrf.mxu2 }
 0x3e2   : > { %v3218_v36 = vpop.permute.xlu1 %3217 }
 0x3ea   : > { %v3132_v43 = vpop.f32.mrf.mxu1 }
 0x3eb   : > { %v3133_v9 = vadd.f32 %v3132_v43, %v3119_v40 }
 0x3ed   : > { %v3220_v13 = vmul.f32 %v3218_v36, %v3133_v9 }
 0x3ef   : > { %v3230_v32 = vadd.f32 %v3228_v63, %v3220_v13 }
 0x3f0   : > { %v3158_v21 = vpop.f32.mrf.mxu3 }
 0x3f1   : > { %v3159_v54 = vadd.f32 %v3158_v21, %v3145_v62  ;;  %v3234_v4 = vmax.f32 %v3230_v32, 0.0 }
 0x3f2   : > { %v3134_v0 = vpop.f32.mrf.mxu1 }
 0x3f3   : > { %v3221_v51 = vmul.f32 %v3218_v36, %v3159_v54  ;;  %3238 = vst [vmem:[%s5350_s11] sm:$0xff] %v3234_v4 }
 0x3f5   : > { %v3231_v20 = vadd.f32 %v3228_v63, %v3221_v51 }
 0x3f7   : > { %v3235_v60 = vmax.f32 %v3231_v20, 0.0 }
 0x3f8   : > { %v3160_v44 = vpop.f32.mrf.mxu3  ;;  %v3197_v7 = vpop.f32.mrf.mxu0 }
 0x3f9   : > { %3239 = vst [vmem:[%s5350_s11 + $0x8] sm:$0xff] %v3235_v60 }
 0x400   : > { %v3199_v5 = vpop.f32.mrf.mxu0 }
 0x40a   : > { %v3171_v11 = vpop.f32.mrf.mxu1 }
 0x410   : > { %v3184_v26 = vpop.f32.mrf.mxu3 }
 0x411   : > { %v3185_v59 = vadd.f32 %v3184_v26, %v3171_v11  ;;  %v3210_v55 = vpop.f32.mrf.mxu2 }
 0x412   : > { %v3173_v10 = vpop.f32.mrf.mxu1  ;;  %v3211_v61 = vadd.f32 %v3210_v55, %v3197_v7 }
 0x413   : > { %v3222_v37 = vmul.f32 %v3218_v36, %v3185_v59 }
 0x414   : > { %v3223_v45 = vmul.f32 %v3218_v36, %v3211_v61 }
 0x415   : > { %v3232_v28 = vadd.f32 %v3228_v63, %v3222_v37 }
 0x416   : > { %v3233_v58 = vadd.f32 %v3228_v63, %v3223_v45 }
 0x417   : > { %v3236_v15 = vmax.f32 %v3232_v28, 0.0 }
 0x418   : > { %v3237_v41 = vmax.f32 %v3233_v58, 0.0  ;;  %v3186_v39 = vpop.f32.mrf.mxu3 }
 0x419   : > { %3240 = vst [vmem:[%s5350_s11 + $0x10] sm:$0xff] %v3236_v15  ;;  %v3212_v48 = vpop.f32.mrf.mxu2 }
 0x41a   : > { %3241 = vst [vmem:[%s5350_s11 + $0x18] sm:$0xff] %v3237_v41 }
 0x41b   : > { %4144 = shalt.err (!%p4141_p13)
}
 0x41c   : > { %3691 = dma.vmem_to_hbm [thread:$0]  (%p4362_p0), %s3259_s12, 512, %s3261_s21, %s3243_s22  }
 0x41d PF: > { %p3708_p2 = scmp.ge.s32.totalorder %s4219_s25, 2  ;;  %s3272_s16 = sand.u32 1, %s4191_s18  }
 0x41e   : > { %s3273_s11 = scalar_lea.sflag [#allocation5], %s3272_s16 }
 0x41f   : > { %p3702_p4 = pnand %p3708_p2, %p4367_p6 }
 0x421   : > { %p3703_p5 = pneg %p3702_p4 }
 0x423   : > { %4186 = dma.done.wait (%p3703_p5), %s3273_s11, 512  }
 0x424   : > { %4188 = vsyncadd (%p3703_p5), %s3273_s11, 4294966784  ;;  %s22_s25 = sadd.s32 1, %s4219_s25   ;;  %s5436_s22 = sld [smem:[#allocation12_spill]] }
 0x425   : > { %p19_p8 = scmp.ge.s32.totalorder %s22_s25, 6   ;;  %s5437_s7 = sld [smem:[#allocation13_spill]] }
 0x426   : > { %s5438_s24 = sld [smem:[#allocation14_spill]]  ;;  %s5439_s18 = smov %s4195_s19 }
 0x427   : > { %s5440_s19 = smov %s4199_s20  ;;  %s5441_s20 = smov %s4373_s10 }
 0x428   : > { %s5442_s21 = smov %s4211_s23  ;;  %21 = sbr.rel (!%p19_p8) target bundleno = 10 (0xa), region = 98 }
 0x42b   : > { %s5443_s23 = smov %s5437_s7 }
 0x42d   :  { %3279 = vsyncpa [#allocation4], 1 }
 0x42e   :  { %3281 = vsyncpa [#allocation4 + $0x1], 1 }
 0x42f   :  { %3282 = vsyncpa [#allocation7], 1 }
 0x430   :  { %3283 = vsyncpa [#allocation5], 1 }
 0x431   :  { %3285 = vsyncpa [#allocation5 + $0x1], 1 }

</bundles_post_ra>
